<compile_context>
chip_gen: v5e
topology: v5e:2x2
jax: 0.10.0
libtpu: 0.0.40
codegen_flags: <defaults>
</compile_context>

<pallas_src>
import functools

import jax
import jax.numpy as jnp
from jax.experimental import pallas as pl
from jax.experimental.pallas import tpu as pltpu

EPS = 1e-5  # PyTorch LayerNorm default


def _hfc_kernel(nhead, compute_dtype,
                q_ref,      # (Lq, B, E)  query  = patch_embed block (seq-first)
                kv_ref,     # (Lk, B, E)  key/val = hfc_embed block
                w_in_ref,   # (E, 3E)     [wq*scale | wk | wv]
                w_o_ref,    # (E, E)      out-projection weight (pre-transposed)
                w_ffn_ref,  # (E, 2F)     [w1 | w2]
                b_ref,      # (10, E)     bq*s, bk, bv, bo, b1, b2, g1, be1, g2, be2
                out_ref):   # (Lq, B, F)
    f32 = jnp.float32
    cdt = compute_dtype

    Lq, B, E = q_ref.shape
    Lk = kv_ref.shape[0]
    hd = E // nhead
    F_ = w_ffn_ref.shape[1] // 2

    bias = b_ref[...].astype(f32)                          # (10, E)
    w_in = w_in_ref[...]                                   # (E, 3E), compute dtype

    # Fold (seq, batch) into the matmul M dimension: lane-dense 2-D matmuls.
    q_res = q_ref[...].reshape(Lq * B, E).astype(f32)      # f32 residual copy
    qf = q_res.astype(cdt)
    kvf = kv_ref[...].reshape(Lk * B, E).astype(cdt)

    # ---- in-projections (Q / K / V): output width E each, f32 accumulation.
    # Weight column slices land on E boundaries -> lane-aligned at production E.
    q2 = jnp.dot(qf, w_in[:, :E], preferred_element_type=f32) + bias[0:1]
    k2 = jnp.dot(kvf, w_in[:, E:2 * E], preferred_element_type=f32) + bias[1:2]
    v2 = jnp.dot(kvf, w_in[:, 2 * E:], preferred_element_type=f32) + bias[2:3]

    # ---- split heads ONCE (minor lane dim hd unchanged), then fold
    # (batch, head) into one leading batch dim for the attention matmuls.
    def to_heads(x, L):
        return (x.astype(cdt)
                 .reshape(L, B, nhead, hd)
                 .transpose(1, 2, 0, 3)
                 .reshape(B * nhead, L, hd))

    qh = to_heads(q2, Lq)                                  # (B*nh, Lq, hd)
    kh = to_heads(k2, Lk)                                  # (B*nh, Lk, hd)
    vh = to_heads(v2, Lk)                                  # (B*nh, Lk, hd)

    # ---- attention, batched over (batch*head); softmax stats in f32
    s = jnp.einsum('bqd,bkd->bqk', qh, kh, preferred_element_type=f32)
    s = s - jnp.max(s, axis=-1, keepdims=True)
    p = jnp.exp(s)
    p = p * pl.reciprocal(jnp.sum(p, axis=-1, keepdims=True), approx=True)
    ctx = jnp.einsum('bqk,bkd->bqd', p.astype(cdt), vh,
                     preferred_element_type=f32)           # (B*nh, Lq, hd)

    # ---- merge heads back into lanes (head-major) and run the out-projection
    # as ONE (Lq*B, E) @ (E, E) matmul (head sum lives in the MXU K dim).
    ctxf = (ctx.astype(cdt)
               .reshape(B, nhead, Lq, hd)
               .transpose(2, 0, 1, 3)
               .reshape(Lq * B, E))
    attn = jnp.dot(ctxf, w_o_ref[...], preferred_element_type=f32) + bias[3:4]

    # ---- residual + LayerNorm1 (two-pass stats, f32)
    x = q_res + attn
    mu = jnp.mean(x, axis=-1, keepdims=True)
    xc = x - mu
    var = jnp.mean(xc * xc, axis=-1, keepdims=True)
    x = xc * jax.lax.rsqrt(var + EPS) * bias[6:7] + bias[7:8]

    # ---- FFN: linear2(relu(linear1(x))) + residual, then LayerNorm2
    w_ffn = w_ffn_ref[...]
    h1 = jnp.dot(x.astype(cdt), w_ffn[:, :F_], preferred_element_type=f32) + bias[4:5]
    h1 = jnp.maximum(h1, 0.0)
    y = jnp.dot(h1.astype(cdt), w_ffn[:, F_:], preferred_element_type=f32) + bias[5:6] + x
    mu2 = jnp.mean(y, axis=-1, keepdims=True)
    yc = y - mu2
    var2 = jnp.mean(yc * yc, axis=-1, keepdims=True)
    out = yc * jax.lax.rsqrt(var2 + EPS) * bias[8:9] + bias[9:10]

    # TODO(synk): output lane width is F_ (<128 at these toy sizes) -> masked
    # stores; lane-dense once proj_dim is a multiple of 128 at production size.
    out_ref[...] = out.reshape(Lq, B, F_).astype(out_ref.dtype)


def _pick_batch_tile(n, max_tile):
    """Batch elements per grid step.  The batch tile is the block's
    second-to-last dim, so it must be the full batch or a multiple of 8."""
    if n <= max_tile:
        return n
    for t in range(min(max_tile, n), 7, -1):
        if t % 8 == 0 and n % t == 0:
            return t
    return n  # fall back to the whole batch in one grid step


def cross_attention_hfc_patch(hfc_embed, patch_embed, params, *, nhead,
                              compute_dtype=jnp.float32, max_batch_tile=8):
    """hfc_embed, patch_embed: (L, N, E) seq-first (PyTorch MHA batch_first=False).

    compute_dtype: dtype of the MXU matmul operands (accumulation is always
    f32).  Use jnp.bfloat16 on v6e/v7x for full MXU throughput / half the
    weight VMEM; keep jnp.float32 when tight (1e-3) accuracy is required.
    """
    Lk, N, E = hfc_embed.shape
    Lq, N2, E2 = patch_embed.shape
    assert (N2, E2) == (N, E)
    F_ = params["lin1_w"].shape[0]
    assert E % nhead == 0
    # Module residual (src2 + patch_embed) only type-checks when
    # dim_feedforward == proj_dim (same assumption as the PyTorch module).
    assert F_ == E, "dim_feedforward must equal proj_dim"
    hd = E // nhead
    scale = 1.0 / (hd ** 0.5)

    B_TILE = _pick_batch_tile(N, max_batch_tile)
    grid = (N // B_TILE,)

    ipw = params["in_proj_w"]                  # (3E, E) rows [Wq; Wk; Wv]
    ipb = params["in_proj_b"]                  # (3E,)

    # 2-D weight slabs (lane-dense matmuls); softmax scale folded into Q proj.
    w_in = jnp.concatenate(
        [ipw[0 * E:1 * E].T * scale, ipw[1 * E:2 * E].T, ipw[2 * E:3 * E].T],
        axis=1).astype(compute_dtype)                             # (E, 3E)
    w_o = params["out_proj_w"].T.astype(compute_dtype)            # (E, E)
    w_ffn = jnp.concatenate([params["lin1_w"].T, params["lin2_w"].T],
                            axis=1).astype(compute_dtype)         # (E, 2F)

    b_slab = jnp.stack([
        ipb[0 * E:1 * E] * scale,   # 0: bq * scale
        ipb[1 * E:2 * E],           # 1: bk
        ipb[2 * E:3 * E],           # 2: bv
        params["out_proj_b"],       # 3: bo
        params["lin1_b"],           # 4: b1
        params["lin2_b"],           # 5: b2
        params["norm1_g"],          # 6: g1
        params["norm1_b"],          # 7: be1
        params["norm2_g"],          # 8: g2
        params["norm2_b"],          # 9: be2
    ], axis=0).astype(jnp.float32)                                # (10, E)

    # Constant-index weight blocks: single-buffer (no re-DMA across grid steps,
    # half the VMEM footprint -> headroom on v7x's 64 MiB per-TC VMEM).
    def const_spec(shape):
        return pl.BlockSpec(shape, lambda b: (0,) * len(shape),
                            pipeline_mode=pl.Buffered(buffer_count=1))

    # Explicit scoped-VMEM budget: single-buffered weights + double-buffered
    # activation blocks + f32 intermediates, ~25% headroom, capped for v7x.
    act_bytes = jnp.dtype(patch_embed.dtype).itemsize
    w_bytes = ((w_in.size + w_o.size + w_ffn.size)
               * jnp.dtype(compute_dtype).itemsize + b_slab.size * 4)
    io_bytes = 2 * act_bytes * B_TILE * ((Lq + Lk) * E + Lq * F_)
    inter_bytes = 4 * B_TILE * ((3 * Lq + 2 * Lk) * E
                                + 2 * nhead * Lq * Lk + Lq * (E + F_))
    vmem_limit = int(1.25 * (w_bytes + io_bytes + inter_bytes))
    vmem_limit = max(32 * 1024 * 1024, min(vmem_limit, 64 * 1024 * 1024))

    return pl.pallas_call(
        functools.partial(_hfc_kernel, nhead, compute_dtype),
        out_shape=jax.ShapeDtypeStruct((Lq, N, F_), patch_embed.dtype),
        grid_spec=pltpu.PrefetchScalarGridSpec(
            num_scalar_prefetch=0,
            grid=grid,
            in_specs=[
                pl.BlockSpec((Lq, B_TILE, E), lambda b: (0, b, 0)),
                pl.BlockSpec((Lk, B_TILE, E), lambda b: (0, b, 0)),
                const_spec(w_in.shape),
                const_spec(w_o.shape),
                const_spec(w_ffn.shape),
                const_spec(b_slab.shape),
            ],
            out_specs=pl.BlockSpec((Lq, B_TILE, F_), lambda b: (0, b, 0)),
        ),
        compiler_params=pltpu.CompilerParams(
            dimension_semantics=("parallel",),
            vmem_limit_bytes=vmem_limit),
    )(patch_embed, hfc_embed, w_in, w_o, w_ffn, b_slab)


# ---------------- pure-JAX reference (mirrors torch semantics) ----------------
def reference(hfc_embed, patch_embed, params, *, nhead):
    E = patch_embed.shape[-1]
    hd = E // nhead
    ipw, ipb = params["in_proj_w"], params["in_proj_b"]
    wq, wk, wv = ipw[:E], ipw[E:2 * E], ipw[2 * E:]
    bq, bk, bv = ipb[:E], ipb[E:2 * E], ipb[2 * E:]

    def per_batch(q, kv):  # q: (Lq, E), kv: (Lk, E)
        qp = q @ wq.T + bq
        kp = kv @ wk.T + bk
        vp = kv @ wv.T + bv
        Lq, Lk = q.shape[0], kv.shape[0]
        qh = qp.reshape(Lq, nhead, hd).transpose(1, 0, 2) / (hd ** 0.5)
        kh = kp.reshape(Lk, nhead, hd).transpose(1, 0, 2)
        vh = vp.reshape(Lk, nhead, hd).transpose(1, 0, 2)
        s = jnp.einsum("hqd,hkd->hqk", qh, kh)
        p = jax.nn.softmax(s, axis=-1)
        ctx = jnp.einsum("hqk,hkd->hqd", p, vh).transpose(1, 0, 2).reshape(Lq, E)
        attn = ctx @ params["out_proj_w"].T + params["out_proj_b"]

        def ln(x, g, b):
            mu = x.mean(-1, keepdims=True)
            var = ((x - mu) ** 2).mean(-1, keepdims=True)
            return (x - mu) / jnp.sqrt(var + EPS) * g + b

        x = ln(q + attn, params["norm1_g"], params["norm1_b"])
        h = jnp.maximum(x @ params["lin1_w"].T + params["lin1_b"], 0.0)
        y = h @ params["lin2_w"].T + params["lin2_b"] + x
        return ln(y, params["norm2_g"], params["norm2_b"])

    # vmap over batch (dim 1 in seq-first layout)
    return jax.vmap(per_batch, in_axes=(1, 1), out_axes=1)(patch_embed, hfc_embed)


def init_params(key, d_model, dim_ff):
    ks = jax.random.split(key, 8)
    s = 0.05
    return {
        "in_proj_w": jax.random.normal(ks[0], (3 * d_model, d_model), jnp.float32) * s,
        "in_proj_b": jax.random.normal(ks[1], (3 * d_model,), jnp.float32) * s,
        "out_proj_w": jax.random.normal(ks[2], (d_model, d_model), jnp.float32) * s,
        "out_proj_b": jax.random.normal(ks[3], (d_model,), jnp.float32) * s,
        "lin1_w": jax.random.normal(ks[4], (dim_ff, d_model), jnp.float32) * s,
        "lin1_b": jax.random.normal(ks[5], (dim_ff,), jnp.float32) * s,
        "lin2_w": jax.random.normal(ks[6], (dim_ff, dim_ff), jnp.float32) * s,
        "lin2_b": jax.random.normal(ks[7], (dim_ff,), jnp.float32) * s,
        "norm1_g": jnp.ones((d_model,), jnp.float32),
        "norm1_b": jnp.zeros((d_model,), jnp.float32),
        "norm2_g": jnp.ones((dim_ff,), jnp.float32),
        "norm2_b": jnp.zeros((dim_ff,), jnp.float32),
    }


if __name__ == "__main__":
    # small shapes: seq=16, batch=2, proj_dim=dim_feedforward=32, nhead=4
    L, N, E = 16, 2, 32
    NHEAD = 4
    key = jax.random.PRNGKey(0)
    k1, k2, k3 = jax.random.split(key, 3)

    hfc_embed = jax.random.normal(k1, (L, N, E), jnp.float32)     # (seq, batch, embed)
    patch_embed = jax.random.normal(k2, (L, N, E), jnp.float32)
    params = init_params(k3, d_model=E, dim_ff=E)

    ref = reference(hfc_embed, patch_embed, params, nhead=NHEAD)

    # default f32 matmul operands: must match the torch-equivalent reference
    out = cross_attention_hfc_patch(hfc_embed, patch_embed, params, nhead=NHEAD)
    out = jax.block_until_ready(out)
    assert out.shape == (L, N, E), out.shape
    assert jnp.allclose(out, ref, atol=1e-3, rtol=1e-3), float(jnp.abs(out - ref).max())

    # bf16 MXU-operand path (recommended on v6e/v7x); loose smoke-test tolerance
    out_bf16 = cross_attention_hfc_patch(hfc_embed, patch_embed, params,
                                         nhead=NHEAD, compute_dtype=jnp.bfloat16)
    out_bf16 = jax.block_until_ready(out_bf16)
    assert jnp.allclose(out_bf16, ref, atol=1e-1, rtol=1e-1), \
        float(jnp.abs(out_bf16 - ref).max())

    print("KERNEL_OK")
</pallas_src>

<mosaic_0001>
module attributes {stable_mosaic.version = 11 : i64} {
  func.func @_hfc_kernel(%arg0: i32, %arg1: memref<16x2x32xf32, #tpu.memory_space<vmem>>, %arg2: memref<16x2x32xf32, #tpu.memory_space<vmem>>, %arg3: memref<32x96xf32, #tpu.memory_space<vmem>>, %arg4: memref<32x32xf32, #tpu.memory_space<vmem>>, %arg5: memref<32x64xf32, #tpu.memory_space<vmem>>, %arg6: memref<10x32xf32, #tpu.memory_space<vmem>>, %arg7: memref<16x2x32xf32, #tpu.memory_space<vmem>>) attributes {dimension_semantics = [#tpu.dimension_semantics<parallel>], iteration_bounds = array<i64: 1>, scalar_prefetch = 0 : i64, scratch_operands = 0 : i64, tpu.core_type = #tpu.core_type<tc>, window_params = [{transform_indices = @transform_0, window_bounds = array<i64: 16, 2, 32>}, {transform_indices = @transform_1, window_bounds = array<i64: 16, 2, 32>}, {pipeline_mode = #tpu.pipeline_mode<synchronous>, transform_indices = @transform_2, window_bounds = array<i64: 32, 96>}, {pipeline_mode = #tpu.pipeline_mode<synchronous>, transform_indices = @transform_3, window_bounds = array<i64: 32, 32>}, {pipeline_mode = #tpu.pipeline_mode<synchronous>, transform_indices = @transform_4, window_bounds = array<i64: 32, 64>}, {pipeline_mode = #tpu.pipeline_mode<synchronous>, transform_indices = @transform_5, window_bounds = array<i64: 10, 32>}, {transform_indices = @transform_6, window_bounds = array<i64: 16, 2, 32>}]} {
    %c0 = arith.constant 0 : index
    %c0_0 = arith.constant 0 : index
    %0 = vector.load %arg6[%c0, %c0_0] : memref<10x32xf32, #tpu.memory_space<vmem>>, vector<10x32xf32>
    %c0_1 = arith.constant 0 : index
    %c0_2 = arith.constant 0 : index
    %1 = vector.load %arg3[%c0_1, %c0_2] : memref<32x96xf32, #tpu.memory_space<vmem>>, vector<32x96xf32>
    %c0_3 = arith.constant 0 : index
    %c0_4 = arith.constant 0 : index
    %c0_5 = arith.constant 0 : index
    %2 = vector.load %arg1[%c0_3, %c0_4, %c0_5] : memref<16x2x32xf32, #tpu.memory_space<vmem>>, vector<16x2x32xf32>
    %3 = vector.shape_cast %2 : vector<16x2x32xf32> to vector<32x32xf32>
    %c0_6 = arith.constant 0 : index
    %c0_7 = arith.constant 0 : index
    %c0_8 = arith.constant 0 : index
    %4 = vector.load %arg2[%c0_6, %c0_7, %c0_8] : memref<16x2x32xf32, #tpu.memory_space<vmem>>, vector<16x2x32xf32>
    %5 = vector.shape_cast %4 : vector<16x2x32xf32> to vector<32x32xf32>
    %6 = vector.extract_strided_slice %1 {offsets = [0, 0], sizes = [32, 32], strides = [1, 1]} : vector<32x96xf32> to vector<32x32xf32>
    %cst = arith.constant dense<0.000000e+00> : vector<32x32xf32>
    %7 = tpu.matmul %3, %6, %cst {dimension_numbers = #tpu.dot_dimension_numbers<[1], [0], [0], [1], [0, 0, 1, 1], [], []>} : vector<32x32xf32>, vector<32x32xf32>, vector<32x32xf32> -> vector<32x32xf32>
    %8 = vector.extract_strided_slice %0 {offsets = [0, 0], sizes = [1, 32], strides = [1, 1]} : vector<10x32xf32> to vector<1x32xf32>
    %9 = vector.broadcast %8 : vector<1x32xf32> to vector<32x32xf32>
    %10 = arith.addf %7, %9 : vector<32x32xf32>
    %11 = vector.extract_strided_slice %1 {offsets = [0, 32], sizes = [32, 32], strides = [1, 1]} : vector<32x96xf32> to vector<32x32xf32>
    %cst_9 = arith.constant dense<0.000000e+00> : vector<32x32xf32>
    %12 = tpu.matmul %5, %11, %cst_9 {dimension_numbers = #tpu.dot_dimension_numbers<[1], [0], [0], [1], [0, 0, 1, 1], [], []>} : vector<32x32xf32>, vector<32x32xf32>, vector<32x32xf32> -> vector<32x32xf32>
    %13 = vector.extract_strided_slice %0 {offsets = [1, 0], sizes = [1, 32], strides = [1, 1]} : vector<10x32xf32> to vector<1x32xf32>
    %14 = vector.broadcast %13 : vector<1x32xf32> to vector<32x32xf32>
    %15 = arith.addf %12, %14 : vector<32x32xf32>
    %16 = vector.extract_strided_slice %1 {offsets = [0, 64], sizes = [32, 32], strides = [1, 1]} : vector<32x96xf32> to vector<32x32xf32>
    %cst_10 = arith.constant dense<0.000000e+00> : vector<32x32xf32>
    %17 = tpu.matmul %5, %16, %cst_10 {dimension_numbers = #tpu.dot_dimension_numbers<[1], [0], [0], [1], [0, 0, 1, 1], [], []>} : vector<32x32xf32>, vector<32x32xf32>, vector<32x32xf32> -> vector<32x32xf32>
    %18 = vector.extract_strided_slice %0 {offsets = [2, 0], sizes = [1, 32], strides = [1, 1]} : vector<10x32xf32> to vector<1x32xf32>
    %19 = vector.broadcast %18 : vector<1x32xf32> to vector<32x32xf32>
    %20 = arith.addf %17, %19 : vector<32x32xf32>
    %21 = vector.shape_cast %10 : vector<32x32xf32> to vector<16x2x4x8xf32>
    %22 = tpu.transpose %21, [1, 2, 0, 3] : vector<16x2x4x8xf32> -> vector<2x4x16x8xf32>
    %23 = vector.shape_cast %22 : vector<2x4x16x8xf32> to vector<8x16x8xf32>
    %24 = vector.shape_cast %15 : vector<32x32xf32> to vector<16x2x4x8xf32>
    %25 = tpu.transpose %24, [1, 2, 0, 3] : vector<16x2x4x8xf32> -> vector<2x4x16x8xf32>
    %26 = vector.shape_cast %25 : vector<2x4x16x8xf32> to vector<8x16x8xf32>
    %27 = vector.shape_cast %20 : vector<32x32xf32> to vector<16x2x4x8xf32>
    %28 = tpu.transpose %27, [1, 2, 0, 3] : vector<16x2x4x8xf32> -> vector<2x4x16x8xf32>
    %29 = vector.shape_cast %28 : vector<2x4x16x8xf32> to vector<8x16x8xf32>
    "tpu.trace_start"() <{level = 10 : i32, message = "bqd,bkd->bqk"}> : () -> ()
    %cst_11 = arith.constant dense<0.000000e+00> : vector<8x16x16xf32>
    %30 = tpu.matmul %23, %26, %cst_11 {dimension_numbers = #tpu.dot_dimension_numbers<[2], [2], [1], [1], [0, 0, 0, 1, 1, 1], [0], [0]>} : vector<8x16x8xf32>, vector<8x16x8xf32>, vector<8x16x16xf32> -> vector<8x16x16xf32>
    "tpu.trace_stop"() : () -> ()
    %cst_12 = arith.constant dense<0xFF800000> : vector<8x16xf32>
    %31 = vector.multi_reduction <maximumf>, %30, %cst_12 [2] : vector<8x16x16xf32> to vector<8x16xf32>
    %32 = vector.shape_cast %31 : vector<8x16xf32> to vector<8x16x1xf32>
    %33 = vector.broadcast %32 : vector<8x16x1xf32> to vector<8x16x16xf32>
    %34 = arith.subf %30, %33 : vector<8x16x16xf32>
    %35 = math.exp %34 : vector<8x16x16xf32>
    %cst_13 = arith.constant dense<0.000000e+00> : vector<8x16xf32>
    %36 = vector.multi_reduction <add>, %35, %cst_13 [2] : vector<8x16x16xf32> to vector<8x16xf32>
    %37 = vector.shape_cast %36 : vector<8x16xf32> to vector<8x16x1xf32>
    %38 = tpu.reciprocal %37 {approx = true} : vector<8x16x1xf32> -> vector<8x16x1xf32>
    %39 = vector.broadcast %38 : vector<8x16x1xf32> to vector<8x16x16xf32>
    %40 = arith.mulf %35, %39 : vector<8x16x16xf32>
    "tpu.trace_start"() <{level = 10 : i32, message = "bqk,bkd->bqd"}> : () -> ()
    %cst_14 = arith.constant dense<0.000000e+00> : vector<8x16x8xf32>
    %41 = tpu.matmul %40, %29, %cst_14 {dimension_numbers = #tpu.dot_dimension_numbers<[2], [1], [1], [2], [0, 0, 0, 1, 1, 2], [0], [0]>} : vector<8x16x16xf32>, vector<8x16x8xf32>, vector<8x16x8xf32> -> vector<8x16x8xf32>
    "tpu.trace_stop"() : () -> ()
    %42 = vector.shape_cast %41 : vector<8x16x8xf32> to vector<2x4x16x8xf32>
    %43 = tpu.transpose %42, [2, 0, 1, 3] : vector<2x4x16x8xf32> -> vector<16x2x4x8xf32>
    %44 = vector.shape_cast %43 : vector<16x2x4x8xf32> to vector<32x32xf32>
    %c0_15 = arith.constant 0 : index
    %c0_16 = arith.constant 0 : index
    %45 = vector.load %arg4[%c0_15, %c0_16] : memref<32x32xf32, #tpu.memory_space<vmem>>, vector<32x32xf32>
    %cst_17 = arith.constant dense<0.000000e+00> : vector<32x32xf32>
    %46 = tpu.matmul %44, %45, %cst_17 {dimension_numbers = #tpu.dot_dimension_numbers<[1], [0], [0], [1], [0, 0, 1, 1], [], []>} : vector<32x32xf32>, vector<32x32xf32>, vector<32x32xf32> -> vector<32x32xf32>
    %47 = vector.extract_strided_slice %0 {offsets = [3, 0], sizes = [1, 32], strides = [1, 1]} : vector<10x32xf32> to vector<1x32xf32>
    %48 = vector.broadcast %47 : vector<1x32xf32> to vector<32x32xf32>
    %49 = arith.addf %46, %48 : vector<32x32xf32>
    %50 = arith.addf %3, %49 : vector<32x32xf32>
    %cst_18 = arith.constant dense<0.000000e+00> : vector<32xf32>
    %51 = vector.multi_reduction <add>, %50, %cst_18 [1] : vector<32x32xf32> to vector<32xf32>
    %52 = vector.shape_cast %51 : vector<32xf32> to vector<32x1xf32>
    %cst_19 = arith.constant 3.200000e+01 : f32
    %53 = vector.broadcast %cst_19 : f32 to vector<32x1xf32>
    %54 = arith.divf %52, %53 : vector<32x1xf32>
    %55 = vector.broadcast %54 : vector<32x1xf32> to vector<32x32xf32>
    %56 = arith.subf %50, %55 : vector<32x32xf32>
    %57 = arith.mulf %56, %56 : vector<32x32xf32>
    %cst_20 = arith.constant dense<0.000000e+00> : vector<32xf32>
    %58 = vector.multi_reduction <add>, %57, %cst_20 [1] : vector<32x32xf32> to vector<32xf32>
    %59 = vector.shape_cast %58 : vector<32xf32> to vector<32x1xf32>
    %cst_21 = arith.constant 3.200000e+01 : f32
    %60 = vector.broadcast %cst_21 : f32 to vector<32x1xf32>
    %61 = arith.divf %59, %60 : vector<32x1xf32>
    %cst_22 = arith.constant 9.99999974E-6 : f32
    %62 = vector.broadcast %cst_22 : f32 to vector<32x1xf32>
    %63 = arith.addf %61, %62 : vector<32x1xf32>
    %64 = math.rsqrt %63 : vector<32x1xf32>
    %65 = vector.broadcast %64 : vector<32x1xf32> to vector<32x32xf32>
    %66 = arith.mulf %56, %65 : vector<32x32xf32>
    %67 = vector.extract_strided_slice %0 {offsets = [6, 0], sizes = [1, 32], strides = [1, 1]} : vector<10x32xf32> to vector<1x32xf32>
    %68 = vector.broadcast %67 : vector<1x32xf32> to vector<32x32xf32>
    %69 = arith.mulf %66, %68 : vector<32x32xf32>
    %70 = vector.extract_strided_slice %0 {offsets = [7, 0], sizes = [1, 32], strides = [1, 1]} : vector<10x32xf32> to vector<1x32xf32>
    %71 = vector.broadcast %70 : vector<1x32xf32> to vector<32x32xf32>
    %72 = arith.addf %69, %71 : vector<32x32xf32>
    %c0_23 = arith.constant 0 : index
    %c0_24 = arith.constant 0 : index
    %73 = vector.load %arg5[%c0_23, %c0_24] : memref<32x64xf32, #tpu.memory_space<vmem>>, vector<32x64xf32>
    %74 = vector.extract_strided_slice %73 {offsets = [0, 0], sizes = [32, 32], strides = [1, 1]} : vector<32x64xf32> to vector<32x32xf32>
    %cst_25 = arith.constant dense<0.000000e+00> : vector<32x32xf32>
    %75 = tpu.matmul %72, %74, %cst_25 {dimension_numbers = #tpu.dot_dimension_numbers<[1], [0], [0], [1], [0, 0, 1, 1], [], []>} : vector<32x32xf32>, vector<32x32xf32>, vector<32x32xf32> -> vector<32x32xf32>
    %76 = vector.extract_strided_slice %0 {offsets = [4, 0], sizes = [1, 32], strides = [1, 1]} : vector<10x32xf32> to vector<1x32xf32>
    %77 = vector.broadcast %76 : vector<1x32xf32> to vector<32x32xf32>
    %78 = arith.addf %75, %77 : vector<32x32xf32>
    %cst_26 = arith.constant 0.000000e+00 : f32
    %79 = vector.broadcast %cst_26 : f32 to vector<32x32xf32>
    %80 = arith.maximumf %78, %79 : vector<32x32xf32>
    %81 = vector.extract_strided_slice %73 {offsets = [0, 32], sizes = [32, 32], strides = [1, 1]} : vector<32x64xf32> to vector<32x32xf32>
    %cst_27 = arith.constant dense<0.000000e+00> : vector<32x32xf32>
    %82 = tpu.matmul %80, %81, %cst_27 {dimension_numbers = #tpu.dot_dimension_numbers<[1], [0], [0], [1], [0, 0, 1, 1], [], []>} : vector<32x32xf32>, vector<32x32xf32>, vector<32x32xf32> -> vector<32x32xf32>
    %83 = vector.extract_strided_slice %0 {offsets = [5, 0], sizes = [1, 32], strides = [1, 1]} : vector<10x32xf32> to vector<1x32xf32>
    %84 = vector.broadcast %83 : vector<1x32xf32> to vector<32x32xf32>
    %85 = arith.addf %82, %84 : vector<32x32xf32>
    %86 = arith.addf %85, %72 : vector<32x32xf32>
    %cst_28 = arith.constant dense<0.000000e+00> : vector<32xf32>
    %87 = vector.multi_reduction <add>, %86, %cst_28 [1] : vector<32x32xf32> to vector<32xf32>
    %88 = vector.shape_cast %87 : vector<32xf32> to vector<32x1xf32>
    %cst_29 = arith.constant 3.200000e+01 : f32
    %89 = vector.broadcast %cst_29 : f32 to vector<32x1xf32>
    %90 = arith.divf %88, %89 : vector<32x1xf32>
    %91 = vector.broadcast %90 : vector<32x1xf32> to vector<32x32xf32>
    %92 = arith.subf %86, %91 : vector<32x32xf32>
    %93 = arith.mulf %92, %92 : vector<32x32xf32>
    %cst_30 = arith.constant dense<0.000000e+00> : vector<32xf32>
    %94 = vector.multi_reduction <add>, %93, %cst_30 [1] : vector<32x32xf32> to vector<32xf32>
    %95 = vector.shape_cast %94 : vector<32xf32> to vector<32x1xf32>
    %cst_31 = arith.constant 3.200000e+01 : f32
    %96 = vector.broadcast %cst_31 : f32 to vector<32x1xf32>
    %97 = arith.divf %95, %96 : vector<32x1xf32>
    %cst_32 = arith.constant 9.99999974E-6 : f32
    %98 = vector.broadcast %cst_32 : f32 to vector<32x1xf32>
    %99 = arith.addf %97, %98 : vector<32x1xf32>
    %100 = math.rsqrt %99 : vector<32x1xf32>
    %101 = vector.broadcast %100 : vector<32x1xf32> to vector<32x32xf32>
    %102 = arith.mulf %92, %101 : vector<32x32xf32>
    %103 = vector.extract_strided_slice %0 {offsets = [8, 0], sizes = [1, 32], strides = [1, 1]} : vector<10x32xf32> to vector<1x32xf32>
    %104 = vector.broadcast %103 : vector<1x32xf32> to vector<32x32xf32>
    %105 = arith.mulf %102, %104 : vector<32x32xf32>
    %106 = vector.extract_strided_slice %0 {offsets = [9, 0], sizes = [1, 32], strides = [1, 1]} : vector<10x32xf32> to vector<1x32xf32>
    %107 = vector.broadcast %106 : vector<1x32xf32> to vector<32x32xf32>
    %108 = arith.addf %105, %107 : vector<32x32xf32>
    %109 = vector.shape_cast %108 : vector<32x32xf32> to vector<16x2x32xf32>
    %c0_33 = arith.constant 0 : index
    %c0_34 = arith.constant 0 : index
    %c0_35 = arith.constant 0 : index
    %110 = vector.load %arg7[%c0_33, %c0_34, %c0_35] : memref<16x2x32xf32, #tpu.memory_space<vmem>>, vector<16x2x32xf32>
    tpu.vector_store %arg7[%c0_33, %c0_34, %c0_35], %109 {strides = array<i32>} : memref<16x2x32xf32, #tpu.memory_space<vmem>>, vector<16x2x32xf32>,
    return
  }
  func.func @transform_0(%arg0: i32) -> (i32, i32, i32) {
    %c0_i32 = arith.constant 0 : i32
    %c0_i32_0 = arith.constant 0 : i32
    %c0_i32_1 = arith.constant 0 : i32
    return %c0_i32, %arg0, %c0_i32_0 : i32, i32, i32
  }
  func.func @transform_1(%arg0: i32) -> (i32, i32, i32) {
    %c0_i32 = arith.constant 0 : i32
    %c0_i32_0 = arith.constant 0 : i32
    %c0_i32_1 = arith.constant 0 : i32
    return %c0_i32, %arg0, %c0_i32_0 : i32, i32, i32
  }
  func.func @transform_2(%arg0: i32) -> (i32, i32) {
    %c0_i32 = arith.constant 0 : i32
    %c0_i32_0 = arith.constant 0 : i32
    %c0_i32_1 = arith.constant 0 : i32
    return %c0_i32, %c0_i32_0 : i32, i32
  }
  func.func @transform_3(%arg0: i32) -> (i32, i32) {
    %c0_i32 = arith.constant 0 : i32
    %c0_i32_0 = arith.constant 0 : i32
    %c0_i32_1 = arith.constant 0 : i32
    return %c0_i32, %c0_i32_0 : i32, i32
  }
  func.func @transform_4(%arg0: i32) -> (i32, i32) {
    %c0_i32 = arith.constant 0 : i32
    %c0_i32_0 = arith.constant 0 : i32
    %c0_i32_1 = arith.constant 0 : i32
    return %c0_i32, %c0_i32_0 : i32, i32
  }
  func.func @transform_5(%arg0: i32) -> (i32, i32) {
    %c0_i32 = arith.constant 0 : i32
    %c0_i32_0 = arith.constant 0 : i32
    %c0_i32_1 = arith.constant 0 : i32
    return %c0_i32, %c0_i32_0 : i32, i32
  }
  func.func @transform_6(%arg0: i32) -> (i32, i32, i32) {
    %c0_i32 = arith.constant 0 : i32
    %c0_i32_0 = arith.constant 0 : i32
    %c0_i32_1 = arith.constant 0 : i32
    return %c0_i32, %arg0, %c0_i32_0 : i32, i32, i32
  }
}

</mosaic_0001>

<bundles_post_ra>
// kernel: tpu_custom_call.1
= control target key start
LH: loop header
LB: loop body
LE: loop exit
PB: predicated region body
PF: predicated region fallthrough
CT: control target
= control target key end

     0   :  { %11 = vsyncpa [#allocation3], 0  ;;  %s6287_s0 = inlined_call_operand.hbm [shape: f32[16,2,32], index: 0, kind: input, shape index: {}]   ;;  %s6288_s1 = inlined_call_operand.hbm [shape: f32[16,2,32], index: 1, kind: input, shape index: {}]   ;;  %s6289_s2 = inlined_call_operand.hbm [shape: f32[32,96], index: 2, kind: input, shape index: {}]   ;;  %s6290_s3 = inlined_call_operand.hbm [shape: f32[32,32], index: 3, kind: input, shape index: {}]   ;;  %s6291_s4 = inlined_call_operand.hbm [shape: f32[32,64], index: 4, kind: input, shape index: {}]   ;;  %s6292_s5 = inlined_call_operand.hbm [shape: f32[10,32], index: 5, kind: input, shape index: {}]   ;;  %s6293_s6 = inlined_call_operand.hbm [shape: f32[16,2,32], index: 6, kind: output, shape index: {}]  }
   0x1   :  { %12 = vsyncpa [#allocation6], 0 }
   0x2   :  { %13 = vsyncpa [#allocation9], 0 }
   0x3   :  { %14 = vsyncpa [#allocation12], 0 }
   0x4   :  { %15 = vsyncpa [#allocation4], 0  ;;  %s33_s23 = sshll.u32 %s6288_s1, 4  ;;  %s4353_s24 = smov [#allocation5]   ;;  %s34_s23 = int_to_ptr.hbm [resolvable:$true] %s33_s23 }
   0x5   :  { %s35_s25 = sshll.u32 %s4353_s24, 4  ;;  %s4354_s26 = smov 32   ;;  %s36_s25 = int_to_ptr.vmem [resolvable:$true] %s35_s25 }
   0x6   :  { %s4355_s27 = smov 2   ;;  %s59_s30 = sshll.u32 %s6290_s3, 4  ;;  %s60_s30 = int_to_ptr.hbm [resolvable:$true] %s59_s30 }
   0x7   :  { %41 = dma.hbm_to_vmem [thread:$0]  %s34_s23, 512, %s36_s25, [#allocation6], %s4354_s26, %s4354_s26, %s4355_s27  }
   0x8   :  { %s4356_s7 = smov [#allocation8]   ;;  %s20_s1 = sshll.u32 %s6287_s0, 4  ;;  %s21_s1 = int_to_ptr.hbm [resolvable:$true] %s20_s1 }
   0x9   :  { %s61_s8 = sshll.u32 %s4356_s7, 4  ;;  %s4357_s11 = smov 128   ;;  %s62_s8 = int_to_ptr.vmem [resolvable:$true] %s61_s8 }
   0xa   :  { %s4358_s12 = smov 8   ;;  %s46_s15 = sshll.u32 %s6289_s2, 4  ;;  %s47_s15 = int_to_ptr.hbm [resolvable:$true] %s46_s15 }
   0xb   :  { %67 = dma.hbm_to_vmem [thread:$0]  %s60_s30, 512, %s62_s8, [#allocation9], %s4357_s11, %s4357_s11, %s4358_s12  }
   0xc   :  { %s4359_s16 = smov [#allocation2]   ;;  %s4360_s3 = smov [#allocation7]  }
   0xd   :  { %s22_s17 = sshll.u32 %s4359_s16, 4  ;;  %s48_s0 = sshll.u32 %s4360_s3, 4  ;;  %s23_s17 = int_to_ptr.vmem [resolvable:$true] %s22_s17  ;;  %s49_s0 = int_to_ptr.vmem [resolvable:$true] %s48_s0 }
   0xe   :  { %28 = dma.hbm_to_vmem [thread:$0]  %s21_s1, 512, %s23_s17, [#allocation3], %s4354_s26, %s4354_s26, %s4355_s27  }
   0xf   :  { %s72_s20 = sshll.u32 %s6291_s4, 4  ;;  %s85_s22 = sshll.u32 %s6292_s5, 4  ;;  %s73_s20 = int_to_ptr.hbm [resolvable:$true] %s72_s20  ;;  %s86_s22 = int_to_ptr.hbm [resolvable:$true] %s85_s22 }
  0x10   :  { %54 = dma.hbm_to_vmem [thread:$0]  %s47_s15, 512, %s49_s0, [#allocation6], %s4357_s11, %s4357_s11, %s4358_s12  }
  0x11   :  { %s4361_s23 = smov [#allocation10]   ;;  %s4362_s25 = smov [#allocation11]  }
  0x12   :  { %s74_s24 = sshll.u32 %s4361_s23, 4  ;;  %s87_s28 = sshll.u32 %s4362_s25, 4  ;;  %s75_s24 = int_to_ptr.vmem [resolvable:$true] %s74_s24  ;;  %s88_s28 = int_to_ptr.vmem [resolvable:$true] %s87_s28 }
  0x13   :  { %80 = dma.hbm_to_vmem [thread:$0]  %s73_s20, 512, %s75_s24, [#allocation9], %s4357_s11, %s4357_s11, %s4358_s12  }
  0x14   :  { %93 = dma.hbm_to_vmem [thread:$0]  %s86_s22, 256, %s88_s28, [#allocation12], %s4357_s11, %s4357_s11, %s4358_s12  }
  0x15   :  { %4343 = dma.done.wait [#allocation3], 512  }
  0x16   :  { %4344 = vsyncadd [#allocation3], 4294966784 }
  0x17   :  { %4345 = dma.done.wait [#allocation6], 1024  }
  0x18   :  { %4346 = vsyncadd [#allocation6], 4294966272 }
  0x19   :  { %4347 = dma.done.wait [#allocation9], 1024  }
  0x1a   :  { %4348 = vsyncadd [#allocation9], 4294966272 }
  0x1b   :  { %4349 = dma.done.wait [#allocation12], 256  }
  0x1c   :  { %4350 = vsyncadd [#allocation12], 4294967040  ;;  %v123_v0 = vld [vmem:[#allocation7 + $0x18] sm:$0xff]  ;;  %v122_v1 = vld [vmem:[#allocation7 + $0x10] sm:$0xff]  ;;  %s4363_s4 = smov 96   ;;  %vm200_vm0 = vcmask 261120  }
  0x1d   :  { %221 = vmatpush.msra.mxu0 %v123_v0  ;;  %v4441_v2 = vpack.i.bf16 %v122_v1, %v123_v0  ;;  %v121_v3 = vld [vmem:[#allocation7 + $0x8] sm:$0xff]  ;;  %v4443_v4 = vld [vmem:[#allocation2] sm:$0x3]  ;;  %v4445_v5 = vld [vmem:[#allocation2 + $0x2] sm:$0x3]  ;;  %4002 = vmatpush.msra.mxu1 %v123_v0  ;;  %s4364_s5 = smov 120  }
  0x1e   :  { %v4447_v6 = vld [vmem:[#allocation2 + $0x4] sm:$0x3]  ;;  %v4449_v7 = vld [vmem:[#allocation2 + $0x6] sm:$0x3]  ;;  %173 = vst [vmem:[#allocation1] ss:$4 sm:$0xff] %v4443_v4 }
  0x1f   :  { %4032 = vrot.lane.b32.xlu0 %v4441_v2, %s4363_s4  ;;  %222 = vmatpush.msra.mxu0 %v122_v1  ;;  %175 = vst [vmem:[#allocation1 + $0x1] ss:$4 sm:$0xff] %v4445_v5  ;;  %v4455_v8 = vld [vmem:[#allocation2 + $0x8] sm:$0x3]  ;;  %v120_v9 = vld [vmem:[#allocation7] sm:$0xff]  ;;  %s4365_s29 = smov 112  }
  0x20   :  { %177 = vst [vmem:[#allocation1 + $0x2] ss:$4 sm:$0xff] %v4447_v6  ;;  %v4458_v10 = vld [vmem:[#allocation2 + $0xa] sm:$0x3]  ;;  %4003 = vmatpush.msra.mxu1 %v122_v1  ;;  %v4461_v11 = vld [vmem:[#allocation2 + $0xc] sm:$0x3]  ;;  %v4466_v13 = vpack.i.bf16 %v120_v9, %v121_v3 }
  0x21   :  { %6305 = vst [vmem:[#allocation19_spill] sm:$0xff] %v4458_v10  ;;  %223 = vmatpush.msra.mxu0 %v121_v3  ;;  %v4463_v12 = vld [vmem:[#allocation2 + $0xe] sm:$0x3]  ;;  %v4471_v14 = vld [vmem:[#allocation2 + $0x10] sm:$0x3]  ;;  %v118_v52 = vld [vmem:[#allocation11] sm:$0xff] }
  0x22   :  { %179 = vst [vmem:[#allocation1 + $0x3] ss:$4 sm:$0xff] %v4449_v7  ;;  %4004 = vmatpush.msra.mxu1 %v121_v3  ;;  %v4475_v15 = vld [vmem:[#allocation2 + $0x12] sm:$0x3]  ;;  %v4477_v17 = vld [vmem:[#allocation2 + $0x14] sm:$0x3] }
  0x23   :  { %6306 = vst [vmem:[#allocation20_spill] sm:$0xff] %v4461_v11  ;;  %224 = vmatpush.msra.mxu0 %v120_v9  ;;  %v4480_v18 = vld [vmem:[#allocation2 + $0x16] sm:$0x3]  ;;  %v4488_v21 = vld [vmem:[#allocation2 + $0x18] sm:$0x3]  ;;  %v156_v53 = vperm.slane %v118_v52, 0 }
  0x24   :  { %6307 = vst [vmem:[#allocation21_spill] sm:$0xff] %v4463_v12  ;;  %4005 = vmatpush.msra.mxu1 %v120_v9  ;;  %v4490_v22 = vld [vmem:[#allocation2 + $0x1a] sm:$0x3]  ;;  %v4492_v23 = vld [vmem:[#allocation2 + $0x1c] sm:$0x3]  ;;  %s4366_s30 = smov 104  }
  0x25   :  { %181 = vst [vmem:[#allocation1 + $0x20] ss:$4 sm:$0xff] %v4455_v8  ;;  %v4494_v24 = vld [vmem:[#allocation2 + $0x1e] sm:$0x3]  ;;  %v140_v25 = vld [vmem:[#allocation5] sm:$0x3] }
  0x26   :  { %183 = vst [vmem:[#allocation1 + $0x21] ss:$4 sm:$0xff] %v4458_v10  ;;  %v141_v26 = vld [vmem:[#allocation5 + $0x2] sm:$0x3]  ;;  %v142_v27 = vld [vmem:[#allocation5 + $0x4] sm:$0x3] }
  0x27   :  { %185 = vst [vmem:[#allocation1 + $0x22] ss:$4 sm:$0xff] %v4461_v11  ;;  %4037 = vrot.lane.b32.xlu0 %v4466_v13, %s4363_s4  ;;  %v143_v28 = vld [vmem:[#allocation5 + $0x6] sm:$0x3]  ;;  %v144_v30 = vld [vmem:[#allocation5 + $0x8] sm:$0x3] }
  0x28   :  { %187 = vst [vmem:[#allocation1 + $0x23] ss:$4 sm:$0xff] %v4463_v12  ;;  %v145_v31 = vld [vmem:[#allocation5 + $0xa] sm:$0x3]  ;;  %v146_v32 = vld [vmem:[#allocation5 + $0xc] sm:$0x3] }
  0x29   :  { %6308 = vst [vmem:[#allocation22_spill] sm:$0xff] %v4471_v14  ;;  %v188_v16 = vld.sshfl [vmem:[#allocation1] sm:$0xff pattern:$0x73625140]  ;;  %v147_v33 = vld [vmem:[#allocation5 + $0xe] sm:$0x3] }
  0x2a   :  { %6309 = vst [vmem:[#allocation23_spill] sm:$0xff] %v4475_v15  ;;  %3930 = vmatmul.msk.f32.vlgmr.msra.gmra.mxu0 %vm200_vm0, %v188_v16  ;;  %v4501_v35 = vld [vmem:[#allocation5 + $0x10] sm:$0x3]  ;;  %v4503_v36 = vld [vmem:[#allocation5 + $0x12] sm:$0x3]  ;;  %v238_v60 = vperm.slane %v118_v52, 1 }
  0x2b   :  { %6310 = vst [vmem:[#allocation24_spill] sm:$0xff] %v4477_v17  ;;  %v4505_v37 = vld [vmem:[#allocation5 + $0x14] sm:$0x3]  ;;  %v4507_v38 = vld [vmem:[#allocation5 + $0x16] sm:$0x3]  ;;  %s4367_s7 = smov 64  }
  0x2c   :  { %6311 = vst [vmem:[#allocation25_spill] sm:$0xff] %v4480_v18  ;;  %v4513_v41 = vld [vmem:[#allocation5 + $0x18] sm:$0x3]  ;;  %v4515_v42 = vld [vmem:[#allocation5 + $0x1a] sm:$0x3]  ;;  %vm453_vm1 = vcmask 1047556  }
  0x2d   :  { %190 = vst [vmem:[#allocation1] ss:$4 sm:$0xff] %v4471_v14  ;;  %v4517_v43 = vld [vmem:[#allocation5 + $0x1c] sm:$0x3]  ;;  %v4519_v45 = vld [vmem:[#allocation5 + $0x1e] sm:$0x3] }
  0x2e   :  { %191 = vst [vmem:[#allocation1 + $0x1] ss:$4 sm:$0xff] %v4475_v15  ;;  %vm1853_vm2 = vcmask 64512   ;;  %vm2134_vm3 = vcmask 130048   ;;  %s4370_s8 = smov 24   ;;  %s4371_s9 = smov 16  }
  0x2f   :  { %192 = vst [vmem:[#allocation1 + $0x2] ss:$4 sm:$0xff] %v4477_v17  ;;  %v189_v19 = vld.sshfl [vmem:[#allocation1 + $0x20] sm:$0xff pattern:$0x73625140]  ;;  %vm3047_vm4 = vcmask 195584  }
  0x30   :  { %193 = vst [vmem:[#allocation1 + $0x3] ss:$4 sm:$0xff] %v4480_v18  ;;  %s4377_s10 = smov [#allocation13]   ;;  %s3914_s13 = sshll.u32 %s6293_s6, 4  ;;  %s3915_s13 = int_to_ptr.hbm [resolvable:$true] %s3914_s13 }
  0x31   :  { %6312 = vst [vmem:[#allocation26_spill] sm:$0xff] %v4488_v21  ;;  %s3912_s1 = sshll.u32 %s4377_s10, 4  ;;  %s3913_s1 = int_to_ptr.vmem [resolvable:$true] %s3912_s1 }
  0x32   :  { %3931 = vmatmul.msk.f32.gmra.mxu0 %vm200_vm0, %v189_v19  ;;  %6313 = vst [vmem:[#allocation27_spill] sm:$0xff] %v4490_v22 }
  0x33   :  { %6314 = vst [vmem:[#allocation28_spill] sm:$0xff] %v4492_v23 }
  0x34   :  { %6315 = vst [vmem:[#allocation29_spill] sm:$0xff] %v4494_v24 }
  0x35   :  { %194 = vst [vmem:[#allocation1 + $0x20] ss:$4 sm:$0xff] %v4488_v21 }
  0x36   :  { %195 = vst [vmem:[#allocation1 + $0x21] ss:$4 sm:$0xff] %v4490_v22 }
  0x37   :  { %v198_v20 = vld.sshfl [vmem:[#allocation1] sm:$0xff pattern:$0x73625140]  ;;  %196 = vst [vmem:[#allocation1 + $0x22] ss:$4 sm:$0xff] %v4492_v23 }
  0x38   :  { %3932 = vmatmul.msk.f32.vlgmr.msra.gmra.mxu1 %vm200_vm0, %v198_v20  ;;  %197 = vst [vmem:[#allocation1 + $0x23] ss:$4 sm:$0xff] %v4494_v24 }
  0x39   :  { %255 = vst [vmem:[#allocation1] ss:$4 sm:$0xff] %v140_v25 }
  0x3a   :  { %257 = vst [vmem:[#allocation1 + $0x1] ss:$4 sm:$0xff] %v141_v26 }
  0x3b   :  { %259 = vst [vmem:[#allocation1 + $0x2] ss:$4 sm:$0xff] %v142_v27 }
  0x3c   :  { %261 = vst [vmem:[#allocation1 + $0x3] ss:$4 sm:$0xff] %v143_v28 }
  0x3f   :  { %v199_v29 = vld.sshfl [vmem:[#allocation1 + $0x20] sm:$0xff pattern:$0x73625140] }
  0x40   :  { %3933 = vmatmul.msk.f32.gmra.mxu1 %vm200_vm0, %v199_v29  ;;  %263 = vst [vmem:[#allocation1 + $0x20] ss:$4 sm:$0xff] %v144_v30  ;;  %v4368_v29 = vmov 1983009808  }
  0x41   :  { %265 = vst [vmem:[#allocation1 + $0x21] ss:$4 sm:$0xff] %v145_v31 }
  0x42   :  { %267 = vst [vmem:[#allocation1 + $0x22] ss:$4 sm:$0xff] %v146_v32 }
  0x43   :  { %269 = vst [vmem:[#allocation1 + $0x23] ss:$4 sm:$0xff] %v147_v33  ;;  %v270_v34 = vld.sshfl [vmem:[#allocation1] sm:$0xff pattern:$0x73625140] }
  0x44   :  { %272 = vst [vmem:[#allocation1] ss:$4 sm:$0xff] %v4501_v35 }
  0x45   :  { %273 = vst [vmem:[#allocation1 + $0x1] ss:$4 sm:$0xff] %v4503_v36 }
  0x46   :  { %274 = vst [vmem:[#allocation1 + $0x2] ss:$4 sm:$0xff] %v4505_v37 }
  0x47   :  { %275 = vst [vmem:[#allocation1 + $0x3] ss:$4 sm:$0xff] %v4507_v38 }
  0x4a   :  { %v271_v39 = vld.sshfl [vmem:[#allocation1 + $0x20] sm:$0xff pattern:$0x73625140] }
  0x4b   :  { %276 = vst [vmem:[#allocation1 + $0x20] ss:$4 sm:$0xff] %v4513_v41 }
  0x4c   :  { %277 = vst [vmem:[#allocation1 + $0x21] ss:$4 sm:$0xff] %v4515_v42 }
  0x4d   :  { %278 = vst [vmem:[#allocation1 + $0x22] ss:$4 sm:$0xff] %v4517_v43 }
  0x4e   :  { %v280_v47 = vld.sshfl [vmem:[#allocation1] sm:$0xff pattern:$0x73625140]  ;;  %279 = vst [vmem:[#allocation1 + $0x23] ss:$4 sm:$0xff] %v4519_v45 }
  0x4f   :  { %336 = vst [vmem:[#allocation1] ss:$4 sm:$0xff] %v140_v25 }
  0x50   :  { %338 = vst [vmem:[#allocation1 + $0x1] ss:$4 sm:$0xff] %v141_v26 }
  0x51   :  { %340 = vst [vmem:[#allocation1 + $0x2] ss:$4 sm:$0xff] %v142_v27 }
  0x52   :  { %342 = vst [vmem:[#allocation1 + $0x3] ss:$4 sm:$0xff] %v143_v28 }
  0x55   :  { %v281_v51 = vld.sshfl [vmem:[#allocation1 + $0x20] sm:$0xff pattern:$0x73625140] }
  0x56   :  { %344 = vst [vmem:[#allocation1 + $0x20] ss:$4 sm:$0xff] %v144_v30  ;;  %v458_v30 = vunpack.c.l.s4 %v4368_v29 }
  0x57   :  { %346 = vst [vmem:[#allocation1 + $0x21] ss:$4 sm:$0xff] %v145_v31 }
  0x58   :  { %348 = vst [vmem:[#allocation1 + $0x22] ss:$4 sm:$0xff] %v146_v32 }
  0x59   :  { %350 = vst [vmem:[#allocation1 + $0x23] ss:$4 sm:$0xff] %v147_v33  ;;  %v4599_v33 = vunpack.c.0.s8 %v458_v30 }
  0x91   :  { %v4033_v40 = vpop.permute.xlu0 %4032 }
  0x92   :  { %v4034_v44 = vunpack.i.l.bf16 %v4033_v40  ;;  %v4035_v46 = vunpack.i.h.bf16 %v4033_v40 }
  0x94   :  { %318 = vmatpush.msrb.mxu1 %v4034_v44 }
  0x96   :  { %319 = vmatpush.msrb.mxu1 %v4035_v46 }
  0x99   :  { %v4038_v48 = vpop.permute.xlu0 %4037 }
  0x9a   :  { %v4039_v49 = vunpack.i.l.bf16 %v4038_v48  ;;  %v4040_v50 = vunpack.i.h.bf16 %v4038_v48 }
  0x9c   :  { %320 = vmatpush.msrb.mxu1 %v4039_v49 }
  0x9e   :  { %321 = vmatpush.msrb.mxu1 %v4040_v50 }
  0x9f   :  { %3934 = vmatmul.msk.f32.vlgmr.msrb.gmra.mxu1 %vm200_vm0, %v270_v34 }
  0xa7   :  { %v226_v54 = vpop.f32.mrf.mxu0  ;;  %3935 = vmatmul.msk.f32.gmra.mxu1 %vm200_vm0, %v271_v39 }
  0xa8   :  { %v4526_v55 = vadd.f32 %v226_v54, %v156_v53 }
  0xaa   :  { %416 = vrot.lane.b32.xlu1 %v4526_v55, %s4364_s5  ;;  %428 = vrot.lane.b32.xlu2 %v4526_v55, %s4365_s29 }
  0xaf   :  { %v229_v56 = vpop.f32.mrf.mxu0  ;;  %3936 = vmatmul.msk.f32.gmra.mxu1 %vm200_vm0, %v280_v47  ;;  %v4369_v47 = vmov 1934713408  }
  0xb0   :  { %v4533_v57 = vadd.f32 %v229_v56, %v156_v53  ;;  %v482_v48 = vunpack.c.l.s4 %v4369_v47 }
  0xb2   :  { %442 = vrot.lane.b32.xlu0 %v4533_v57, %s4366_s30  ;;  %418 = vrot.lane.b32.xlu1 %v4533_v57, %s4364_s5  ;;  %v511_v31 = vrot.slane %v4533_v57, 4 }
  0xb3   :  { %430 = vrot.lane.b32.xlu2 %v4533_v57, %s4365_s29 }
  0xb5   :  { %v232_v58 = vpop.f32.mrf.mxu1 }
  0xb6   :  { %v4581_v20 = vadd.f32 %v232_v58, %v156_v53 }
  0xb7   :  { %3937 = vmatmul.msk.f32.gmra.mxu1 %vm200_vm0, %v281_v51 }
  0xbd   :  { %v235_v59 = vpop.f32.mrf.mxu1 }
  0xbe   :  { %v4573_v19 = vadd.f32 %v235_v59, %v156_v53  ;;  %v4607_v53 = vunpack.c.0.s8 %v482_v48 }
 0x104   :  { %v429_v26 = vpop.permute.xlu2 %428 }
 0x11c   :  { %v323_v61 = vpop.f32.mrf.mxu1  ;;  %v4593_v25 = vpop.permute.xlu1 %416 }
 0x11d   :  { %v4543_v62 = vadd.f32 %v323_v61, %v238_v60 }
 0x11f   :  { %921 = vrot.lane.b32.xlu0 %v4543_v62, %s4366_s30  ;;  %909 = vrot.lane.b32.xlu2 %v4543_v62, %s4365_s29 }
 0x120   :  { %897 = vrot.lane.b32.xlu1 %v4543_v62, %s4364_s5 }
 0x124   :  { %v326_v63 = vpop.f32.mrf.mxu1  ;;  %v419_v27 = vpop.permute.xlu1 %418 }
 0x125   :  { %v4551_v0 = vadd.f32 %v326_v63, %v238_v60  ;;  %v523_v28 = vrot.slane %v419_v27, 4  ;;  %v443_v32 = vpop.permute.xlu0 %442 }
 0x126   :  { %v521_v39 = vrot.slane %v443_v32, 4 }
 0x127   :  { %923 = vrot.lane.b32.xlu0 %v4551_v0, %s4366_s30  ;;  %911 = vrot.lane.b32.xlu2 %v4551_v0, %s4365_s29 }
 0x128   :  { %899 = vrot.lane.b32.xlu1 %v4551_v0, %s4364_s5  ;;  %v522_v49 = vsel %vm453_vm1, %v521_v39, %v419_v27 }
 0x129   :  { %v528_v54 = vperm.slane %v522_v49, %v4599_v33  ;;  %v455_v49 = vrot.slane %v4526_v55, 4 }
 0x12c   :  { %v329_v1 = vpop.f32.mrf.mxu1 }
 0x12d   :  { %v4559_v3 = vadd.f32 %v329_v1, %v238_v60 }
 0x12f   :  { %925 = vrot.lane.b32.xlu0 %v4559_v3, %s4366_s30  ;;  %901 = vrot.lane.b32.xlu2 %v4559_v3, %s4364_s5 }
 0x134   :  { %v332_v9 = vpop.f32.mrf.mxu1 }
 0x135   :  { %v4565_v16 = vadd.f32 %v332_v9, %v238_v60  ;;  %v533_v60 = vrot.slane %v528_v54, 4 }
 0x137   :  { %927 = vrot.lane.b32.xlu0 %v4565_v16, %s4366_s30  ;;  %913 = vrot.lane.b32.xlu2 %v4559_v3, %s4365_s29 }
 0x138   :  { %903 = vrot.lane.b32.xlu1 %v4565_v16, %s4364_s5 }
 0x13f   :  { %434 = vrot.lane.b32.xlu0 %v4573_v19, %s4365_s29  ;;  %422 = vrot.lane.b32.xlu2 %v4573_v19, %s4364_s5 }
 0x140   :  { %915 = vrot.lane.b32.xlu1 %v4565_v16, %s4365_s29 }
 0x147   :  { %446 = vrot.lane.b32.xlu0 %v4573_v19, %s4366_s30  ;;  %432 = vrot.lane.b32.xlu2 %v4581_v20, %s4365_s29 }
 0x148   :  { %440 = vrot.lane.b32.xlu1 %v4526_v55, %s4366_s30 }
 0x14f   :  { %4047 = vrot.lane.b32.xlu0 %v4466_v13, %s4367_s7  ;;  %4042 = vrot.lane.b32.xlu2 %v4441_v2, %s4367_s7  ;;  %v431_v13 = vpop.permute.xlu2 %430  ;;  %v524_v2 = vsel %vm453_vm1, %v443_v32, %v523_v28 }
 0x150   :  { %420 = vrot.lane.b32.xlu1 %v4581_v20, %s4364_s5  ;;  %v512_v34 = vsel %vm453_vm1, %v431_v13, %v511_v31  ;;  %v509_v40 = vrot.slane %v431_v13, 4  ;;  %v532_v44 = vperm.slane %v524_v2, %v4599_v33 }
 0x151   :  { %v520_v46 = vperm.slane %v512_v34, %v4599_v33 }
 0x152   :  { %v510_v50 = vsel %vm453_vm1, %v509_v40, %v4533_v57  ;;  %v545_v51 = vrot.slane %v532_v44, 4 }
 0x153   :  { %v547_v52 = vrot.slane %v520_v46, 4  ;;  %v516_v56 = vperm.slane %v510_v50, %v4599_v33 }
 0x154   :  { %v546_v59 = vsel %vm453_vm1, %v545_v51, %v520_v46 }
 0x155   :  { %v548_v58 = vsel %vm453_vm1, %v532_v44, %v547_v52  ;;  %v535_v63 = vrot.slane %v516_v56, 4  ;;  %v552_v1 = vperm.slane %v546_v59, %v4607_v53  ;;  %v534_v9 = vsel %vm453_vm1, %v533_v60, %v516_v56 }
 0x156   :  { %v556_v61 = vperm.slane %v548_v58, %v4607_v53  ;;  %v540_v31 = vperm.slane %v534_v9, %v4607_v53  ;;  %v452_v52 = vrot.slane %v429_v26, 4  ;;  %v456_v60 = vsel %vm453_vm1, %v429_v26, %v455_v49 }
 0x157   :  { %v536_v57 = vsel %vm453_vm1, %v528_v54, %v535_v63  ;;  %v561_v29 = vrot.slane %v552_v1, 4  ;;  %v935_v26 = vrot.slane %v4543_v62, 4 }
 0x158   :  { %444 = vrot.lane.b32.xlu1 %v4581_v20, %s4366_s30  ;;  %v563_v27 = vrot.slane %v556_v61, 4  ;;  %v544_v30 = vperm.slane %v536_v57, %v4607_v53  ;;  %v557_v34 = vrot.slane %v540_v31, 4  ;;  %v454_v63 = vsel %vm453_vm1, %v452_v52, %v4526_v55 }
 0x159   :  { %v562_v13 = vsel %vm453_vm1, 0.0, %v561_v29  ;;  %v687_v46 = vsel %vm453_vm1, %v561_v29, %v540_v31  ;;  %v4638_v29 = vperm.slane %v456_v60, %v4599_v33  ;;  %v4641_v31 = vperm.slane %v454_v63, %v4599_v33 }
 0x15a   :  { %v564_v32 = vsel %vm453_vm1, 0.0, %v563_v27  ;;  %v559_v2 = vrot.slane %v544_v30, 4  ;;  %v793_v40 = vrot.slane %v562_v13, 4  ;;  %v692_v47 = vsel %vm453_vm1, %v563_v27, %v544_v30 }
 0x15b   :  { %v799_v39 = vrot.slane %v564_v32, 4  ;;  %v558_v50 = vsel %vm453_vm1, 0.0, %v557_v34  ;;  %v691_v54 = vperm.slane %v687_v46, %v4599_v33  ;;  %v696_v56 = vperm.slane %v692_v47, %v4599_v33 }
 0x15c   :  { %v560_v48 = vsel %vm453_vm1, 0.0, %v559_v2  ;;  %v794_v58 = vsel %vm453_vm1, %v793_v40, %v558_v50  ;;  %v991_v47 = vrot.slane %v4551_v0, 4 }
 0x15d   :  { %v800_v51 = vsel %vm453_vm1, %v799_v39, %v560_v48  ;;  %v798_v61 = vperm.slane %v794_v58, %v4599_v33  ;;  %v711_v9 = vrot.slane %v691_v54, 4  ;;  %v709_v27 = vrot.slane %v696_v56, 4 }
 0x15e   :  { %v804_v59 = vperm.slane %v800_v51, %v4599_v33  ;;  %v1047_v58 = vrot.slane %v4559_v3, 4 }
 0x15f   :  { %v819_v32 = vrot.slane %v798_v61, 4  ;;  %v712_v55 = vsel %vm453_vm1, %v696_v56, %v711_v9  ;;  %v710_v2 = vsel %vm453_vm1, %v709_v27, %v691_v54 }
 0x160   :  { %v817_v30 = vrot.slane %v804_v59, 4  ;;  %v4659_v50 = vperm.slane %v710_v2, %v4607_v53 }
 0x161   :  { %v820_v51 = vsel %vm453_vm1, %v804_v59, %v819_v32 }
 0x162   :  { %v818_v48 = vsel %vm453_vm1, %v817_v30, %v798_v61 }
 0x163   :  { %v4668_v27 = vperm.slane %v818_v48, %v4607_v53 }
 0x179   :  { %v910_v28 = vpop.permute.xlu2 %909 }
 0x17a   :  { %v933_v1 = vrot.slane %v910_v28, 4  ;;  %v936_v46 = vsel %vm453_vm1, %v910_v28, %v935_v26  ;;  %v4672_v26 = vperm.slane %v820_v51, %v4607_v53 }
 0x17b   :  { %v944_v61 = vperm.slane %v936_v46, %v4599_v33 }
 0x17c   :  { %v934_v13 = vsel %vm453_vm1, %v933_v1, %v4543_v62  ;;  %v4656_v62 = vperm.slane %v712_v55, %v4607_v53 }
 0x17d   :  { %v940_v49 = vperm.slane %v934_v13, %v4599_v33  ;;  %v971_v52 = vrot.slane %v944_v61, 4 }
 0x17f   :  { %v959_v13 = vrot.slane %v940_v49, 4 }
 0x181   :  { %v912_v44 = vpop.permute.xlu2 %911 }
 0x182   :  { %v989_v56 = vrot.slane %v912_v44, 4  ;;  %v992_v63 = vsel %vm453_vm1, %v912_v44, %v991_v47 }
 0x183   :  { %v1000_v47 = vperm.slane %v992_v63, %v4599_v33 }
 0x184   :  { %v990_v44 = vsel %vm453_vm1, %v989_v56, %v4551_v0 }
 0x185   :  { %v996_v56 = vperm.slane %v990_v44, %v4599_v33 }
 0x189   :  { %v4635_v57 = vpop.permute.xlu2 %901 }
 0x191   :  { %v922_v28 = vpop.permute.xlu0 %921  ;;  %v914_v60 = vpop.permute.xlu2 %913 }
 0x192   :  { %v945_v1 = vrot.slane %v922_v28, 4  ;;  %v898_v9 = vpop.permute.xlu1 %897  ;;  %v1045_v30 = vrot.slane %v914_v60, 4  ;;  %v1048_v51 = vsel %vm453_vm1, %v914_v60, %v1047_v58  ;;  %v1027_v58 = vrot.slane %v1000_v47, 4 }
 0x193   :  { %v947_v59 = vrot.slane %v898_v9, 4  ;;  %v4693_v60 = vperm.slane %v1048_v51, %v4599_v33 }
 0x194   :  { %v946_v55 = vsel %vm453_vm1, %v945_v1, %v898_v9  ;;  %v1046_v9 = vsel %vm453_vm1, %v1045_v30, %v4559_v3 }
 0x195   :  { %v948_v48 = vsel %vm453_vm1, %v922_v28, %v947_v59  ;;  %v952_v40 = vperm.slane %v946_v55, %v4599_v33 }
 0x196   :  { %v956_v54 = vperm.slane %v948_v48, %v4599_v33 }
 0x197   :  { %v957_v46 = vrot.slane %v952_v40, 4  ;;  %v960_v2 = vsel %vm453_vm1, %v952_v40, %v959_v13  ;;  %v4700_v40 = vperm.slane %v1046_v9, %v4599_v33 }
 0x198   :  { %v968_v28 = vperm.slane %v960_v2, %v4607_v53  ;;  %v969_v63 = vrot.slane %v956_v54, 4  ;;  %v972_v59 = vsel %vm453_vm1, %v956_v54, %v971_v52 }
 0x199   :  { %v958_v55 = vsel %vm453_vm1, %v957_v46, %v940_v49  ;;  %v980_v3 = vperm.slane %v972_v59, %v4607_v53  ;;  %v924_v30 = vpop.permute.xlu0 %923  ;;  %v4697_v48 = vpop.permute.xlu2 %422  ;;  %v1015_v49 = vrot.slane %v996_v56, 4  ;;  %v1059_v46 = vrot.slane %v4635_v57, 4 }
 0x19a   :  { %v964_v13 = vperm.slane %v958_v55, %v4607_v53  ;;  %v970_v2 = vsel %vm453_vm1, %v969_v63, %v944_v61  ;;  %v1001_v44 = vrot.slane %v924_v30, 4  ;;  %v900_v52 = vpop.permute.xlu1 %899  ;;  %v983_v51 = vrot.slane %v968_v28, 4 }
 0x19b   :  { %v976_v54 = vperm.slane %v970_v2, %v4607_v53  ;;  %v987_v1 = vrot.slane %v980_v3, 4  ;;  %v1003_v0 = vrot.slane %v900_v52, 4  ;;  %v1071_v63 = vrot.slane %v4700_v40, 4 }
 0x19c   :  { %v981_v59 = vrot.slane %v964_v13, 4  ;;  %v1002_v32 = vsel %vm453_vm1, %v1001_v44, %v900_v52  ;;  %v1083_v2 = vrot.slane %v4693_v60, 4  ;;  %v984_v24 = vsel %vm453_vm1, 0.0, %v983_v51 }
 0x19d   :  { %v985_v39 = vrot.slane %v976_v54, 4  ;;  %v988_v9 = vsel %vm453_vm1, 0.0, %v987_v1  ;;  %v1162_v55 = vsel %vm453_vm1, %v987_v1, %v968_v28  ;;  %v1004_v61 = vsel %vm453_vm1, %v924_v30, %v1003_v0 }
 0x19e   :  { %v1008_v34 = vperm.slane %v1002_v32, %v4599_v33  ;;  %v1012_v52 = vperm.slane %v1004_v61, %v4599_v33  ;;  %v982_v1 = vsel %vm453_vm1, 0.0, %v981_v59  ;;  %v4720_v0 = vperm.slane %v1162_v55, %v4599_v33 }
 0x19f   :  { %v986_v23 = vsel %vm453_vm1, 0.0, %v985_v39  ;;  %v1157_v44 = vsel %vm453_vm1, %v985_v39, %v964_v13  ;;  %v1267_v28 = vrot.slane %v988_v9, 4 }
 0x1a0   :  { %v1013_v30 = vrot.slane %v1008_v34, 4  ;;  %v4723_v54 = vperm.slane %v1157_v44, %v4599_v33  ;;  %v1016_v32 = vsel %vm453_vm1, %v1008_v34, %v1015_v49  ;;  %v1025_v3 = vrot.slane %v1012_v52, 4 }
 0x1a1   :  { %v1028_v51 = vsel %vm453_vm1, %v1012_v52, %v1027_v58  ;;  %v926_v22 = vpop.permute.xlu0 %925  ;;  %v1261_v21 = vrot.slane %v986_v23, 4  ;;  %v1024_v13 = vperm.slane %v1016_v32, %v4607_v53  ;;  %v433_v55 = vpop.permute.xlu2 %432 }
 0x1a2   :  { %v1014_v39 = vsel %vm453_vm1, %v1013_v30, %v996_v56  ;;  %v1036_v59 = vperm.slane %v1028_v51, %v4607_v53  ;;  %v1026_v61 = vsel %vm453_vm1, %v1025_v3, %v1000_v47  ;;  %v1057_v44 = vrot.slane %v926_v22, 4 }
 0x1a3   :  { %v1020_v9 = vperm.slane %v1014_v39, %v4607_v53  ;;  %v1060_v18 = vsel %vm453_vm1, %v926_v22, %v1059_v46  ;;  %v1032_v34 = vperm.slane %v1026_v61, %v4607_v53  ;;  %v1039_v49 = vrot.slane %v1024_v13, 4 }
 0x1a4   :  { %v1043_v58 = vrot.slane %v1036_v59, 4  ;;  %v1068_v23 = vperm.slane %v1060_v18, %v4599_v33  ;;  %v4736_v56 = vsel %vm453_vm1, %v1267_v28, %v984_v24  ;;  %v1058_v30 = vsel %vm453_vm1, %v1057_v44, %v4635_v57 }
 0x1a5   :  { %v1037_v52 = vrot.slane %v1020_v9, 4  ;;  %v565_v32 = vrot.slane %v433_v55, 4  ;;  %v4741_v51 = vsel %vm453_vm1, %v1261_v21, %v982_v1  ;;  %v1041_v47 = vrot.slane %v1032_v34, 4 }
 0x1a6   :  { %v4744_v22 = vsel %vm453_vm1, 0.0, %v1043_v58  ;;  %v6316_v46 = vrot.slane %v4581_v20, 4  ;;  %v4750_v18 = vsel %vm453_vm1, 0.0, %v1039_v49  ;;  %v4753_v24 = vsel %vm453_vm1, %v1043_v58, %v1024_v13 }
 0x1a7   :  { %v1064_v57 = vperm.slane %v1058_v30, %v4599_v33  ;;  %v1081_v28 = vrot.slane %v1068_v23, 4  ;;  %v4757_v21 = vsel %vm453_vm1, 0.0, %v1037_v52  ;;  %v1084_v39 = vsel %vm453_vm1, %v1068_v23, %v1083_v2 }
 0x1a8   :  { %v568_v3 = vsel %vm453_vm1, %v433_v55, %v6316_v46  ;;  %v566_v59 = vsel %vm453_vm1, %v565_v32, %v4581_v20  ;;  %v4764_v55 = vsel %vm453_vm1, 0.0, %v1041_v47  ;;  %v1092_v52 = vperm.slane %v1084_v39, %v4607_v53 }
 0x1a9   :  { %v1069_v61 = vrot.slane %v1064_v57, 4  ;;  %v1072_v13 = vsel %vm453_vm1, %v1064_v57, %v1071_v63  ;;  %v1082_v44 = vsel %vm453_vm1, %v1081_v28, %v4693_v60  ;;  %v928_v34 = vpop.permute.xlu0 %927  ;;  %v4773_v2 = vperm.slane %v566_v59, %v4599_v33 }
 0x1aa   :  { %v1080_v49 = vperm.slane %v1072_v13, %v4607_v53  ;;  %v1088_v58 = vperm.slane %v1082_v44, %v4607_v53  ;;  %v904_v20 = vpop.permute.xlu1 %903  ;;  %v4778_v30 = vperm.slane %v568_v3, %v4599_v33  ;;  %v1113_v63 = vrot.slane %v928_v34, 4 }
 0x1ab   :  { %v1070_v23 = vsel %vm453_vm1, %v1069_v61, %v4700_v40  ;;  %v1115_v32 = vrot.slane %v904_v20, 4  ;;  %v1099_v28 = vrot.slane %v1092_v52, 4  ;;  %v4782_v13 = vsel %vm453_vm1, %v1041_v47, %v1020_v9 }
 0x1ac   :  { %v1076_v60 = vperm.slane %v1070_v23, %v4607_v53  ;;  %v1095_v46 = vrot.slane %v1080_v49, 4  ;;  %v1097_v57 = vrot.slane %v1088_v58, 4  ;;  %v1114_v59 = vsel %vm453_vm1, %v1113_v63, %v904_v20  ;;  %v4043_v23 = vpop.permute.xlu2 %4042 }
 0x1ad   :  { %v1116_v44 = vsel %vm453_vm1, %v928_v34, %v1115_v32  ;;  %v1100_v1 = vsel %vm453_vm1, 0.0, %v1099_v28  ;;  %v1214_v52 = vsel %vm453_vm1, %v1099_v28, %v1080_v49  ;;  %v1120_v28 = vperm.slane %v1114_v59, %v4599_v33 }
 0x1ae   :  { %v1093_v40 = vrot.slane %v1076_v60, 4  ;;  %v1096_v3 = vsel %vm453_vm1, 0.0, %v1095_v46  ;;  %v1098_v61 = vsel %vm453_vm1, 0.0, %v1097_v57  ;;  %v1209_v58 = vsel %vm453_vm1, %v1097_v57, %v1076_v60  ;;  %v4799_v57 = vld.sshfl [vmem:[#allocation1] sm:$0xff pattern:$0x73625140] }
 0x1af   :  { %v1317_v9 = vrot.slane %v1098_v61, 4  ;;  %v1323_v47 = vrot.slane %v1100_v1, 4  ;;  %v1213_v20 = vperm.slane %v1209_v58, %v4599_v33  ;;  %v1218_v32 = vperm.slane %v1214_v52, %v4599_v33  ;;  %353 = vst [vmem:[#allocation1] ss:$4 sm:$0xff] %v4501_v35 }
 0x1b0   :  { %v1094_v39 = vsel %vm453_vm1, 0.0, %v1093_v40  ;;  %v1124_v17 = vperm.slane %v1116_v44, %v4599_v33  ;;  %v4044_v60 = vunpack.i.l.bf16 %v4043_v23  ;;  %354 = vst [vmem:[#allocation1 + $0x1] ss:$4 sm:$0xff] %v4503_v36  ;;  %v1125_v36 = vrot.slane %v1120_v28, 4 }
 0x1b1   :  { %v1318_v46 = vsel %vm453_vm1, %v1317_v9, %v1094_v39  ;;  %v435_v15 = vpop.permute.xlu0 %434  ;;  %v1324_v49 = vsel %vm453_vm1, %v1323_v47, %v1096_v3  ;;  %v6317_v39 = vrot.slane %v4573_v19, 4  ;;  %v6318_v9 = vrot.slane %v4565_v16, 4  ;;  %355 = vst [vmem:[#allocation1 + $0x2] ss:$4 sm:$0xff] %v4505_v37 }
 0x1b2   :  { %v4802_v1 = vperm.slane %v1318_v46, %v4599_v33  ;;  %v621_v40 = vrot.slane %v435_v15, 4  ;;  %v916_v61 = vpop.permute.xlu1 %915  ;;  %v1137_v58 = vrot.slane %v1124_v17, 4  ;;  %395 = vmatpush.msra.mxu2 %v4044_v60  ;;  %v4045_v47 = vunpack.i.h.bf16 %v4043_v23  ;;  %356 = vst [vmem:[#allocation1 + $0x3] ss:$4 sm:$0xff] %v4507_v38 }
 0x1b3   :  { %v624_v44 = vsel %vm453_vm1, %v435_v15, %v6317_v39  ;;  %v1101_v52 = vrot.slane %v916_v61, 4  ;;  %v1104_v63 = vsel %vm453_vm1, %v916_v61, %v6318_v9  ;;  %v4820_v15 = vperm.slane %v1324_v49, %v4599_v33 }
 0x1b4   :  { %v622_v59 = vsel %vm453_vm1, %v621_v40, %v4573_v19  ;;  %v632_v3 = vperm.slane %v624_v44, %v4599_v33  ;;  %v1112_v35 = vperm.slane %v1104_v63, %v4599_v33  ;;  %v1231_v61 = vrot.slane %v1213_v20, 4  ;;  %396 = vmatpush.msra.mxu2 %v4045_v47 }
 0x1b5   :  { %v628_v46 = vperm.slane %v622_v59, %v4599_v33  ;;  %v1102_v60 = vsel %vm453_vm1, %v1101_v52, %v4565_v16  ;;  %v1229_v39 = vrot.slane %v1218_v32, 4 }
 0x1b6   :  { %v1108_v19 = vperm.slane %v1102_v60, %v4599_v33  ;;  %v1138_v40 = vsel %vm453_vm1, %v1137_v58, %v1112_v35  ;;  %v1139_v63 = vrot.slane %v1112_v35, 4  ;;  %v659_v23 = vrot.slane %v632_v3, 4 }
 0x1b7   :  { %v1144_v37 = vperm.slane %v1138_v40, %v4607_v53  ;;  %v1232_v49 = vsel %vm453_vm1, %v1218_v32, %v1231_v61  ;;  %v647_v44 = vrot.slane %v628_v46, 4  ;;  %v6319_v32 = vrot.slane %v4697_v48, 4 }
 0x1b8   :  { %v1126_v9 = vsel %vm453_vm1, %v1125_v36, %v1108_v19  ;;  %v1127_v16 = vrot.slane %v1108_v19, 4  ;;  %v1140_v52 = vsel %vm453_vm1, %v1124_v17, %v1139_v63  ;;  %v4835_v35 = vperm.slane %v1232_v49, %v4607_v53 }
 0x1b9   :  { %v1132_v38 = vperm.slane %v1126_v9, %v4607_v53  ;;  %v1148_v59 = vperm.slane %v1140_v52, %v4607_v53  ;;  %v1153_v60 = vrot.slane %v1144_v37, 4  ;;  %v447_v58 = vpop.permute.xlu0 %446  ;;  %v4842_v19 = vsel %vm453_vm1, %v1229_v39, %v1213_v20 }
 0x1ba   :  { %v1128_v47 = vsel %vm453_vm1, %v1120_v28, %v1127_v16  ;;  %v633_v40 = vrot.slane %v447_v58, 4  ;;  %v636_v61 = vsel %vm453_vm1, %v447_v58, %v6319_v32  ;;  %v441_v36 = vpop.permute.xlu1 %440 }
 0x1bb   :  { %v1136_v17 = vperm.slane %v1128_v47, %v4607_v53  ;;  %v1149_v63 = vrot.slane %v1132_v38, 4  ;;  %v1154_v37 = vsel %vm453_vm1, 0.0, %v1153_v60  ;;  %v1155_v9 = vrot.slane %v1148_v59, 4 }
 0x1bc   :  { %v1219_v49 = vsel %vm453_vm1, %v1153_v60, %v1132_v38  ;;  %v1329_v52 = vrot.slane %v1154_v37, 4  ;;  %v634_v28 = vsel %vm453_vm1, %v633_v40, %v4697_v48  ;;  %v644_v16 = vperm.slane %v636_v61, %v4599_v33 }
 0x1bd   :  { %v1150_v58 = vsel %vm453_vm1, 0.0, %v1149_v63  ;;  %v1151_v32 = vrot.slane %v1136_v17, 4  ;;  %v4852_v20 = vsel %vm453_vm1, 0.0, %v1155_v9  ;;  %v4856_v47 = vperm.slane %v1219_v49, %v4599_v33 }
 0x1be   :  { %v1224_v59 = vsel %vm453_vm1, %v1155_v9, %v1136_v17  ;;  %v1330_v38 = vsel %vm453_vm1, %v1329_v52, %v1150_v58  ;;  %v640_v60 = vperm.slane %v634_v28, %v4599_v33  ;;  %v657_v61 = vrot.slane %v644_v16, 4 }
 0x1bf   :  { %v4862_v48 = vsel %vm453_vm1, 0.0, %v1151_v32  ;;  %v660_v63 = vsel %vm453_vm1, %v644_v16, %v659_v23  ;;  %v465_v39 = vrot.slane %v441_v36, 4  ;;  %v4869_v17 = vperm.slane %v1330_v38, %v4599_v33 }
 0x1c0   :  { %v645_v37 = vrot.slane %v640_v60, 4  ;;  %v648_v34 = vsel %vm453_vm1, %v640_v60, %v647_v44  ;;  %v668_v49 = vperm.slane %v660_v63, %v4607_v53  ;;  %v658_v52 = vsel %vm453_vm1, %v657_v61, %v632_v3 }
 0x1c1   :  { %v656_v9 = vperm.slane %v648_v34, %v4607_v53  ;;  %v6320_v28 = vrot.slane %v4593_v25, 4  ;;  %v664_v23 = vperm.slane %v658_v52, %v4607_v53  ;;  %v466_v44 = vsel %vm453_vm1, %v465_v39, %v4593_v25 }
 0x1c2   :  { %v646_v32 = vsel %vm453_vm1, %v645_v37, %v628_v46  ;;  %v675_v16 = vrot.slane %v668_v49, 4  ;;  %v4880_v60 = vpop.permute.xlu1 %420  ;;  %v472_v3 = vperm.slane %v466_v44, %v4599_v33  ;;  %v1228_v37 = vperm.slane %v1224_v59, %v4599_v33  ;;  %v4048_v59 = vpop.permute.xlu0 %4047 }
 0x1c3   :  { %v468_v58 = vsel %vm453_vm1, %v441_v36, %v6320_v28  ;;  %v4883_v38 = vperm.slane %v646_v32, %v4607_v53  ;;  %v671_v34 = vrot.slane %v656_v9, 4  ;;  %v4887_v63 = vrot.slane %v664_v23, 4 }
 0x1c4   :  { %v476_v61 = vperm.slane %v468_v58, %v4599_v33  ;;  %v4890_v46 = vsel %vm453_vm1, 0.0, %v675_v16  ;;  %v744_v36 = vsel %vm453_vm1, %v675_v16, %v656_v9  ;;  %v477_v58 = vrot.slane %v472_v3, 4 }
 0x1c5   :  { %v669_v25 = vrot.slane %v4883_v38, 4  ;;  %v4896_v39 = vsel %vm453_vm1, 0.0, %v671_v34  ;;  %v4899_v49 = vperm.slane %v744_v36, %v4599_v33  ;;  %v6321_v32 = vrot.slane %v4641_v31, 4 }
 0x1c6   :  { %v489_v23 = vrot.slane %v476_v61, 4  ;;  %v4911_v44 = vsel %vm453_vm1, 0.0, %v4887_v63  ;;  %v6322_v36 = vrot.slane %v4638_v29, 4  ;;  %v478_v52 = vsel %vm453_vm1, %v477_v58, %v4641_v31 }
 0x1c7   :  { %v480_v9 = vsel %vm453_vm1, %v472_v3, %v6321_v32  ;;  %v4907_v16 = vsel %vm453_vm1, 0.0, %v669_v25  ;;  %v1243_v25 = vrot.slane %v4856_v47, 4  ;;  %v484_v40 = vperm.slane %v478_v52, %v4607_v53 }
 0x1c8   :  { %v488_v34 = vperm.slane %v480_v9, %v4607_v53  ;;  %v492_v28 = vsel %vm453_vm1, %v476_v61, %v6322_v36  ;;  %v490_v3 = vsel %vm453_vm1, %v489_v23, %v4638_v29  ;;  %v4049_v9 = vunpack.i.l.bf16 %v4048_v59 }
 0x1c9   :  { %v500_v32 = vperm.slane %v492_v28, %v4607_v53  ;;  %v496_v14 = vperm.slane %v490_v3, %v4607_v53  ;;  %v1244_v10 = vsel %vm453_vm1, %v1228_v37, %v1243_v25  ;;  %v4050_v61 = vunpack.i.h.bf16 %v4048_v59 }
 0x1ca   :  { %v503_v12 = vrot.slane %v488_v34, 4  ;;  %v4928_v31 = vperm.slane %v4842_v19, %v4607_v53  ;;  %v501_v58 = vrot.slane %v484_v40, 4  ;;  %v1252_v23 = vperm.slane %v1244_v10, %v4607_v53  ;;  %397 = vmatpush.msra.mxu2 %v4049_v9  ;;  %v352_v10 = vld.sshfl [vmem:[#allocation1 + $0x20] sm:$0xff pattern:$0x73625140] }
 0x1cb   :  { %v507_v11 = vrot.slane %v500_v32, 4  ;;  %v505_v28 = vrot.slane %v496_v14, 4  ;;  %v1241_v3 = vrot.slane %v1228_v37, 4  ;;  %v4938_v59 = vperm.slane %v4782_v13, %v4599_v33  ;;  %357 = vst [vmem:[#allocation1 + $0x20] ss:$4 sm:$0xff] %v4513_v41 }
 0x1cc   :  { %v504_v29 = vsel %vm453_vm1, 0.0, %v503_v12  ;;  %v502_v19 = vsel %vm453_vm1, 0.0, %v501_v58  ;;  %398 = vmatpush.msra.mxu2 %v4050_v61  ;;  %v6323_v9 = vrot.slane %v4835_v35, 4  ;;  %v1257_v37 = vrot.slane %v1252_v23, 4  ;;  %358 = vst [vmem:[#allocation1 + $0x21] ss:$4 sm:$0xff] %v4515_v42 }
 0x1cd   :  { %v508_v52 = vsel %vm453_vm1, 0.0, %v507_v11  ;;  %v4934_v36 = vsel %vm453_vm1, %v507_v11, %v488_v34  ;;  %v506_v32 = vsel %vm453_vm1, 0.0, %v505_v28  ;;  %v4943_v12 = vsel %vm453_vm1, %v505_v28, %v484_v40  ;;  %3938 = vmatmul.msk.f32.vlgmr.msra.gmra.mxu2 %vm200_vm0, %v4799_v57  ;;  %v445_v57 = vpop.permute.xlu1 %444  ;;  %359 = vst [vmem:[#allocation1 + $0x22] ss:$4 sm:$0xff] %v4517_v43 }
 0x1ce   :  { %v787_v14 = vrot.slane %v508_v52, 4  ;;  %v781_v25 = vrot.slane %v506_v32, 4  ;;  %v1260_v11 = vsel %vm453_vm1, %v1252_v23, %v6323_v9  ;;  %v1242_v13 = vsel %vm453_vm1, %v1241_v3, %v4856_v47  ;;  %360 = vst [vmem:[#allocation1 + $0x23] ss:$4 sm:$0xff] %v4519_v45 }
 0x1cf   :  { %3954 = vmatpush.xpose.msk.msra.mxu1 %vm1853_vm2, %v1260_v11  ;;  %v4958_v34 = vperm.slane %v1242_v13, %v4607_v53  ;;  %v4962_v61 = vperm.slane %v4753_v24, %v4599_v33  ;;  %v1179_v58 = vrot.slane %v4723_v54, 4  ;;  %v1258_v41 = vsel %vm453_vm1, %v1257_v37, %v4835_v35 }
 0x1d0   :  { %v4954_v40 = vsel %vm453_vm1, %v787_v14, %v504_v29  ;;  %v4967_v47 = vsel %vm453_vm1, %v781_v25, %v502_v19  ;;  %v1191_v29 = vrot.slane %v4938_v59, 4  ;;  %v6324_v28 = vrot.slane %v4852_v20, 4  ;;  %3950 = vmatpush.xpose.msk.msrb.mxu0 %vm1853_vm2, %v1258_v41 }
 0x1d1   :  { %v1253_v24 = vrot.slane %v4958_v34, 4  ;;  %v1180_v42 = vsel %vm453_vm1, %v4720_v0, %v1179_v58  ;;  %v1343_v35 = vrot.slane %v4802_v1, 4  ;;  %v1355_v43 = vrot.slane %v4869_v17, 4 }
 0x1d2   :  { %v1336_v23 = vsel %vm453_vm1, %v6324_v28, %v4862_v48  ;;  %v1188_v3 = vperm.slane %v1180_v42, %v4607_v53  ;;  %v1192_v20 = vsel %vm453_vm1, %v4962_v61, %v1191_v29  ;;  %v577_v48 = vrot.slane %v445_v57, 4 }
 0x1d3   :  { %v1340_v52 = vperm.slane %v1336_v23, %v4599_v33  ;;  %v1254_v19 = vsel %vm453_vm1, %v1253_v24, %v4928_v31  ;;  %v1200_v32 = vperm.slane %v1192_v20, %v4607_v53  ;;  %v1344_v14 = vsel %vm453_vm1, %v4820_v15, %v1343_v35 }
 0x1d4   :  { %v6325_v25 = vrot.slane %v4880_v60, 4  ;;  %3942 = vmatpush.xpose.msk.msra.mxu3 %vm1853_vm2, %v1254_v19  ;;  %v1207_v9 = vrot.slane %v1188_v3, 4  ;;  %v1352_v11 = vperm.slane %v1344_v14, %v4607_v53  ;;  %v578_v13 = vsel %vm453_vm1, %v577_v48, %v4880_v60 }
 0x1d5   :  { %v1356_v37 = vsel %vm453_vm1, %v1340_v52, %v1355_v43  ;;  %v1205_v41 = vrot.slane %v1200_v32, 4  ;;  %v584_v29 = vperm.slane %v578_v13, %v4599_v33  ;;  %v1341_v24 = vrot.slane %v4820_v15, 4  ;;  %3939 = vmatmul.msk.f32.gmra.mxu2 %vm200_vm0, %v352_v10 }
 0x1d6   :  { %v580_v45 = vsel %vm453_vm1, %v445_v57, %v6325_v25  ;;  %v1364_v58 = vperm.slane %v1356_v37, %v4607_v53  ;;  %v1208_v23 = vsel %vm453_vm1, %v1200_v32, %v1207_v9  ;;  %v1371_v57 = vrot.slane %v1352_v11, 4 }
 0x1d7   :  { %v588_v28 = vperm.slane %v580_v45, %v4599_v33  ;;  %v1353_v42 = vrot.slane %v1340_v52, 4  ;;  %3955 = vmatpush.xpose.msk.msra.mxu1 %vm1853_vm2, %v1208_v23  ;;  %v1206_v35 = vsel %vm453_vm1, %v1205_v41, %v1188_v3  ;;  %v589_v60 = vrot.slane %v584_v29, 4 }
 0x1d8   :  { %v6326_v20 = vrot.slane %v4773_v2, 4  ;;  %v1372_v19 = vsel %vm453_vm1, %v1364_v58, %v1371_v57  ;;  %3951 = vmatpush.xpose.msk.msrb.mxu0 %vm1853_vm2, %v1206_v35  ;;  %v6327_v15 = vrot.slane %v4778_v30, 4  ;;  %v1342_v52 = vsel %vm453_vm1, %v1341_v24, %v4802_v1 }
 0x1d9   :  { %v601_v48 = vrot.slane %v588_v28, 4  ;;  %v590_v3 = vsel %vm453_vm1, %v589_v60, %v4773_v2  ;;  %v5029_v45 = vperm.slane %v1342_v52, %v4607_v53  ;;  %v849_v9 = vrot.slane %v4911_v44, 4 }
 0x1da   :  { %v592_v43 = vsel %vm453_vm1, %v584_v29, %v6326_v20  ;;  %v604_v10 = vsel %vm453_vm1, %v588_v28, %v6327_v15  ;;  %v5033_v37 = vperm.slane %v590_v3, %v4607_v53  ;;  %v1354_v13 = vsel %vm453_vm1, %v1353_v42, %v4869_v17  ;;  %v361_v28 = vld.sshfl [vmem:[#allocation1] sm:$0xff pattern:$0x73625140] }
 0x1db   :  { %v5015_v32 = vperm.slane %v592_v43, %v4607_v53  ;;  %3970 = vmatpush.xpose.msk.msrb.mxu1 %vm1853_vm2, %v1372_v19  ;;  %v602_v14 = vsel %vm453_vm1, %v601_v48, %v4778_v30  ;;  %v612_v25 = vperm.slane %v604_v10, %v4607_v53  ;;  %v5040_v30 = vperm.slane %v1354_v13, %v4607_v53 }
 0x1dc   :  { %v608_v1 = vperm.slane %v602_v14, %v4607_v53  ;;  %v1369_v29 = vrot.slane %v1364_v58, 4  ;;  %v1367_v57 = vrot.slane %v5029_v45, 4  ;;  %v1177_v24 = vrot.slane %v4720_v0, 4 }
 0x1dd   :  { %v615_v2 = vrot.slane %v5015_v32, 4  ;;  %v619_v41 = vrot.slane %v612_v25, 4  ;;  %v1189_v35 = vrot.slane %v4962_v61, 4  ;;  %v613_v60 = vrot.slane %v5033_v37, 4  ;;  %3940 = vmatmul.msk.f32.gmra.mxu2 %vm200_vm0, %v361_v28 }
 0x1de   :  { %v5042_v23 = vrot.slane %v608_v1, 4  ;;  %v1365_v42 = vrot.slane %v5040_v30, 4  ;;  %v1370_v20 = vsel %vm453_vm1, %v1369_v29, %v1352_v11  ;;  %v1178_v0 = vsel %vm453_vm1, %v1177_v24, %v4723_v54 }
 0x1df   :  { %v5049_v17 = vsel %vm453_vm1, 0.0, %v619_v41  ;;  %v5059_v43 = vsel %vm453_vm1, %v619_v41, %v5015_v32  ;;  %3966 = vmatpush.xpose.msk.msra.mxu0 %vm1853_vm2, %v1370_v20  ;;  %v1190_v61 = vsel %vm453_vm1, %v1189_v35, %v4938_v59  ;;  %v1184_v19 = vperm.slane %v1178_v0, %v4607_v53 }
 0x1e0   :  { %v5055_v58 = vsel %vm453_vm1, 0.0, %v5042_v23  ;;  %v843_v11 = vrot.slane %v5049_v17, 4  ;;  %v1366_v48 = vsel %vm453_vm1, %v1365_v42, %v5029_v45  ;;  %v1196_v15 = vperm.slane %v1190_v61, %v4607_v53 }
 0x1e1   :  { %3958 = vmatpush.xpose.msk.msrb.mxu2 %vm1853_vm2, %v1366_v48  ;;  %v1255_v10 = vrot.slane %v4928_v31, 4  ;;  %v1266_v54 = vperm.slane %v4741_v51, %v4599_v33  ;;  %v1272_v59 = vperm.slane %v4736_v56, %v4599_v33  ;;  %v6328_v52 = vrot.slane %v4764_v55, 4 }
 0x1e2   :  { %v1201_v14 = vrot.slane %v1196_v15, 4  ;;  %v6329_v1 = vrot.slane %v4744_v22, 4  ;;  %v681_v31 = vperm.slane %v4943_v12, %v4599_v33  ;;  %v362_v22 = vld.sshfl [vmem:[#allocation1 + $0x20] sm:$0xff pattern:$0x73625140]  ;;  %v1203_v42 = vrot.slane %v1184_v19, 4 }
 0x1e3   :  { %v1274_v3 = vsel %vm453_vm1, %v6328_v52, %v4757_v21  ;;  %v1256_v51 = vsel %vm453_vm1, %v4958_v34, %v1255_v10  ;;  %v1287_v41 = vrot.slane %v1266_v54, 4  ;;  %v686_v21 = vperm.slane %v4934_v36, %v4599_v33 }
 0x1e4   :  { %v1278_v25 = vperm.slane %v1274_v3, %v4599_v33  ;;  %v1280_v13 = vsel %vm453_vm1, %v6329_v1, %v4750_v18  ;;  %v1202_v55 = vsel %vm453_vm1, %v1201_v14, %v1184_v19  ;;  %v699_v28 = vrot.slane %v681_v31, 4 }
 0x1e5   :  { %v1284_v56 = vperm.slane %v1280_v13, %v4599_v33  ;;  %v1285_v24 = vrot.slane %v1272_v59, 4  ;;  %3943 = vmatpush.xpose.msk.msra.mxu3 %vm1853_vm2, %v1202_v55  ;;  %v1288_v18 = vsel %vm453_vm1, %v1272_v59, %v1287_v41  ;;  %v697_v12 = vrot.slane %v686_v21, 4  ;;  %3941 = vmatmul.msk.f32.gmra.mxu2 %vm200_vm0, %v362_v22 }
 0x1e6   :  { %v1299_v29 = vrot.slane %v1278_v25, 4  ;;  %v1296_v34 = vperm.slane %v1288_v18, %v4607_v53  ;;  %v700_v36 = vsel %vm453_vm1, %v686_v21, %v699_v28  ;;  %v1204_v14 = vsel %vm453_vm1, %v1196_v15, %v1203_v42 }
 0x1e7   :  { %v1297_v35 = vrot.slane %v1284_v56, 4  ;;  %v1286_v0 = vsel %vm453_vm1, %v1285_v24, %v1266_v54  ;;  %v708_v48 = vperm.slane %v700_v36, %v4607_v53  ;;  %v698_v10 = vsel %vm453_vm1, %v697_v12, %v681_v31 }
 0x1e8   :  { %v1300_v20 = vsel %vm453_vm1, %v1284_v56, %v1299_v29  ;;  %v1292_v59 = vperm.slane %v1286_v0, %v4607_v53  ;;  %v1315_v19 = vrot.slane %v1296_v34, 4  ;;  %v704_v52 = vperm.slane %v698_v10, %v4607_v53 }
 0x1e9   :  { %3946 = vmatpush.xpose.msk.msrb.mxu3 %vm1853_vm2, %v1256_v51  ;;  %v1308_v61 = vperm.slane %v1300_v20, %v4607_v53  ;;  %v1298_v3 = vsel %vm453_vm1, %v1297_v35, %v1278_v25  ;;  %v6330_v1 = vrot.slane %v4656_v62, 4  ;;  %v727_v13 = vrot.slane %v708_v48, 4 }
 0x1ea   :  { %v1304_v51 = vperm.slane %v1298_v3, %v4607_v53  ;;  %v837_v31 = vrot.slane %v5055_v58, 4  ;;  %v6331_v21 = vrot.slane %v4659_v50, 4  ;;  %v1368_v15 = vsel %vm453_vm1, %v5040_v30, %v1367_v57 }
 0x1eb   :  { %v726_v54 = vsel %vm453_vm1, %v6330_v1, %v708_v48  ;;  %v1313_v56 = vrot.slane %v1308_v61, 4  ;;  %v1316_v41 = vsel %vm453_vm1, %v1308_v61, %v1315_v19  ;;  %v728_v29 = vsel %vm453_vm1, %v4656_v62, %v727_v13 }
 0x1ec   :  { %3952 = vmatmul.msk.f32.vlgmr.msrb.gmra.mxu0 %vm1853_vm2, %v726_v54  ;;  %v722_v25 = vsel %vm453_vm1, %v6331_v21, %v704_v52  ;;  %3971 = vmatpush.xpose.msk.msrb.mxu1 %vm1853_vm2, %v1316_v41  ;;  %v1309_v58 = vrot.slane %v1304_v51, 4  ;;  %v729_v28 = vsel %vm453_vm1, %v5042_v23, %v5033_v37  ;;  %v1311_v45 = vrot.slane %v1292_v59, 4 }
 0x1ed   :  { %3947 = vmatpush.xpose.msk.msrb.mxu3 %vm1853_vm2, %v1204_v14  ;;  %v1314_v55 = vsel %vm453_vm1, %v1313_v56, %v1296_v34  ;;  %3956 = vmatmul.msk.f32.vlgmr.msra.gmra.mxu1 %vm1853_vm2, %v728_v29  ;;  %v733_v30 = vperm.slane %v729_v28, %v4599_v33  ;;  %v738_v57 = vperm.slane %v5059_v43, %v4599_v33  ;;  %v761_v24 = vrot.slane %v4899_v49, 4 }
 0x1ee   :  { %3944 = vmatmul.msk.f32.vlgmr.msra.gmra.mxu3 %vm1853_vm2, %v722_v25  ;;  %3967 = vmatpush.xpose.msk.msra.mxu0 %vm1853_vm2, %v1314_v55  ;;  %v1310_v22 = vsel %vm453_vm1, %v1309_v58, %v1292_v59  ;;  %v739_v62 = vsel %vm453_vm1, %v4887_v63, %v4883_v38  ;;  %v723_v23 = vrot.slane %v704_v52, 4  ;;  %v786_v18 = vperm.slane %v4967_v47, %v4599_v33 }
 0x1ef   :  { %3959 = vmatpush.xpose.msk.msrb.mxu2 %vm1853_vm2, %v1310_v22  ;;  %v743_v12 = vperm.slane %v739_v62, %v4599_v33  ;;  %v749_v35 = vrot.slane %v738_v57, 4  ;;  %v751_v43 = vrot.slane %v733_v30, 4  ;;  %v792_v42 = vperm.slane %v4954_v40, %v4599_v33 }
 0x1f0   :  { %v1312_v34 = vsel %vm453_vm1, %v1304_v51, %v1311_v45  ;;  %v724_v20 = vsel %vm453_vm1, %v4659_v50, %v723_v23  ;;  %v807_v36 = vrot.slane %v786_v18, 4  ;;  %v614_v38 = vsel %vm453_vm1, 0.0, %v613_v60 }
 0x1f1   :  { %3962 = vmatpush.xpose.msk.msra.mxu3 %vm1853_vm2, %v1368_v15  ;;  %v750_v63 = vsel %vm453_vm1, %v749_v35, %v733_v30  ;;  %v762_v47 = vsel %vm453_vm1, %v761_v24, %v743_v12  ;;  %v752_v0 = vsel %vm453_vm1, %v738_v57, %v751_v43  ;;  %v763_v61 = vrot.slane %v743_v12, 4 }
 0x1f2   :  { %v756_v40 = vperm.slane %v750_v63, %v4607_v53  ;;  %v768_v48 = vperm.slane %v762_v47, %v4607_v53  ;;  %v760_v50 = vperm.slane %v752_v0, %v4607_v53  ;;  %v808_v10 = vsel %vm453_vm1, %v792_v42, %v807_v36 }
 0x1f3   :  { %v764_v37 = vsel %vm453_vm1, %v4899_v49, %v763_v61  ;;  %v816_v60 = vperm.slane %v808_v10, %v4607_v53  ;;  %v805_v59 = vrot.slane %v792_v42, 4  ;;  %v838_v19 = vsel %vm453_vm1, %v837_v31, %v614_v38 }
 0x1f4   :  { %v773_v52 = vrot.slane %v768_v48, 4  ;;  %v772_v3 = vperm.slane %v764_v37, %v4607_v53  ;;  %v779_v14 = vrot.slane %v760_v50, 4  ;;  %v616_v1 = vsel %vm453_vm1, 0.0, %v615_v2 }
 0x1f5   :  { %3963 = vmatpush.xpose.msk.msra.mxu3 %vm1853_vm2, %v1312_v34  ;;  %v6332_v54 = vrot.slane %v4672_v26, 4  ;;  %v806_v51 = vsel %vm453_vm1, %v805_v59, %v786_v18  ;;  %v835_v49 = vrot.slane %v816_v60, 4  ;;  %v842_v56 = vperm.slane %v838_v19, %v4599_v33 }
 0x1f6   :  { %v774_v41 = vsel %vm453_vm1, %v773_v52, %v756_v40  ;;  %v777_v31 = vrot.slane %v772_v3, 4  ;;  %v780_v21 = vsel %vm453_vm1, %v772_v3, %v779_v14  ;;  %v812_v25 = vperm.slane %v806_v51, %v4607_v53 }
 0x1f7   :  { %v834_v13 = vsel %vm453_vm1, %v6332_v54, %v816_v60  ;;  %3945 = vmatmul.msk.f32.gmra.mxu3 %vm1853_vm2, %v774_v41  ;;  %3957 = vmatmul.msk.f32.gmra.mxu1 %vm1853_vm2, %v780_v21  ;;  %v836_v32 = vsel %vm453_vm1, %v4672_v26, %v835_v49  ;;  %v844_v2 = vsel %vm453_vm1, %v843_v11, %v616_v1  ;;  %v863_v15 = vrot.slane %v842_v56, 4 }
 0x1f8   :  { %v778_v58 = vsel %vm453_vm1, %v777_v31, %v760_v50  ;;  %v6333_v55 = vrot.slane %v4668_v27, 4  ;;  %v831_v28 = vrot.slane %v812_v25, 4  ;;  %v848_v45 = vperm.slane %v844_v2, %v4599_v33 }
 0x1f9   :  { %3953 = vmatmul.msk.f32.gmra.mxu0 %vm1853_vm2, %v778_v58  ;;  %v850_v26 = vsel %vm453_vm1, %v849_v9, %v4907_v16  ;;  %v6334_v17 = vrot.slane %v4890_v46, 4  ;;  %v775_v35 = vrot.slane %v756_v40, 4  ;;  %v4173_v40 = vld [vmem:[#allocation11] sm:$0xff] }
 0x1fa   :  { %v830_v29 = vsel %vm453_vm1, %v6333_v55, %v812_v25  ;;  %v854_v30 = vperm.slane %v850_v26, %v4599_v33  ;;  %v861_v24 = vrot.slane %v848_v45, 4  ;;  %v864_v22 = vsel %vm453_vm1, %v848_v45, %v863_v15 }
 0x1fb   :  { %3960 = vmatmul.msk.f32.vlgmr.msrb.gmra.mxu2 %vm1853_vm2, %v830_v29  ;;  %v856_v11 = vsel %vm453_vm1, %v6334_v17, %v4896_v39  ;;  %v832_v62 = vsel %vm453_vm1, %v4668_v27, %v831_v28  ;;  %v872_v16 = vperm.slane %v864_v22, %v4607_v53 }
 0x1fc   :  { %v860_v57 = vperm.slane %v856_v11, %v4599_v33  ;;  %v875_v23 = vrot.slane %v854_v30, 4  ;;  %v862_v44 = vsel %vm453_vm1, %v861_v24, %v842_v56 }
 0x1fd   :  { %v868_v9 = vperm.slane %v862_v44, %v4607_v53  ;;  %v891_v42 = vrot.slane %v872_v16, 4 }
 0x1fe   :  { %v873_v18 = vrot.slane %v860_v57, 4  ;;  %v876_v39 = vsel %vm453_vm1, %v860_v57, %v875_v23 }
 0x1ff   :  { %3948 = vmatmul.msk.f32.vlgmr.msrb.gmra.mxu3 %vm1853_vm2, %v724_v20  ;;  %3972 = vmatmul.msk.f32.vlgmr.msrb.gmra.mxu1 %vm1853_vm2, %v836_v32  ;;  %v884_v43 = vperm.slane %v876_v39, %v4607_v53  ;;  %v776_v20 = vsel %vm453_vm1, %v768_v48, %v775_v35  ;;  %v887_v47 = vrot.slane %v868_v9, 4  ;;  %v335_v48 = vperm.slane %v4173_v40, 2 }
 0x200   :  { %v874_v46 = vsel %vm453_vm1, %v873_v18, %v854_v30 }
 0x201   :  { %v880_v12 = vperm.slane %v874_v46, %v4607_v53  ;;  %3968 = vmatmul.msk.f32.vlgmr.msra.gmra.mxu0 %vm1853_vm2, %v834_v13  ;;  %v889_v36 = vrot.slane %v884_v43, 4  ;;  %v892_v38 = vsel %vm453_vm1, %v884_v43, %v891_v42 }
 0x203   :  { %v885_v27 = vrot.slane %v880_v12, 4  ;;  %v890_v63 = vsel %vm453_vm1, %v889_v36, %v872_v16  ;;  %v888_v0 = vsel %vm453_vm1, %v880_v12, %v887_v47 }
 0x205   :  { %v886_v34 = vsel %vm453_vm1, %v885_v27, %v868_v9 }
 0x206   :  { %3961 = vmatmul.msk.f32.gmra.mxu2 %vm1853_vm2, %v886_v34 }
 0x207   :  { %3949 = vmatmul.msk.f32.gmra.mxu3 %vm1853_vm2, %v776_v20  ;;  %3973 = vmatmul.msk.f32.gmra.mxu1 %vm1853_vm2, %v892_v38 }
 0x209   :  { %3969 = vmatmul.msk.f32.gmra.mxu0 %vm1853_vm2, %v890_v63 }
 0x20f   :  { %3964 = vmatmul.msk.f32.vlgmr.msra.gmra.mxu3 %vm1853_vm2, %v832_v62 }
 0x217   :  { %3965 = vmatmul.msk.f32.gmra.mxu3 %vm1853_vm2, %v888_v0 }
 0x250   :  { %v400_v61 = vpop.f32.mrf.mxu2 }
 0x251   :  { %v5230_v60 = vadd.f32 %v400_v61, %v335_v48 }
 0x258   :  { %v403_v50 = vpop.f32.mrf.mxu2 }
 0x259   :  { %v5228_v10 = vadd.f32 %v403_v50, %v335_v48 }
 0x260   :  { %v406_v37 = vpop.f32.mrf.mxu2 }
 0x261   :  { %v5232_v59 = vadd.f32 %v406_v37, %v335_v48 }
 0x263   :  { %v4051_v19 = vpack.i.bf16 %v5230_v60, %v5232_v59 }
 0x265   :  { %4052 = vrot.lane.b32.xlu0 %v4051_v19, %s4364_s5  ;;  %4057 = vrot.lane.b32.xlu1 %v4051_v19, %s4365_s29 }
 0x268   :  { %v409_v2 = vpop.f32.mrf.mxu2 }
 0x269   :  { %v5236_v52 = vpop.f32.mrf.mxu0  ;;  %v5290_v44 = vadd.f32 %v409_v2, %v335_v48 }
 0x26a   :  { %v2147_v3 = vsel %vm2134_vm3, %v5236_v52, -inf  ;;  %v5242_v14 = vpop.f32.mrf.mxu1 }
 0x26b   :  { %2148 = vmax.xlane.f32.xlu2 %v2147_v3  ;;  %v2153_v29 = vsel %vm2134_vm3, %v5242_v14, -inf  ;;  %v4061_v16 = vpack.i.bf16 %v5228_v10, %v5290_v44 }
 0x271   :  { %v5244_v1 = vpop.f32.mrf.mxu3 }
 0x272   :  { %v2135_v54 = vsel %vm2134_vm3, %v5244_v1, -inf }
 0x273   :  { %2136 = vmax.xlane.f32.xlu2 %v2135_v54 }
 0x274   :  { %v5248_v13 = vpop.f32.mrf.mxu1 }
 0x275   :  { %v2156_v11 = vsel %vm2134_vm3, %v5248_v13, -inf }
 0x276   :  { %v5250_v51 = vpop.f32.mrf.mxu0 }
 0x277   :  { %v2150_v28 = vsel %vm2134_vm3, %v5250_v51, -inf }
 0x27a   :  { %v1886_v49 = vpop.f32.mrf.mxu3 }
 0x27b   :  { %v2138_v56 = vsel %vm2134_vm3, %v1886_v49, -inf }
 0x27c   :  { %2139 = vmax.xlane.f32.xlu2 %v2138_v56  ;;  %v5253_v41 = vpop.f32.mrf.mxu1 }
 0x27d   :  { %v2177_v30 = vsel %vm2134_vm3, %v5253_v41, -inf }
 0x27e   :  { %v5255_v31 = vpop.f32.mrf.mxu0  ;;  %v5275_v26 = vpop.f32.mrf.mxu2 }
 0x27f   :  { %v2171_v21 = vsel %vm2134_vm3, %v5255_v31, -inf  ;;  %v2159_v22 = vsel %vm2134_vm3, %v5275_v26, -inf }
 0x282   :  { %v5259_v25 = vpop.f32.mrf.mxu3 }
 0x283   :  { %v2141_v23 = vsel %vm2134_vm3, %v5259_v25, -inf }
 0x284   :  { %2172 = vmax.xlane.f32.xlu2 %v2171_v21  ;;  %v5261_v32 = vpop.f32.mrf.mxu1 }
 0x285   :  { %v2180_v15 = vsel %vm2134_vm3, %v5261_v32, -inf }
 0x286   :  { %v5267_v55 = vpop.f32.mrf.mxu0 }
 0x287   :  { %v2174_v45 = vsel %vm2134_vm3, %v5267_v55, -inf }
 0x289   :  { %v5282_v24 = vpop.f32.mrf.mxu2 }
 0x28a   :  { %v5265_v58 = vpop.f32.mrf.mxu3  ;;  %v2162_v62 = vsel %vm2134_vm3, %v5282_v24, -inf }
 0x28b   :  { %v2144_v18 = vsel %vm2134_vm3, %v5265_v58, -inf }
 0x28c   :  { %2181 = vmax.xlane.f32.xlu2 %v2180_v15 }
 0x28f   :  { %2154 = vmax.xlane.f32.xlu0 %v2153_v29  ;;  %2151 = vmax.xlane.f32.xlu1 %v2150_v28 }
 0x292   :  { %v2058_v17 = vpop.f32.mrf.mxu3 }
 0x293   :  { %v2165_v57 = vsel %vm2134_vm3, %v2058_v17, -inf }
 0x294   :  { %2175 = vmax.xlane.f32.xlu2 %v2174_v45 }
 0x297   :  { %2157 = vmax.xlane.f32.xlu0 %v2156_v11  ;;  %2178 = vmax.xlane.f32.xlu1 %v2177_v30 }
 0x29a   :  { %v5299_v46 = vpop.f32.mrf.mxu3 }
 0x29b   :  { %v2168_v9 = vsel %vm2134_vm3, %v5299_v46, -inf }
 0x29c   :  { %2166 = vmax.xlane.f32.xlu2 %v2165_v57 }
 0x29f   :  { %2160 = vmax.xlane.f32.xlu0 %v2159_v22  ;;  %2163 = vmax.xlane.f32.xlu1 %v2162_v62 }
 0x2a7   :  { %2142 = vmax.xlane.f32.xlu1 %v2141_v23 }
 0x2af   :  { %2145 = vmax.xlane.f32.xlu1 %v2144_v18 }
 0x2b3   :  { %4067 = vrot.lane.b32.xlu0 %v4061_v16, %s4365_s29 }
 0x2b4   :  { %4062 = vrot.lane.b32.xlu2 %v4061_v16, %s4364_s5 }
 0x2c8   :  { %4072 = vrot.lane.b32.xlu1 %v4051_v19, %s4366_s30 }
 0x2d7   :  { %v5304_v43 = vpop.permute.xlu0 %4052  ;;  %v5306_v42 = vpop.permute.xlu1 %4057 }
 0x2dd   :  { %2169 = vmax.xlane.f32.xlu0 %v2168_v9 }
 0x2de   :  { %v2149_v39 = vpop.xlane.xlu2 %2148 }
 0x2df   :  { %v2187_v11 = vsub.f32 %v5236_v52, %v2149_v39 }
 0x2e1   :  { %v2207_v22 = vmul.f32 1.442695, %v2187_v11 }
 0x2e6   :  { %v2137_v12 = vpop.xlane.xlu2 %2136 }
 0x2e7   :  { %v2183_v61 = vsub.f32 %v5244_v1, %v2137_v12 }
 0x2e9   :  { %v2199_v19 = vmul.f32 1.442695, %v2183_v61 }
 0x2ef   :  { %v2140_v27 = vpop.xlane.xlu2 %2139 }
 0x2f0   :  { %v2184_v47 = vsub.f32 %v1886_v49, %v2140_v27 }
 0x2f1   :  { %4077 = vrot.lane.b32.xlu0 %v4061_v16, %s4366_s30 }
 0x2f2   :  { %v2201_v40 = vmul.f32 1.442695, %v2184_v47 }
 0x2f7   :  { %v2173_v35 = vpop.xlane.xlu2 %2172 }
 0x2f8   :  { %v2195_v1 = vsub.f32 %v5255_v31, %v2173_v35 }
 0x2fa   :  { %v2223_v15 = vmul.f32 1.442695, %v2195_v1 }
 0x2ff   :  { %v2182_v34 = vpop.xlane.xlu2 %2181 }
 0x300   :  { %v2198_v31 = vsub.f32 %v5261_v32, %v2182_v34 }
 0x302   :  { %v2155_v20 = vpop.xlane.xlu0 %2154  ;;  %v2152_v36 = vpop.xlane.xlu1 %2151  ;;  %v2229_v23 = vmul.f32 1.442695, %v2198_v31 }
 0x303   :  { %v2189_v38 = vsub.f32 %v5242_v14, %v2155_v20  ;;  %v2188_v39 = vsub.f32 %v5250_v51, %v2152_v36 }
 0x305   :  { %v2211_v0 = vmul.f32 1.442695, %v2189_v38  ;;  %v2209_v34 = vmul.f32 1.442695, %v2188_v39 }
 0x307   :  { %v5309_v63 = vpop.xlane.xlu2 %2175  ;;  %4091 = vpow2.f32 %v2211_v0 }
 0x308   :  { %4093 = vpow2.f32 %v2201_v40  ;;  %v4060_v40 = vunpack.i.h.bf16 %v5306_v42 }
 0x309   :  { %4095 = vpow2.f32 %v2199_v19 }
 0x30a   :  { %v5312_v48 = vpop.xlane.xlu1 %2178  ;;  %v2158_v62 = vpop.xlane.xlu0 %2157 }
 0x30b   :  { %v2190_v52 = vsub.f32 %v5248_v13, %v2158_v62  ;;  %v2197_v47 = vsub.f32 %v5253_v41, %v5312_v48  ;;  %v1527_v41 = vrot.slane %v5232_v59, 4 }
 0x30d   :  { %v5314_v37 = vpop.eup %4091  ;;  %v2213_v35 = vmul.f32 1.442695, %v2190_v52  ;;  %v2227_v19 = vmul.f32 1.442695, %v2197_v47 }
 0x30e   :  { %v2249_v54 = vsel %vm2134_vm3, %v5314_v37, 0.0  ;;  %v5320_v56 = vpop.eup %4093 }
 0x30f   :  { %v2167_v50 = vpop.xlane.xlu2 %2166  ;;  %2250 = vadd.xlane.f32.xlu2 %v2249_v54  ;;  %v2234_v21 = vsel %vm2134_vm3, %v5320_v56, 0.0  ;;  %v5325_v2 = vpop.eup %4095  ;;  %v1415_v54 = vrot.slane %v5230_v60, 4 }
 0x310   :  { %v2193_v3 = vsub.f32 %v2058_v17, %v2167_v50  ;;  %v2231_v28 = vsel %vm2134_vm3, %v5325_v2, 0.0 }
 0x311   :  { %v1416_v1 = vsel %vm453_vm1, %v4060_v40, %v1415_v54 }
 0x312   :  { %v2219_v14 = vmul.f32 1.442695, %v2193_v3  ;;  %v5318_v49 = vpop.xlane.xlu1 %2163  ;;  %v2161_v20 = vpop.xlane.xlu0 %2160 }
 0x313   :  { %v2191_v51 = vsub.f32 %v5275_v26, %v2161_v20  ;;  %v4059_v26 = vunpack.i.l.bf16 %v5306_v42  ;;  %v2192_v42 = vsub.f32 %v5282_v24, %v5318_v49 }
 0x314   :  { %4097 = vpow2.f32 %v2219_v14  ;;  %v1413_v14 = vrot.slane %v4060_v40, 4 }
 0x315   :  { %4099 = vpow2.f32 %v2223_v15  ;;  %v2215_v50 = vmul.f32 1.442695, %v2191_v51  ;;  %v1528_v15 = vsel %vm453_vm1, %v4059_v26, %v1527_v41 }
 0x316   :  { %v1414_v31 = vsel %vm453_vm1, %v1413_v14, %v5230_v60 }
 0x317   :  { %2235 = vadd.xlane.f32.xlu2 %v2234_v21  ;;  %v1525_v21 = vrot.slane %v4059_v26, 4 }
 0x319   :  { %v1526_v24 = vsel %vm453_vm1, %v1525_v21, %v5232_v59 }
 0x31a   :  { %v2143_v29 = vpop.xlane.xlu1 %2142  ;;  %v5329_v45 = vpop.eup %4097  ;;  %v1532_v39 = vperm.slane %v1526_v24, %v4599_v33 }
 0x31b   :  { %v2185_v17 = vsub.f32 %v5259_v25, %v2143_v29  ;;  %2232 = vadd.xlane.f32.xlu0 %v2231_v28  ;;  %v2261_v57 = vsel %vm2134_vm3, %v5329_v45, 0.0  ;;  %v5336_v16 = vpop.eup %4099  ;;  %v4055_v29 = vunpack.i.h.bf16 %v5304_v43 }
 0x31c   :  { %v2267_v12 = vsel %vm2134_vm3, %v5336_v16, 0.0  ;;  %v1551_v41 = vrot.slane %v1532_v39, 4 }
 0x31d   :  { %v2203_v30 = vmul.f32 1.442695, %v2185_v17  ;;  %v4054_v17 = vunpack.i.l.bf16 %v5304_v43  ;;  %v1427_v49 = vrot.slane %v4055_v29, 4 }
 0x31f   :  { %4101 = vpow2.f32 %v2203_v30  ;;  %2262 = vadd.xlane.f32.xlu2 %v2261_v57  ;;  %v1424_v30 = vperm.slane %v1416_v1, %v4599_v33  ;;  %v1536_v57 = vperm.slane %v1528_v15, %v4599_v33  ;;  %v1539_v43 = vrot.slane %v4054_v17, 4 }
 0x320   :  { %4103 = vpow2.f32 %v2207_v22  ;;  %v2217_v22 = vmul.f32 1.442695, %v2192_v42 }
 0x321   :  { %4105 = vpow2.f32 %v2229_v23  ;;  %v1451_v60 = vrot.slane %v1424_v30, 4 }
 0x322   :  { %v2146_v18 = vpop.xlane.xlu1 %2145 }
 0x323   :  { %v2186_v25 = vsub.f32 %v5265_v58, %v2146_v18  ;;  %v1420_v18 = vperm.slane %v1414_v31, %v4599_v33 }
 0x325   :  { %v5339_v9 = vpop.eup %4101  ;;  %v2205_v32 = vmul.f32 1.442695, %v2186_v25  ;;  %v1439_v47 = vrot.slane %v1420_v18, 4 }
 0x326   :  { %v2237_v27 = vsel %vm2134_vm3, %v5339_v9, 0.0  ;;  %v5347_v58 = vpop.eup %4103 }
 0x327   :  { %4107 = vpow2.f32 %v2205_v32  ;;  %2268 = vadd.xlane.f32.xlu2 %v2267_v12  ;;  %2238 = vadd.xlane.f32.xlu1 %v2237_v27  ;;  %v5349_v38 = vpop.eup %4105  ;;  %v2243_v36 = vsel %vm2134_vm3, %v5347_v58, 0.0  ;;  %v1563_v12 = vrot.slane %v1536_v57, 4 }
 0x328   :  { %4109 = vpow2.f32 %v2213_v35  ;;  %v2276_v0 = vsel %vm2134_vm3, %v5349_v38, 0.0 }
 0x329   :  { %4111 = vpow2.f32 %v2209_v34 }
 0x32a   :  { %4113 = vpow2.f32 %v2215_v50 }
 0x32b   :  { %4115 = vpow2.f32 %v2227_v19 }
 0x32c   :  { %4117 = vpow2.f32 %v2217_v22 }
 0x32d   :  { %v5351_v13 = vpop.eup %4107 }
 0x32e   :  { %v2240_v61 = vsel %vm2134_vm3, %v5351_v13, 0.0  ;;  %v5364_v3 = vpop.eup %4109 }
 0x32f   :  { %2277 = vadd.xlane.f32.xlu2 %v2276_v0  ;;  %2244 = vadd.xlane.f32.xlu1 %v2243_v36  ;;  %v5368_v48 = vpop.eup %4111  ;;  %v2252_v28 = vsel %vm2134_vm3, %v5364_v3, 0.0 }
 0x330   :  { %2241 = vadd.xlane.f32.xlu0 %v2240_v61  ;;  %v2246_v11 = vsel %vm2134_vm3, %v5368_v48, 0.0  ;;  %v5386_v23 = vpop.eup %4113 }
 0x331   :  { %v5389_v32 = vpop.eup %4115  ;;  %v2255_v36 = vsel %vm2134_vm3, %v5386_v23, 0.0 }
 0x332   :  { %v2273_v40 = vsel %vm2134_vm3, %v5389_v32, 0.0 }
 0x337   :  { %2253 = vadd.xlane.f32.xlu1 %v2252_v28 }
 0x338   :  { %2247 = vadd.xlane.f32.xlu0 %v2246_v11 }
 0x33a   :  { %v4073_v62 = vpop.permute.xlu1 %4072 }
 0x33b   :  { %v4075_v25 = vunpack.i.h.bf16 %v4073_v62  ;;  %v4074_v52 = vunpack.i.l.bf16 %v4073_v62 }
 0x33d   :  { %v1425_v27 = vrot.slane %v4075_v25, 4  ;;  %v1428_v35 = vsel %vm453_vm1, %v4075_v25, %v1427_v49  ;;  %v1537_v59 = vrot.slane %v4074_v52, 4  ;;  %v1540_v34 = vsel %vm453_vm1, %v4074_v52, %v1539_v43 }
 0x33e   :  { %v1436_v20 = vperm.slane %v1428_v35, %v4599_v33  ;;  %v1548_v51 = vperm.slane %v1540_v34, %v4599_v33  ;;  %v2196_v25 = vsub.f32 %v5267_v55, %v5309_v63  ;;  %v1471_v63 = vrot.slane %v5228_v10, 4 }
 0x33f   :  { %v1426_v0 = vsel %vm453_vm1, %v1425_v27, %v4055_v29  ;;  %v1538_v61 = vsel %vm453_vm1, %v1537_v59, %v4054_v17  ;;  %2256 = vadd.xlane.f32.xlu1 %v2255_v36  ;;  %v5409_v17 = vpop.eup %4117 }
 0x340   :  { %v1432_v26 = vperm.slane %v1426_v0, %v4599_v33  ;;  %v1449_v50 = vrot.slane %v1436_v20, 4  ;;  %v1452_v19 = vsel %vm453_vm1, %v1436_v20, %v1451_v60  ;;  %v1544_v54 = vperm.slane %v1538_v61, %v4599_v33  ;;  %2274 = vadd.xlane.f32.xlu0 %v2273_v40  ;;  %v5425_v60 = vpop.permute.xlu2 %4062 }
 0x341   :  { %v1561_v14 = vrot.slane %v1548_v51, 4  ;;  %v1564_v1 = vsel %vm453_vm1, %v1548_v51, %v1563_v12  ;;  %v2258_v62 = vsel %vm2134_vm3, %v5409_v17, 0.0  ;;  %v1460_v34 = vperm.slane %v1452_v19, %v4607_v53 }
 0x342   :  { %v1437_v21 = vrot.slane %v1432_v26, 4  ;;  %v1440_v15 = vsel %vm453_vm1, %v1432_v26, %v1439_v47  ;;  %v1450_v29 = vsel %vm453_vm1, %v1449_v50, %v1424_v30  ;;  %v1549_v42 = vrot.slane %v1544_v54, 4  ;;  %v4068_v30 = vpop.permute.xlu0 %4067 }
 0x343   :  { %v1552_v28 = vsel %vm453_vm1, %v1544_v54, %v1551_v41  ;;  %v1562_v24 = vsel %vm453_vm1, %v1561_v14, %v1536_v57  ;;  %v1572_v22 = vperm.slane %v1564_v1, %v4607_v53  ;;  %v2225_v57 = vmul.f32 1.442695, %v2196_v25 }
 0x344   :  { %v1438_v11 = vsel %vm453_vm1, %v1437_v21, %v1420_v18  ;;  %v1550_v31 = vsel %vm453_vm1, %v1549_v42, %v1532_v39  ;;  %v5415_v49 = vperm.slane %v1552_v28, %v4607_v53  ;;  %v1568_v52 = vperm.slane %v1562_v24, %v4607_v53 }
 0x345   :  { %v1579_v43 = vrot.slane %v1572_v22, 4  ;;  %v4070_v39 = vunpack.i.h.bf16 %v4068_v30  ;;  %v4069_v12 = vunpack.i.l.bf16 %v4068_v30  ;;  %v1556_v27 = vperm.slane %v1550_v31, %v4607_v53 }
 0x346   :  { %v1577_v35 = vrot.slane %v1568_v52, 4  ;;  %4119 = vpow2.f32 %v2225_v57  ;;  %v4065_v55 = vunpack.i.h.bf16 %v5425_v60  ;;  %v1583_v51 = vrot.slane %v5290_v44, 4 }
 0x347   :  { %v1694_v18 = vsel %vm453_vm1, %v1579_v43, %v5415_v49  ;;  %v1456_v36 = vperm.slane %v1450_v29, %v4607_v53  ;;  %v4064_v47 = vunpack.i.l.bf16 %v5425_v60  ;;  %v1469_v0 = vrot.slane %v4070_v39, 4 }
 0x348   :  { %2259 = vadd.xlane.f32.xlu0 %v2258_v62  ;;  %v1581_v61 = vrot.slane %v4069_v12, 4  ;;  %v1472_v26 = vsel %vm453_vm1, %v4070_v39, %v1471_v63  ;;  %v1584_v50 = vsel %vm453_vm1, %v4069_v12, %v1583_v51  ;;  %v1689_v19 = vsel %vm453_vm1, %v1577_v35, %v1556_v27 }
 0x349   :  { %v1448_v54 = vperm.slane %v1440_v15, %v4607_v53  ;;  %v1467_v41 = vrot.slane %v1460_v34, 4  ;;  %v1693_v14 = vperm.slane %v1689_v19, %v4599_v33  ;;  %v5443_v1 = vrot.slane %v4065_v55, 4 }
 0x34a   :  { %v1465_v21 = vrot.slane %v1456_v36, 4  ;;  %v1470_v28 = vsel %vm453_vm1, %v1469_v0, %v5228_v10  ;;  %v5450_v31 = vperm.slane %v1472_v26, %v4599_v33  ;;  %v1582_v15 = vsel %vm453_vm1, %v1581_v61, %v5290_v44 }
 0x34b   :  { %v5455_v24 = vperm.slane %v1584_v50, %v4599_v33  ;;  %v1575_v22 = vrot.slane %v5415_v49, 4  ;;  %v1578_v62 = vsel %vm453_vm1, 0.0, %v1577_v35  ;;  %v1580_v30 = vsel %vm453_vm1, 0.0, %v1579_v43 }
 0x34c   :  { %v5445_v42 = vpop.eup %4119  ;;  %v1595_v10 = vrot.slane %v4064_v47, 4  ;;  %v1463_v52 = vrot.slane %v1448_v54, 4  ;;  %v1468_v57 = vsel %vm453_vm1, 0.0, %v1467_v41  ;;  %v5466_v44 = vperm.slane %v1470_v28, %v4599_v33 }
 0x34d   :  { %v1466_v39 = vsel %vm453_vm1, 0.0, %v1465_v21  ;;  %v1573_v49 = vrot.slane %v1556_v27, 4  ;;  %v2270_v12 = vsel %vm2134_vm3, %v5445_v42, 0.0  ;;  %v1507_v35 = vrot.slane %v5450_v31, 4 }
 0x34e   :  { %v1803_v34 = vrot.slane %v1580_v30, 4  ;;  %v1747_v63 = vrot.slane %v1468_v57, 4  ;;  %v1576_v51 = vsel %vm453_vm1, 0.0, %v1575_v22  ;;  %v1464_v0 = vsel %vm453_vm1, 0.0, %v1463_v52 }
 0x34f   :  { %v1741_v61 = vrot.slane %v1466_v39, 4  ;;  %v1642_v50 = vsel %vm453_vm1, %v1467_v41, %v1448_v54  ;;  %v1711_v19 = vrot.slane %v1693_v14, 4  ;;  %v1495_v30 = vrot.slane %v5466_v44, 4 }
 0x350   :  { %v2170_v59 = vpop.xlane.xlu0 %2169 }
 0x351   :  { %v2194_v20 = vsub.f32 %v5299_v46, %v2170_v59  ;;  %v1698_v46 = vperm.slane %v1694_v18, %v4599_v33  ;;  %v1444_v18 = vperm.slane %v1438_v11, %v4607_v53  ;;  %v5475_v59 = vperm.slane %v1582_v15, %v4599_v33 }
 0x352   :  { %v1797_v11 = vrot.slane %v1578_v62, 4  ;;  %v1646_v15 = vperm.slane %v1642_v50, %v4599_v33  ;;  %v1804_v62 = vsel %vm453_vm1, %v1803_v34, %v1576_v51 }
 0x353   :  { %v2221_v40 = vmul.f32 1.442695, %v2194_v20  ;;  %v1709_v29 = vrot.slane %v1698_v46, 4  ;;  %v1619_v20 = vrot.slane %v5455_v24, 4  ;;  %v1461_v36 = vrot.slane %v1444_v18, 4 }
 0x354   :  { %v1637_v26 = vsel %vm453_vm1, %v1465_v21, %v1444_v18  ;;  %v5498_v54 = vperm.slane %v1804_v62, %v4599_v33  ;;  %v1657_v41 = vrot.slane %v1646_v15, 4  ;;  %v1607_v57 = vrot.slane %v5475_v59, 4 }
 0x355   :  { %4121 = vpow2.f32 %v2221_v40  ;;  %v1710_v25 = vsel %vm453_vm1, %v1709_v29, %v1693_v14  ;;  %v1574_v29 = vsel %vm453_vm1, 0.0, %v1573_v49  ;;  %v1641_v28 = vperm.slane %v1637_v26, %v4599_v33 }
 0x356   :  { %v5483_v40 = vperm.slane %v1710_v25, %v4607_v53  ;;  %v1798_v22 = vsel %vm453_vm1, %v1797_v11, %v1574_v29  ;;  %v1712_v25 = vsel %vm453_vm1, %v1698_v46, %v1711_v19  ;;  %v1462_v18 = vsel %vm453_vm1, 0.0, %v1461_v36 }
 0x357   :  { %v5495_v52 = vperm.slane %v1798_v22, %v4599_v33  ;;  %v5501_v14 = vperm.slane %v1712_v25, %v4607_v53  ;;  %v1659_v21 = vrot.slane %v1641_v28, 4  ;;  %v1821_v39 = vrot.slane %v5498_v54, 4 }
 0x358   :  { %v1742_v49 = vsel %vm453_vm1, %v1741_v61, %v1462_v18  ;;  %v1748_v46 = vsel %vm453_vm1, %v1747_v63, %v1464_v0  ;;  %v1735_v34 = vrot.slane %v5483_v40, 4  ;;  %v1658_v51 = vsel %vm453_vm1, %v1657_v41, %v1641_v28 }
 0x359   :  { %v1660_v26 = vsel %vm453_vm1, %v1646_v15, %v1659_v21  ;;  %v5513_v36 = vperm.slane %v1658_v51, %v4607_v53  ;;  %v1822_v29 = vsel %vm453_vm1, %v1821_v39, %v5495_v52  ;;  %v5524_v61 = vperm.slane %v1742_v49, %v4599_v33 }
 0x35a   :  { %v5518_v63 = vperm.slane %v1822_v29, %v4607_v53  ;;  %v5521_v0 = vperm.slane %v1660_v26, %v4607_v53  ;;  %v5527_v28 = vperm.slane %v1748_v46, %v4599_v33 }
 0x35b   :  { %v5471_v43 = vpop.eup %4121  ;;  %v1683_v21 = vrot.slane %v5513_v36, 4 }
 0x35c   :  { %v2264_v27 = vsel %vm2134_vm3, %v5471_v43, 0.0 }
 0x35d   :  { %2265 = vadd.xlane.f32.xlu1 %v2264_v27  ;;  %v1739_v27 = vrot.slane %v5501_v14, 4 }
 0x363   :  { %v4078_v11 = vpop.permute.xlu0 %4077 }
 0x364   :  { %v4080_v50 = vunpack.i.h.bf16 %v4078_v11  ;;  %v4079_v19 = vunpack.i.l.bf16 %v4078_v11 }
 0x365   :  { %2271 = vadd.xlane.f32.xlu1 %v2270_v12 }
 0x366   :  { %v1481_v15 = vrot.slane %v4080_v50, 4  ;;  %v1484_v22 = vsel %vm453_vm1, %v4080_v50, %v5443_v1  ;;  %v1593_v62 = vrot.slane %v4079_v19, 4  ;;  %v1596_v25 = vsel %vm453_vm1, %v4079_v19, %v1595_v10 }
 0x367   :  { %v1492_v12 = vperm.slane %v1484_v22, %v4599_v33  ;;  %v1604_v41 = vperm.slane %v1596_v25, %v4599_v33  ;;  %v1847_v1 = vrot.slane %v5518_v63, 4  ;;  %v1765_v10 = vrot.slane %v5527_v28, 4 }
 0x368   :  { %v1482_v39 = vsel %vm453_vm1, %v1481_v15, %v4065_v55  ;;  %v1594_v49 = vsel %vm453_vm1, %v1593_v62, %v4064_v47 }
 0x369   :  { %v1488_v46 = vperm.slane %v1482_v39, %v4599_v33  ;;  %v1505_v11 = vrot.slane %v1492_v12, 4  ;;  %v1508_v51 = vsel %vm453_vm1, %v1492_v12, %v1507_v35  ;;  %v1600_v26 = vperm.slane %v1594_v49, %v4599_v33 }
 0x36a   :  { %v1516_v50 = vperm.slane %v1508_v51, %v4607_v53  ;;  %v1617_v19 = vrot.slane %v1604_v41, 4  ;;  %v1620_v55 = vsel %vm453_vm1, %v1604_v41, %v1619_v20  ;;  %v5551_v60 = vsel %vm453_vm1, %v1765_v10, %v5524_v61 }
 0x36b   :  { %v1493_v47 = vrot.slane %v1488_v46, 4  ;;  %v1496_v29 = vsel %vm453_vm1, %v1488_v46, %v1495_v30  ;;  %v1506_v15 = vsel %vm453_vm1, %v1505_v11, %v5450_v31  ;;  %v1605_v22 = vrot.slane %v1600_v26, 4 }
 0x36c   :  { %v1504_v35 = vperm.slane %v1496_v29, %v4607_v53  ;;  %v1512_v62 = vperm.slane %v1506_v15, %v4607_v53  ;;  %v1523_v25 = vrot.slane %v1516_v50, 4  ;;  %v1608_v12 = vsel %vm453_vm1, %v1600_v26, %v1607_v57 }
 0x36d   :  { %v1494_v20 = vsel %vm453_vm1, %v1493_v47, %v5466_v44  ;;  %v1606_v41 = vsel %vm453_vm1, %v1605_v22, %v5475_v59  ;;  %v1616_v39 = vperm.slane %v1608_v12, %v4607_v53  ;;  %v1618_v30 = vsel %vm453_vm1, %v1617_v19, %v5455_v24 }
 0x36e   :  { %v1500_v31 = vperm.slane %v1494_v20, %v4607_v53  ;;  %v1519_v49 = vrot.slane %v1504_v35, 4  ;;  %v1521_v10 = vrot.slane %v1512_v62, 4  ;;  %v1524_v46 = vsel %vm453_vm1, 0.0, %v1523_v25 }
 0x36f   :  { %v1612_v11 = vperm.slane %v1606_v41, %v4607_v53  ;;  %v1624_v57 = vperm.slane %v1618_v30, %v4607_v53  ;;  %v1628_v44 = vperm.slane %v1620_v55, %v4607_v53  ;;  %v1631_v51 = vrot.slane %v1616_v39, 4 }
 0x370   :  { %v1522_v59 = vsel %vm453_vm1, 0.0, %v1521_v10  ;;  %v1759_v26 = vrot.slane %v1524_v46, 4  ;;  %v1647_v50 = vsel %vm453_vm1, %v1521_v10, %v1500_v31  ;;  %v1652_v24 = vsel %vm453_vm1, %v1523_v25, %v1504_v35 }
 0x371   :  { %v1633_v19 = vrot.slane %v1624_v57, 4  ;;  %v1635_v47 = vrot.slane %v1628_v44, 4  ;;  %v1651_v29 = vperm.slane %v1647_v50, %v4599_v33  ;;  %v1656_v15 = vperm.slane %v1652_v24, %v4599_v33 }
 0x372   :  { %v1629_v22 = vrot.slane %v1612_v11, 4  ;;  %v1632_v62 = vsel %vm453_vm1, 0.0, %v1631_v51  ;;  %v1517_v12 = vrot.slane %v1500_v31, 4  ;;  %v1520_v55 = vsel %vm453_vm1, 0.0, %v1519_v49 }
 0x373   :  { %v1634_v20 = vsel %vm453_vm1, 0.0, %v1633_v19  ;;  %v1636_v41 = vsel %vm453_vm1, 0.0, %v1635_v47  ;;  %v1699_v30 = vsel %vm453_vm1, %v1633_v19, %v1612_v11  ;;  %v1704_v35 = vsel %vm453_vm1, %v1635_v47, %v1616_v39 }
 0x374   :  { %v1809_v25 = vrot.slane %v1634_v20, 4  ;;  %v1815_v10 = vrot.slane %v1636_v41, 4  ;;  %v1703_v46 = vperm.slane %v1699_v30, %v4599_v33  ;;  %v1708_v57 = vperm.slane %v1704_v35, %v4599_v33 }
 0x375   :  { %v1669_v44 = vrot.slane %v1656_v15, 4  ;;  %v1630_v51 = vsel %vm453_vm1, 0.0, %v1629_v22  ;;  %v1671_v31 = vrot.slane %v1651_v29, 4  ;;  %v1518_v49 = vsel %vm453_vm1, 0.0, %v1517_v12 }
 0x376   :  { %v1721_v50 = vrot.slane %v1708_v57, 4  ;;  %v1723_v24 = vrot.slane %v1703_v46, 4  ;;  %v1810_v18 = vsel %vm453_vm1, %v1809_v25, %v1630_v51  ;;  %v1816_v11 = vsel %vm453_vm1, %v1815_v10, %v1632_v62 }
 0x377   :  { %v1670_v39 = vsel %vm453_vm1, %v1669_v44, %v1651_v29  ;;  %v1814_v19 = vperm.slane %v1810_v18, %v4599_v33  ;;  %v1820_v47 = vperm.slane %v1816_v11, %v4599_v33  ;;  %v1672_v20 = vsel %vm453_vm1, %v1656_v15, %v1671_v31 }
 0x378   :  { %v1722_v41 = vsel %vm453_vm1, %v1721_v50, %v1703_v46  ;;  %v1676_v22 = vperm.slane %v1670_v39, %v4607_v53  ;;  %v1724_v12 = vsel %vm453_vm1, %v1708_v57, %v1723_v24  ;;  %v1680_v30 = vperm.slane %v1672_v20, %v4607_v53 }
 0x379   :  { %v1728_v35 = vperm.slane %v1722_v41, %v4607_v53  ;;  %v1732_v62 = vperm.slane %v1724_v12, %v4607_v53  ;;  %v1833_v25 = vrot.slane %v1820_v47, 4  ;;  %v1753_v29 = vrot.slane %v1522_v59, 4 }
 0x37a   :  { %v1684_v18 = vsel %vm453_vm1, %v1676_v22, %v1683_v21  ;;  %v1681_v10 = vrot.slane %v1676_v22, 4  ;;  %v1687_v15 = vrot.slane %v5521_v0, 4  ;;  %v1760_v46 = vsel %vm453_vm1, %v1759_v26, %v1520_v55 }
 0x37b   :  { %v1736_v57 = vsel %vm453_vm1, %v1728_v35, %v1735_v34  ;;  %v1733_v44 = vrot.slane %v1728_v35, 4  ;;  %v1740_v51 = vsel %vm453_vm1, %v1732_v62, %v1739_v27  ;;  %v1834_v59 = vsel %vm453_vm1, %v1833_v25, %v1814_v19 }
 0x37c   :  { %2360 = vmatpush.msrb.mxu3 %v1736_v57  ;;  %2418 = vmatpush.msra.mxu1 %v1740_v51  ;;  %v1840_v21 = vperm.slane %v1834_v59, %v4607_v53  ;;  %v1737_v31 = vrot.slane %v1732_v62, 4  ;;  %v1688_v50 = vsel %vm453_vm1, %v1680_v30, %v1687_v15  ;;  %v1754_v26 = vsel %vm453_vm1, %v1753_v29, %v1518_v49 }
 0x37d   :  { %v1734_v55 = vsel %vm453_vm1, %v1733_v44, %v5483_v40  ;;  %v1758_v34 = vperm.slane %v1754_v26, %v4599_v33  ;;  %v1764_v24 = vperm.slane %v1760_v46, %v4599_v33  ;;  %v1772_v27 = vperm.slane %v5551_v60, %v4607_v53 }
 0x37e   :  { %2331 = vmatpush.msra.mxu2 %v1734_v55  ;;  %2361 = vmatpush.msrb.mxu3 %v1684_v18  ;;  %v1848_v11 = vsel %vm453_vm1, %v1840_v21, %v1847_v1  ;;  %v1738_v39 = vsel %vm453_vm1, %v1737_v31, %v5501_v14  ;;  %v1845_v49 = vrot.slane %v1840_v21, 4  ;;  %v6335_v20 = vrot.slane %v5495_v52, 4 }
 0x37f   :  { %v1682_v41 = vsel %vm453_vm1, %v1681_v10, %v5513_v36  ;;  %2389 = vmatpush.msrb.mxu0 %v1738_v39  ;;  %v1777_v60 = vrot.slane %v1764_v24, 4  ;;  %v1835_v12 = vrot.slane %v1814_v19, 4  ;;  %2419 = vmatpush.msra.mxu1 %v1688_v50  ;;  %v1685_v1 = vrot.slane %v1680_v30, 4 }
 0x380   :  { %v1824_v40 = vsel %vm453_vm1, %v5498_v54, %v6335_v20  ;;  %2476 = vmatpush.msra.mxu3 %v1848_v11  ;;  %2332 = vmatpush.msra.mxu2 %v1682_v41  ;;  %v1846_v14 = vsel %vm453_vm1, %v1845_v49, %v5518_v63  ;;  %v1767_v52 = vrot.slane %v5524_v61, 4  ;;  %v1779_v35 = vrot.slane %v1758_v34, 4 }
 0x381   :  { %v1832_v22 = vperm.slane %v1824_v40, %v4607_v53  ;;  %v1778_v54 = vsel %vm453_vm1, %v1777_v60, %v1758_v34  ;;  %v1791_v62 = vrot.slane %v1772_v27, 4  ;;  %v1836_v36 = vsel %vm453_vm1, %v1820_v47, %v1835_v12 }
 0x382   :  { %2447 = vmatpush.msrb.mxu2 %v1846_v14  ;;  %v1784_v29 = vperm.slane %v1778_v54, %v4607_v53  ;;  %v1844_v19 = vperm.slane %v1836_v36, %v4607_v53  ;;  %v1686_v18 = vsel %vm453_vm1, %v1685_v1, %v5521_v0  ;;  %v1768_v63 = vsel %vm453_vm1, %v5527_v28, %v1767_v52  ;;  %v2251_v30 = vpop.xlane.xlu2 %2250 }
 0x383   :  { %v1851_v25 = vrot.slane %v1832_v22, 4  ;;  %2390 = vmatpush.msrb.mxu0 %v1686_v18  ;;  %v1776_v61 = vperm.slane %v1768_v63, %v4607_v53  ;;  %v1780_v10 = vsel %vm453_vm1, %v1764_v24, %v1779_v35  ;;  %4123 = vrcp.f32 %v2251_v30 }
 0x384   :  { %v1792_v47 = vsel %vm453_vm1, %v1784_v29, %v1791_v62  ;;  %v1789_v46 = vrot.slane %v1784_v29, 4  ;;  %v1849_v57 = vrot.slane %v1844_v19, 4  ;;  %v1788_v0 = vperm.slane %v1780_v10, %v4607_v53 }
 0x385   :  { %v1852_v15 = vsel %vm453_vm1, %v1844_v19, %v1851_v25  ;;  %2477 = vmatpush.msra.mxu3 %v1792_v47  ;;  %v1795_v44 = vrot.slane %v1776_v61, 4 }
 0x386   :  { %2534 = vmatpush.msrb.mxu1 %v1852_v15  ;;  %v1790_v28 = vsel %vm453_vm1, %v1789_v46, %v1772_v27  ;;  %v1850_v51 = vsel %vm453_vm1, %v1849_v57, %v1832_v22  ;;  %v1793_v21 = vrot.slane %v1788_v0, 4 }
 0x387   :  { %2448 = vmatpush.msrb.mxu2 %v1790_v28  ;;  %2505 = vmatpush.msra.mxu0 %v1850_v51  ;;  %v1796_v59 = vsel %vm453_vm1, %v1788_v0, %v1795_v44 }
 0x388   :  { %2535 = vmatpush.msrb.mxu1 %v1796_v59  ;;  %v1794_v50 = vsel %vm453_vm1, %v1793_v21, %v1776_v61 }
 0x389   :  { %v4124_v31 = vpop.eup %4123  ;;  %2506 = vmatpush.msra.mxu0 %v1794_v50 }
 0x38a   :  { %v2301_v26 = vmul.f32 %v4124_v31, %v5314_v37  ;;  %v2236_v34 = vpop.xlane.xlu2 %2235 }
 0x38c   :  { %3980 = vmatmul.msk.f32.vlgmr.msra.gmra.mxu1 %vm2134_vm3, %v2301_v26 }
 0x38e   :  { %v2233_v55 = vpop.xlane.xlu0 %2232 }
 0x38f   :  { %4125 = vrcp.f32 %v2233_v55 }
 0x390   :  { %4127 = vrcp.f32 %v2236_v34 }
 0x392   :  { %v2263_v40 = vpop.xlane.xlu2 %2262 }
 0x395   :  { %v4126_v24 = vpop.eup %4125 }
 0x396   :  { %v2295_v27 = vmul.f32 %v4126_v24, %v5325_v2  ;;  %v4128_v39 = vpop.eup %4127 }
 0x397   :  { %v2296_v49 = vmul.f32 %v4128_v39, %v5320_v56 }
 0x398   :  { %3974 = vmatmul.msk.f32.vlgmr.msra.gmra.mxu2 %vm2134_vm3, %v2295_v27 }
 0x39a   :  { %v2239_v11 = vpop.xlane.xlu1 %2238  ;;  %v2269_v52 = vpop.xlane.xlu2 %2268 }
 0x39b   :  { %4129 = vrcp.f32 %v2239_v11 }
 0x3a0   :  { %3975 = vmatmul.msk.f32.gmra.mxu2 %vm2134_vm3, %v2296_v49 }
 0x3a1   :  { %v4130_v20 = vpop.eup %4129 }
 0x3a2   :  { %v2245_v37 = vpop.xlane.xlu1 %2244  ;;  %v2297_v41 = vmul.f32 %v4130_v20, %v5339_v9 }
 0x3a3   :  { %v2242_v60 = vpop.xlane.xlu0 %2241 }
 0x3a4   :  { %4131 = vrcp.f32 %v2242_v60  ;;  %3976 = vmatmul.msk.f32.vlgmr.msrb.gmra.mxu3 %vm2134_vm3, %v2297_v41 }
 0x3a5   :  { %4133 = vrcp.f32 %v2245_v37 }
 0x3a6   :  { %4135 = vrcp.f32 %v2263_v40 }
 0x3aa   :  { %v4132_v2 = vpop.eup %4131  ;;  %v2254_v22 = vpop.xlane.xlu1 %2253 }
 0x3ab   :  { %v4134_v12 = vpop.eup %4133  ;;  %v2248_v14 = vpop.xlane.xlu0 %2247  ;;  %4137 = vrcp.f32 %v2254_v22  ;;  %v2298_v56 = vmul.f32 %v4132_v2, %v5351_v13 }
 0x3ac   :  { %v2299_v1 = vmul.f32 %v4134_v12, %v5347_v58  ;;  %4139 = vrcp.f32 %v2248_v14  ;;  %v4136_v9 = vpop.eup %4135  ;;  %v2278_v58 = vpop.xlane.xlu2 %2277 }
 0x3ad   :  { %3977 = vmatmul.msk.f32.gmra.mxu3 %vm2134_vm3, %v2298_v56  ;;  %4141 = vrcp.f32 %v2269_v52  ;;  %v2305_v25 = vmul.f32 %v4136_v9, %v5329_v45 }
 0x3ae   :  { %3978 = vmatmul.msk.f32.vlgmr.msrb.gmra.mxu0 %vm2134_vm3, %v2299_v1 }
 0x3b1   :  { %v4138_v35 = vpop.eup %4137 }
 0x3b2   :  { %v4140_v54 = vpop.eup %4139  ;;  %v2257_v62 = vpop.xlane.xlu1 %2256  ;;  %v2302_v36 = vmul.f32 %v4138_v35, %v5364_v3 }
 0x3b3   :  { %v2275_v29 = vpop.xlane.xlu0 %2274  ;;  %4143 = vrcp.f32 %v2257_v62  ;;  %v2300_v13 = vmul.f32 %v4140_v54, %v5368_v48  ;;  %v4142_v19 = vpop.eup %4141 }
 0x3b4   :  { %4145 = vrcp.f32 %v2275_v29  ;;  %3981 = vmatmul.msk.f32.gmra.mxu1 %vm2134_vm3, %v2302_v36  ;;  %v2307_v61 = vmul.f32 %v4142_v19, %v5336_v16 }
 0x3b5   :  { %3984 = vmatmul.msk.f32.vlgmr.msra.gmra.mxu3 %vm2134_vm3, %v2305_v25  ;;  %4147 = vrcp.f32 %v2278_v58 }
 0x3b6   :  { %3979 = vmatmul.msk.f32.gmra.mxu0 %vm2134_vm3, %v2300_v13 }
 0x3b9   :  { %v4144_v18 = vpop.eup %4143 }
 0x3ba   :  { %v4146_v63 = vpop.eup %4145  ;;  %v2303_v3 = vmul.f32 %v4144_v18, %v5386_v23 }
 0x3bb   :  { %v2309_v45 = vmul.f32 %v4146_v63, %v5389_v32  ;;  %v2260_v30 = vpop.xlane.xlu0 %2259  ;;  %v4148_v48 = vpop.eup %4147 }
 0x3bc   :  { %4149 = vrcp.f32 %v2260_v30  ;;  %3982 = vmatmul.msk.f32.vlgmr.msrb.gmra.mxu2 %vm2134_vm3, %v2303_v3  ;;  %v2310_v15 = vmul.f32 %v4148_v48, %v5349_v38 }
 0x3bd   :  { %3988 = vmatmul.msk.f32.vlgmr.msrb.gmra.mxu1 %vm2134_vm3, %v2309_v45 }
 0x3be   :  { %3986 = vmatmul.msk.f32.vlgmr.msra.gmra.mxu0 %vm2134_vm3, %v2307_v61 }
 0x3c2   :  { %v4150_v10 = vpop.eup %4149 }
 0x3c3   :  { %v2304_v47 = vmul.f32 %v4150_v10, %v5409_v17 }
 0x3c5   :  { %3983 = vmatmul.msk.f32.gmra.mxu2 %vm2134_vm3, %v2304_v47  ;;  %3989 = vmatmul.msk.f32.gmra.mxu1 %vm2134_vm3, %v2310_v15 }
 0x3d0   :  { %v2266_v23 = vpop.xlane.xlu1 %2265 }
 0x3d1   :  { %4151 = vrcp.f32 %v2266_v23 }
 0x3d7   :  { %v4152_v16 = vpop.eup %4151 }
 0x3d8   :  { %v2272_v32 = vpop.xlane.xlu1 %2271  ;;  %v2306_v46 = vmul.f32 %v4152_v16, %v5471_v43 }
 0x3d9   :  { %4153 = vrcp.f32 %v2272_v32 }
 0x3da   :  { %3985 = vmatmul.msk.f32.gmra.mxu3 %vm2134_vm3, %v2306_v46 }
 0x3df   :  { %v4154_v57 = vpop.eup %4153 }
 0x3e0   :  { %v2308_v0 = vmul.f32 %v4154_v57, %v5445_v42 }
 0x3e2   :  { %3987 = vmatmul.msk.f32.gmra.mxu0 %vm2134_vm3, %v2308_v0 }
 0x409   :  { %v2421_v17 = vpop.f32.mrf.mxu1 }
 0x40a   :  { %v2555_v28 = vrot.slane %v2421_v17, 4 }
 0x41b   :  { %v2334_v38 = vpop.f32.mrf.mxu2 }
 0x41c   :  { %v2545_v59 = vrot.slane %v2334_v38, 4 }
 0x423   :  { %v2337_v56 = vpop.f32.mrf.mxu2 }
 0x424   :  { %v2601_v58 = vrot.slane %v2337_v56, 4 }
 0x427   :  { %v2363_v44 = vpop.f32.mrf.mxu3 }
 0x428   :  { %v2557_v51 = vrot.slane %v2363_v44, 4  ;;  %v2556_v21 = vsel %vm453_vm1, %v2555_v28, %v2363_v44 }
 0x429   :  { %v2562_v34 = vperm.slane %v2556_v21, %v4599_v33 }
 0x42a   :  { %v2558_v31 = vsel %vm453_vm1, %v2421_v17, %v2557_v51 }
 0x42b   :  { %v2392_v50 = vpop.f32.mrf.mxu0  ;;  %v2566_v43 = vperm.slane %v2558_v31, %v4599_v33  ;;  %v2567_v37 = vrot.slane %v2562_v34, 4 }
 0x42c   :  { %v2543_v26 = vrot.slane %v2392_v50, 4  ;;  %v2546_v55 = vsel %vm453_vm1, %v2392_v50, %v2545_v59 }
 0x42d   :  { %v2554_v42 = vperm.slane %v2546_v55, %v4599_v33  ;;  %v2579_v24 = vrot.slane %v2566_v43, 4 }
 0x42e   :  { %v2544_v27 = vsel %vm453_vm1, %v2543_v26, %v2334_v38 }
 0x42f   :  { %v2550_v11 = vperm.slane %v2544_v27, %v4599_v33  ;;  %v2581_v49 = vrot.slane %v2554_v42, 4  ;;  %v2580_v41 = vsel %vm453_vm1, %v2579_v24, %v2554_v42 }
 0x430   :  { %v2366_v39 = vpop.f32.mrf.mxu3  ;;  %v2586_v12 = vperm.slane %v2580_v41, %v4607_v53 }
 0x431   :  { %v2424_v20 = vpop.f32.mrf.mxu1  ;;  %v2569_v40 = vrot.slane %v2550_v11, 4  ;;  %v2568_v2 = vsel %vm453_vm1, %v2567_v37, %v2550_v11  ;;  %v2582_v22 = vsel %vm453_vm1, %v2566_v43, %v2581_v49  ;;  %v2613_v61 = vrot.slane %v2366_v39, 4 }
 0x432   :  { %v2574_v1 = vperm.slane %v2568_v2, %v4607_v53  ;;  %v2590_v52 = vperm.slane %v2582_v22, %v4607_v53  ;;  %v2595_v54 = vrot.slane %v2586_v12, 4  ;;  %v2611_v18 = vrot.slane %v2424_v20, 4 }
 0x433   :  { %v2395_v60 = vpop.f32.mrf.mxu0  ;;  %v2570_v14 = vsel %vm453_vm1, %v2562_v34, %v2569_v40  ;;  %v2614_v59 = vsel %vm453_vm1, %v2424_v20, %v2613_v61 }
 0x434   :  { %v2578_v35 = vperm.slane %v2570_v14, %v4607_v53  ;;  %v2591_v25 = vrot.slane %v2574_v1, 4  ;;  %v2597_v19 = vrot.slane %v2590_v52, 4  ;;  %v2596_v3 = vsel %vm453_vm1, 0.0, %v2595_v54 }
 0x435   :  { %v2599_v45 = vrot.slane %v2395_v60, 4  ;;  %v2602_v15 = vsel %vm453_vm1, %v2395_v60, %v2601_v58  ;;  %v2823_v46 = vrot.slane %v2596_v3, 4  ;;  %v2612_v57 = vsel %vm453_vm1, %v2611_v18, %v2366_v39 }
 0x436   :  { %v2593_v63 = vrot.slane %v2578_v35, 4  ;;  %v2592_v47 = vsel %vm453_vm1, 0.0, %v2591_v25  ;;  %v2598_v32 = vsel %vm453_vm1, 0.0, %v2597_v19  ;;  %v5712_v51 = vperm.slane %v2602_v15, %v4599_v33 }
 0x437   :  { %v2600_v38 = vsel %vm453_vm1, %v2599_v45, %v2337_v56  ;;  %v2767_v28 = vrot.slane %v2592_v47, 4  ;;  %v2835_v31 = vrot.slane %v2598_v32, 4  ;;  %v2618_v50 = vperm.slane %v2612_v57, %v4599_v33 }
 0x438   :  { %v2479_v9 = vpop.f32.mrf.mxu3  ;;  %v2594_v17 = vsel %vm453_vm1, 0.0, %v2593_v63  ;;  %v5718_v42 = vsel %vm453_vm1, %v2823_v46, %v2586_v12  ;;  %v2606_v34 = vperm.slane %v2600_v38, %v4599_v33  ;;  %v2637_v20 = vrot.slane %v5712_v51, 4 }
 0x439   :  { %v2669_v62 = vrot.slane %v2479_v9, 4  ;;  %v2779_v55 = vrot.slane %v2594_v17, 4  ;;  %v2622_v37 = vperm.slane %v2614_v59, %v4599_v33  ;;  %v2768_v41 = vsel %vm453_vm1, %v2767_v28, %v2574_v1 }
 0x43a   :  { %v2537_v36 = vpop.f32.mrf.mxu1  ;;  %v2623_v60 = vrot.slane %v2618_v50, 4  ;;  %v2772_v1 = vperm.slane %v2768_v41, %v4599_v33 }
 0x43b   :  { %v2508_v29 = vpop.f32.mrf.mxu0  ;;  %v2667_v13 = vrot.slane %v2537_v36, 4  ;;  %v2670_v10 = vsel %vm453_vm1, %v2537_v36, %v2669_v62  ;;  %v2780_v54 = vsel %vm453_vm1, %v2779_v55, %v2578_v35  ;;  %v2836_v62 = vsel %vm453_vm1, %v2835_v31, %v2590_v52 }
 0x43c   :  { %v2655_v48 = vrot.slane %v2508_v29, 4  ;;  %v2678_v44 = vperm.slane %v2670_v10, %v4599_v33  ;;  %v2625_v36 = vrot.slane %v2606_v34, 4  ;;  %v2635_v18 = vrot.slane %v2622_v37, 4 }
 0x43d   :  { %v2668_v30 = vsel %vm453_vm1, %v2667_v13, %v2479_v9  ;;  %v2638_v63 = vsel %vm453_vm1, %v2622_v37, %v2637_v20  ;;  %v2784_v45 = vperm.slane %v2780_v54, %v4599_v33  ;;  %v2624_v35 = vsel %vm453_vm1, %v2623_v60, %v2606_v34 }
 0x43e   :  { %v2674_v23 = vperm.slane %v2668_v30, %v4599_v33  ;;  %v2691_v27 = vrot.slane %v2678_v44, 4  ;;  %v2840_v15 = vperm.slane %v2836_v62, %v4599_v33  ;;  %v2793_v46 = vrot.slane %v2772_v1, 4 }
 0x43f   :  { %v2450_v16 = vpop.f32.mrf.mxu2  ;;  %v2805_v17 = vrot.slane %v2784_v45, 4  ;;  %v5754_v31 = vperm.slane %v2624_v35, %v4607_v53 }
 0x440   :  { %v2656_v0 = vsel %vm453_vm1, %v2655_v48, %v2450_v16  ;;  %v2657_v21 = vrot.slane %v2450_v16, 4  ;;  %v2679_v43 = vrot.slane %v2674_v23, 4 }
 0x441   :  { %v2662_v26 = vperm.slane %v2656_v0, %v4599_v33 }
 0x442   :  { %v2658_v24 = vsel %vm453_vm1, %v2508_v29, %v2657_v21 }
 0x443   :  { %v2666_v11 = vperm.slane %v2658_v24, %v4599_v33  ;;  %v2680_v39 = vsel %vm453_vm1, %v2679_v43, %v2662_v26  ;;  %v2681_v49 = vrot.slane %v2662_v26, 4  ;;  %v2861_v26 = vrot.slane %v2840_v15, 4 }
 0x444   :  { %v2686_v40 = vperm.slane %v2680_v39, %v4607_v53 }
 0x445   :  { %v2682_v2 = vsel %vm453_vm1, %v2674_v23, %v2681_v49  ;;  %v2692_v22 = vsel %vm453_vm1, %v2691_v27, %v2666_v11  ;;  %v2693_v12 = vrot.slane %v2666_v11, 4  ;;  %v2626_v23 = vsel %vm453_vm1, %v2618_v50, %v2625_v36 }
 0x446   :  { %v2690_v14 = vperm.slane %v2682_v2, %v4607_v53  ;;  %v2698_v56 = vperm.slane %v2692_v22, %v4607_v53  ;;  %v2703_v9 = vrot.slane %v2686_v40, 4  ;;  %v2636_v11 = vsel %vm453_vm1, %v2635_v18, %v5712_v51 }
 0x447   :  { %v2694_v25 = vsel %vm453_vm1, %v2678_v44, %v2693_v12 }
 0x448   :  { %v2702_v29 = vperm.slane %v2694_v25, %v4607_v53  ;;  %v2704_v13 = vsel %vm453_vm1, 0.0, %v2703_v9  ;;  %v2705_v58 = vrot.slane %v2690_v14, 4  ;;  %v2707_v19 = vrot.slane %v2698_v56, 4  ;;  %v2453_v35 = vpop.f32.mrf.mxu2 }
 0x449   :  { %v2773_v3 = vrot.slane %v2704_v13, 4  ;;  %v2646_v13 = vperm.slane %v2638_v63, %v4607_v53 }
 0x44a   :  { %v2706_v52 = vsel %vm453_vm1, 0.0, %v2705_v58  ;;  %v2708_v30 = vsel %vm453_vm1, 0.0, %v2707_v19  ;;  %v2709_v61 = vrot.slane %v2702_v29, 4  ;;  %v2647_v58 = vrot.slane %v5754_v31, 4  ;;  %v2540_v19 = vpop.f32.mrf.mxu1 }
 0x44b   :  { %v2774_v48 = vsel %vm453_vm1, %v2773_v3, %v2686_v40  ;;  %v2785_v10 = vrot.slane %v2706_v52, 4  ;;  %v2829_v47 = vrot.slane %v2708_v30, 4  ;;  %v2828_v40 = vperm.slane %v5718_v42, %v4599_v33 }
 0x44c   :  { %v2710_v16 = vsel %vm453_vm1, 0.0, %v2709_v61  ;;  %v2778_v32 = vperm.slane %v2774_v48, %v4599_v33  ;;  %v2723_v48 = vrot.slane %v2540_v19, 4  ;;  %v2653_v63 = vrot.slane %v2646_v13, 4 }
 0x44d   :  { %v2841_v57 = vrot.slane %v2710_v16, 4  ;;  %v2786_v0 = vsel %vm453_vm1, %v2785_v10, %v2690_v14  ;;  %v2830_v38 = vsel %vm453_vm1, %v2829_v47, %v2698_v56  ;;  %v5777_v14 = vperm.slane %v2626_v23, %v4607_v53 }
 0x44e   :  { %v2790_v44 = vperm.slane %v2786_v0, %v4599_v33  ;;  %v2794_v28 = vsel %vm453_vm1, %v2778_v32, %v2793_v46  ;;  %v2791_v59 = vrot.slane %v2778_v32, 4  ;;  %v2834_v21 = vperm.slane %v2830_v38, %v4599_v33 }
 0x44f   :  { %v2802_v50 = vperm.slane %v2794_v28, %v4607_v53  ;;  %v2842_v43 = vsel %vm453_vm1, %v2841_v57, %v2702_v29  ;;  %v5780_v56 = vperm.slane %v2636_v11, %v4607_v53  ;;  %v2649_v18 = vrot.slane %v5777_v14, 4 }
 0x450   :  { %v2806_v55 = vsel %vm453_vm1, %v2790_v44, %v2805_v17  ;;  %v2792_v34 = vsel %vm453_vm1, %v2791_v59, %v2772_v1  ;;  %v2803_v24 = vrot.slane %v2790_v44, 4  ;;  %v2846_v27 = vperm.slane %v2842_v43, %v4599_v33 }
 0x451   :  { %v2814_v39 = vperm.slane %v2806_v55, %v4607_v53  ;;  %v2821_v49 = vrot.slane %v2802_v50, 4  ;;  %v5765_v20 = vperm.slane %v2792_v34, %v4607_v53  ;;  %v2847_v60 = vrot.slane %v2834_v21, 4 }
 0x452   :  { %v2804_v37 = vsel %vm453_vm1, %v2803_v24, %v2784_v45  ;;  %v2862_v41 = vsel %vm453_vm1, %v2846_v27, %v2861_v26  ;;  %v2859_v9 = vrot.slane %v2846_v27, 4  ;;  %v2849_v1 = vrot.slane %v2828_v40, 4 }
 0x453   :  { %v2822_v2 = vsel %vm453_vm1, %v2814_v39, %v2821_v49  ;;  %v2819_v22 = vrot.slane %v2814_v39, 4  ;;  %v5773_v12 = vperm.slane %v2804_v37, %v4607_v53  ;;  %v2817_v51 = vrot.slane %v5765_v20, 4 }
 0x454   :  { %3027 = vrot.lane.b32.xlu1 %v2822_v2, %s4370_s8  ;;  %v2848_v42 = vsel %vm453_vm1, %v2847_v60, %v2828_v40  ;;  %v2870_v36 = vperm.slane %v2862_v41, %v4607_v53  ;;  %v2860_v29 = vsel %vm453_vm1, %v2859_v9, %v2840_v15  ;;  %v2850_v3 = vsel %vm453_vm1, %v2834_v21, %v2849_v1 }
 0x455   :  { %v2820_v54 = vsel %vm453_vm1, %v2819_v22, %v2802_v50  ;;  %v2818_v62 = vsel %vm453_vm1, %v5773_v12, %v2817_v51  ;;  %v5789_v25 = vperm.slane %v2848_v42, %v4607_v53  ;;  %v2651_v45 = vrot.slane %v5780_v56, 4 }
 0x456   :  { %3011 = vrot.lane.b32.xlu2 %v2820_v54, %s4371_s9  ;;  %2995 = vrot.lane.b32.xlu0 %v2818_v62, %s4358_s12  ;;  %v2875_v52 = vrot.slane %v2870_v36, 4  ;;  %v5800_v30 = vperm.slane %v2860_v29, %v4607_v53  ;;  %v2648_v10 = vsel %vm453_vm1, 0.0, %v2647_v58  ;;  %v2858_v15 = vperm.slane %v2850_v3, %v4607_v53 }
 0x457   :  { %v2873_v61 = vrot.slane %v5789_v25, 4  ;;  %v2650_v23 = vsel %vm453_vm1, 0.0, %v2649_v18  ;;  %v2713_v16 = vrot.slane %v2453_v35, 4  ;;  %v2652_v57 = vsel %vm453_vm1, 0.0, %v2651_v45 }
 0x458   :  { %v2876_v17 = vsel %vm453_vm1, %v2875_v52, %v2858_v15  ;;  %v2879_v28 = vrot.slane %v2648_v10, 4  ;;  %v2654_v43 = vsel %vm453_vm1, 0.0, %v2653_v63  ;;  %v2891_v34 = vrot.slane %v2650_v23, 4 }
 0x459   :  { %v2874_v38 = vsel %vm453_vm1, %v5800_v30, %v2873_v61  ;;  %v2935_v24 = vrot.slane %v2652_v57, 4  ;;  %v2877_v11 = vrot.slane %v2858_v15, 4  ;;  %v2947_v41 = vrot.slane %v2654_v43, 4 }
 0x45a   :  { %v2880_v60 = vsel %vm453_vm1, %v2879_v28, %v5754_v31  ;;  %v2892_v1 = vsel %vm453_vm1, %v2891_v34, %v5777_v14 }
 0x45b   :  { %v2936_v29 = vsel %vm453_vm1, %v2935_v24, %v5780_v56  ;;  %v2878_v58 = vsel %vm453_vm1, %v2870_v36, %v2877_v11  ;;  %v2884_v52 = vperm.slane %v2880_v60, %v4599_v33  ;;  %v2896_v14 = vperm.slane %v2892_v1, %v4599_v33 }
 0x45c   :  { %v2940_v15 = vperm.slane %v2936_v29, %v4599_v33 }
 0x45d   :  { %v2482_v47 = vpop.f32.mrf.mxu3  ;;  %v2917_v28 = vrot.slane %v2896_v14, 4 }
 0x45e   :  { %v2724_v32 = vsel %vm453_vm1, %v2723_v48, %v2482_v47  ;;  %v2725_v46 = vrot.slane %v2482_v47, 4  ;;  %3013 = vrot.lane.b32.xlu2 %v2876_v17, %s4371_s9  ;;  %2997 = vrot.lane.b32.xlu0 %v2874_v38, %s4358_s12 }
 0x45f   :  { %v2730_v0 = vperm.slane %v2724_v32, %v4599_v33  ;;  %v2511_v44 = vpop.f32.mrf.mxu0 }
 0x460   :  { %v2726_v59 = vsel %vm453_vm1, %v2540_v19, %v2725_v46  ;;  %v2711_v21 = vrot.slane %v2511_v44, 4  ;;  %v2714_v50 = vsel %vm453_vm1, %v2511_v44, %v2713_v16 }
 0x461   :  { %v2734_v26 = vperm.slane %v2726_v59, %v4599_v33  ;;  %v2722_v55 = vperm.slane %v2714_v50, %v4599_v33  ;;  %v2735_v39 = vrot.slane %v2730_v0, 4  ;;  %v2961_v59 = vrot.slane %v2940_v15, 4 }
 0x462   :  { %v2712_v27 = vsel %vm453_vm1, %v2711_v21, %v2453_v35  ;;  %v2948_v35 = vsel %vm453_vm1, %v2947_v41, %v2646_v13 }
 0x463   :  { %v2747_v49 = vrot.slane %v2734_v26, 4  ;;  %v2718_v37 = vperm.slane %v2712_v27, %v4599_v33  ;;  %v2749_v40 = vrot.slane %v2722_v55, 4  ;;  %v2952_v38 = vperm.slane %v2948_v35, %v4599_v33 }
 0x465   :  { %v2736_v2 = vsel %vm453_vm1, %v2735_v39, %v2718_v37  ;;  %v2737_v22 = vrot.slane %v2718_v37, 4  ;;  %v2748_v51 = vsel %vm453_vm1, %v2747_v49, %v2722_v55  ;;  %v2750_v42 = vsel %vm453_vm1, %v2734_v26, %v2749_v40 }
 0x466   :  { %v2742_v9 = vperm.slane %v2736_v2, %v4607_v53  ;;  %v2754_v54 = vperm.slane %v2748_v51, %v4607_v53  ;;  %v2758_v62 = vperm.slane %v2750_v42, %v4607_v53  ;;  %3029 = vrot.lane.b32.xlu0 %v2878_v58, %s4370_s8  ;;  %v2815_v55 = vrot.slane %v5773_v12, 4 }
 0x467   :  { %v2738_v31 = vsel %vm453_vm1, %v2730_v0, %v2737_v22  ;;  %v2905_v0 = vrot.slane %v2884_v52, 4  ;;  %v2973_v37 = vrot.slane %v2952_v38, 4  ;;  %v2871_v40 = vrot.slane %v5800_v30, 4 }
 0x468   :  { %v2746_v19 = vperm.slane %v2738_v31, %v4607_v53  ;;  %v2759_v18 = vrot.slane %v2742_v9, 4  ;;  %v2763_v3 = vrot.slane %v2754_v54, 4  ;;  %v2765_v45 = vrot.slane %v2758_v62, 4 }
 0x46a   :  { %v2760_v61 = vsel %vm453_vm1, 0.0, %v2759_v18  ;;  %v2761_v56 = vrot.slane %v2746_v19, 4  ;;  %v2764_v48 = vsel %vm453_vm1, 0.0, %v2763_v3  ;;  %v2766_v36 = vsel %vm453_vm1, 0.0, %v2765_v45 }
 0x46b   :  { %v2885_v10 = vrot.slane %v2760_v61, 4  ;;  %v2941_v63 = vrot.slane %v2764_v48, 4  ;;  %v2953_v47 = vrot.slane %v2766_v36, 4  ;;  %v2872_v18 = vsel %vm453_vm1, %v2871_v40, %v5789_v25  ;;  %v5906_v40 = vld [vmem:[#allocation11] sm:$0xff] }
 0x46c   :  { %v2762_v23 = vsel %vm453_vm1, 0.0, %v2761_v56 }
 0x46d   :  { %v2942_v13 = vsel %vm453_vm1, %v2941_v63, %v2754_v54  ;;  %v2886_v16 = vsel %vm453_vm1, %v2885_v10, %v2742_v9  ;;  %v2897_v32 = vrot.slane %v2762_v23, 4  ;;  %v2954_v46 = vsel %vm453_vm1, %v2953_v47, %v2758_v62  ;;  %v3055_v63 = vld [vmem:[#allocation8 + $0x18] sm:$0xff]  ;;  %v3054_v47 = vld [vmem:[#allocation8 + $0x10] sm:$0xff] }
 0x46e   :  { %v2890_v57 = vperm.slane %v2886_v16, %v4599_v33  ;;  %v2946_v17 = vperm.slane %v2942_v13, %v4599_v33  ;;  %v2958_v26 = vperm.slane %v2954_v46, %v4599_v33  ;;  %3081 = vmatpush.msra.mxu2 %v3055_v63  ;;  %v6341_v63 = vld [vmem:[#allocation24_spill] sm:$0xff] }
 0x46f   :  { %v2898_v44 = vsel %vm453_vm1, %v2897_v32, %v2746_v19  ;;  %v2816_v19 = vsel %vm453_vm1, %v2815_v55, %v5765_v20 }
 0x470   :  { %v2902_v21 = vperm.slane %v2898_v44, %v4599_v33  ;;  %v2906_v50 = vsel %vm453_vm1, %v2890_v57, %v2905_v0  ;;  %v2903_v43 = vrot.slane %v2890_v57, 4  ;;  %v2962_v24 = vsel %vm453_vm1, %v2946_v17, %v2961_v59  ;;  %3082 = vmatpush.msra.mxu2 %v3054_v47 }
 0x471   :  { %v2914_v34 = vperm.slane %v2906_v50, %v4607_v53  ;;  %v2959_v27 = vrot.slane %v2946_v17, 4  ;;  %v2970_v2 = vperm.slane %v2962_v24, %v4607_v53  ;;  %v2974_v22 = vsel %vm453_vm1, %v2958_v26, %v2973_v37 }
 0x472   :  { %v2918_v11 = vsel %vm453_vm1, %v2902_v21, %v2917_v28  ;;  %v2904_v39 = vsel %vm453_vm1, %v2903_v43, %v2884_v52  ;;  %v2915_v49 = vrot.slane %v2902_v21, 4  ;;  %v2971_v30 = vrot.slane %v2958_v26, 4 }
 0x473   :  { %v2926_v41 = vperm.slane %v2918_v11, %v4607_v53  ;;  %v2933_v60 = vrot.slane %v2914_v34, 4  ;;  %v2910_v33 = vperm.slane %v2904_v39, %v4607_v53  ;;  %v2960_v51 = vsel %vm453_vm1, %v2959_v27, %v2940_v15  ;;  %v3052_v15 = vld [vmem:[#allocation8] sm:$0xff] }
 0x474   :  { %v2916_v12 = vsel %vm453_vm1, %v2915_v49, %v2896_v14  ;;  %v2982_v31 = vperm.slane %v2974_v22, %v4607_v53  ;;  %v2966_v58 = vperm.slane %v2960_v51, %v4607_v53  ;;  %v2989_v3 = vrot.slane %v2970_v2, 4 }
 0x475   :  { %v2934_v42 = vsel %vm453_vm1, %v2926_v41, %v2933_v60  ;;  %v2931_v9 = vrot.slane %v2926_v41, 4  ;;  %v2922_v54 = vperm.slane %v2916_v12, %v4607_v53  ;;  %v2929_v62 = vrot.slane %v2910_v33, 4 }
 0x476   :  { %3031 = vrot.lane.b32.xlu0 %v2934_v42, %s4370_s8  ;;  %v2972_v45 = vsel %vm453_vm1, %v2971_v30, %v2952_v38  ;;  %v2987_v35 = vrot.slane %v2982_v31, 4  ;;  %v2985_v52 = vrot.slane %v2966_v58, 4  ;;  %v2990_v14 = vsel %vm453_vm1, %v2982_v31, %v2989_v3  ;;  %v6336_v31 = vld [vmem:[#allocation19_spill] sm:$0xff]  ;;  %v6338_v3 = vld [vmem:[#allocation21_spill] sm:$0xff] }
 0x477   :  { %v2932_v1 = vsel %vm453_vm1, %v2931_v9, %v2914_v34  ;;  %v2930_v29 = vsel %vm453_vm1, %v2922_v54, %v2929_v62  ;;  %v2978_v61 = vperm.slane %v2972_v45, %v4607_v53  ;;  %v2927_v25 = vrot.slane %v2922_v54, 4  ;;  %v3053_v53 = vld [vmem:[#allocation8 + $0x8] sm:$0xff] }
 0x478   :  { %3015 = vrot.lane.b32.xlu2 %v2932_v1, %s4371_s9  ;;  %2999 = vrot.lane.b32.xlu1 %v2930_v29, %s4358_s12  ;;  %v2988_v56 = vsel %vm453_vm1, %v2987_v35, %v2970_v2  ;;  %v3056_v41 = vperm.slane %v5906_v40, 3 }
 0x479   :  { %v2986_v48 = vsel %vm453_vm1, %v2978_v61, %v2985_v52  ;;  %v2983_v20 = vrot.slane %v2978_v61, 4  ;;  %v2928_v10 = vsel %vm453_vm1, %v2927_v25, %v2910_v33  ;;  %3083 = vmatpush.msra.mxu2 %v3053_v53  ;;  %v6342_v53 = vld [vmem:[#allocation25_spill] sm:$0xff] }
 0x47b   :  { %v2984_v36 = vsel %vm453_vm1, %v2983_v20, %v2966_v58  ;;  %3084 = vmatpush.msra.mxu2 %v3052_v15  ;;  %v6339_v20 = vld [vmem:[#allocation22_spill] sm:$0xff] }
 0x47e   :  { %3033 = vrot.lane.b32.xlu0 %v2990_v14, %s4370_s8 }
 0x480   :  { %3017 = vrot.lane.b32.xlu2 %v2988_v56, %s4371_s9  ;;  %3001 = vrot.lane.b32.xlu1 %v2986_v48, %s4358_s12 }
 0x4b0   :  { %v3012_v13 = vpop.permute.xlu2 %3011 }
 0x4b8   :  { %v3014_v38 = vpop.permute.xlu2 %3013 }
 0x4c6   :  { %v3028_v32 = vpop.permute.xlu1 %3027 }
 0x4c8   :  { %v2996_v23 = vpop.permute.xlu0 %2995 }
 0x4c9   :  { %v3039_v16 = vsel %vm1853_vm2, %v2816_v19, %v2996_v23  ;;  %v6337_v19 = vld [vmem:[#allocation20_spill] sm:$0xff] }
 0x4ca   :  { %v3043_v46 = vsel %vm2134_vm3, %v3039_v16, %v3012_v13 }
 0x4cb   :  { %v3048_v57 = vsel %vm3047_vm4, %v3043_v46, %v3028_v32 }
 0x4cc   :  { %3990 = vmatmul.msk.f32.vlgmr.msra.gmra.mxu2 %vm200_vm0, %v3048_v57  ;;  %v6343_v57 = vld [vmem:[#allocation26_spill] sm:$0xff] }
 0x4d0   :  { %v2998_v0 = vpop.permute.xlu0 %2997 }
 0x4d1   :  { %v3040_v17 = vsel %vm1853_vm2, %v2872_v18, %v2998_v0 }
 0x4d2   :  { %v3044_v28 = vsel %vm2134_vm3, %v3040_v17, %v3014_v38  ;;  %v3016_v21 = vpop.permute.xlu2 %3015  ;;  %v6344_v17 = vld [vmem:[#allocation27_spill] sm:$0xff] }
 0x4d8   :  { %v3030_v44 = vpop.permute.xlu0 %3029 }
 0x4d9   :  { %v3049_v59 = vsel %vm3047_vm4, %v3044_v28, %v3030_v44  ;;  %v6345_v44 = vld [vmem:[#allocation28_spill] sm:$0xff] }
 0x4da   :  { %3991 = vmatmul.msk.f32.gmra.mxu2 %vm200_vm0, %v3049_v59  ;;  %v3018_v27 = vpop.permute.xlu2 %3017  ;;  %v6346_v59 = vld [vmem:[#allocation29_spill] sm:$0xff] }
 0x4e8   :  { %v3032_v50 = vpop.permute.xlu0 %3031 }
 0x4ea   :  { %v3000_v43 = vpop.permute.xlu1 %2999 }
 0x4eb   :  { %v3041_v26 = vsel %vm1853_vm2, %v2928_v10, %v3000_v43 }
 0x4ec   :  { %v3045_v55 = vsel %vm2134_vm3, %v3041_v26, %v3016_v21 }
 0x4ed   :  { %v3050_v34 = vsel %vm3047_vm4, %v3045_v55, %v3032_v50 }
 0x4ee   :  { %3992 = vmatmul.msk.f32.gmra.mxu2 %vm200_vm0, %v3050_v34  ;;  %v4372_v34 = vmov 32.0  }
 0x4ef   :  { %4155 = vrcp.f32 %v4372_v34 }
 0x4f0   :  { %v3034_v39 = vpop.permute.xlu0 %3033 }
 0x4f2   :  { %v3002_v24 = vpop.permute.xlu1 %3001 }
 0x4f3   :  { %v3042_v11 = vsel %vm1853_vm2, %v2984_v36, %v3002_v24  ;;  %v6340_v36 = vld [vmem:[#allocation23_spill] sm:$0xff] }
 0x4f4   :  { %v3046_v49 = vsel %vm2134_vm3, %v3042_v11, %v3018_v27 }
 0x4f5   :  { %v3051_v37 = vsel %vm3047_vm4, %v3046_v49, %v3034_v39  ;;  %v4156_v24 = vpop.eup %4155 }
 0x4f6   :  { %3993 = vmatmul.msk.f32.gmra.mxu2 %vm200_vm0, %v3051_v37  ;;  %v3202_v27 = vmul.f32 32.0, %v4156_v24  ;;  %v4373_v37 = vmov 269488144   ;;  %vm3206_vm5 = vweird.f32 %v4156_v24 }
 0x4f8   :  { %v3203_v11 = vsub.f32 1.0, %v3202_v27 }
 0x4fa   :  { %v3204_v39 = vmul.f32 %v4156_v24, %v3203_v11 }
 0x4fc   :  { %v3205_v49 = vadd.f32 %v4156_v24, %v3204_v39 }
 0x54f   :  { %v3086_v60 = vpop.f32.mrf.mxu2 }
 0x550   :  { %v3087_v33 = vadd.f32 %v3086_v60, %v3056_v41  ;;  %v4374_v60 = vmov 842150450  }
 0x552   :  { %v3102_v12 = vrot.slane %v3087_v33, 2  ;;  %v3103_v2 = vrot.slane %v3087_v33, 4  ;;  %v3104_v22 = vrot.slane %v3087_v33, 6  ;;  %v5910_v51 = vadd.f32 %v3087_v33, %v4443_v4 }
 0x553   :  { %v3221_v33 = vunpack.c.l.s4 %v4374_v60 }
 0x554   :  { %v5913_v42 = vadd.f32 %v3102_v12, %v4445_v5  ;;  %v5916_v9 = vadd.f32 %v3103_v2, %v4447_v6  ;;  %v5919_v54 = vadd.f32 %v3104_v22, %v4449_v7  ;;  %3158 = vst [vmem:[#allocation1] ss:$4 sm:$0xff] %v5910_v51  ;;  %v4375_v12 = vmov 1414812756  }
 0x555   :  { %v3225_v2 = vunpack.c.l.s4 %v4375_v12  ;;  %v4376_v22 = vmov 1987475062  }
 0x556   :  { %3160 = vst [vmem:[#allocation1 + $0x1] ss:$4 sm:$0xff] %v5913_v42 }
 0x557   :  { %3162 = vst [vmem:[#allocation1 + $0x2] ss:$4 sm:$0xff] %v5916_v9 }
 0x558   :  { %3164 = vst [vmem:[#allocation1 + $0x3] ss:$4 sm:$0xff] %v5919_v54 }
 0x55d   :  { %v3089_v62 = vpop.f32.mrf.mxu2 }
 0x55e   :  { %v3090_v4 = vadd.f32 %v3089_v62, %v3056_v41  ;;  %v3229_v62 = vunpack.c.l.s4 %v4376_v22 }
 0x55f   :  { %v3173_v30 = vld.sshfl [vmem:[#allocation1] sm:$0xff pattern:$0x73625140] }
 0x560   :  { %v3105_v1 = vrot.slane %v3090_v4, 2  ;;  %v3106_v5 = vrot.slane %v3090_v4, 4  ;;  %v3107_v29 = vrot.slane %v3090_v4, 6  ;;  %v5926_v6 = vadd.f32 %v3090_v4, %v4455_v8 }
 0x561   :  { %v3189_v7 = vsel %vm200_vm0, %v3173_v30, 0.0  ;;  %v5977_v4 = vsel %vm3206_vm5, %v4156_v24, %v3205_v49  ;;  %vm3891_vm5 = vcmask 254976  }
 0x562   :  { %v5930_v58 = vadd.f32 %v3105_v1, %v6336_v31  ;;  %v5933_v18 = vadd.f32 %v3106_v5, %v6337_v19  ;;  %v5936_v45 = vadd.f32 %v3107_v29, %v6338_v3  ;;  %3166 = vst [vmem:[#allocation1 + $0x20] ss:$4 sm:$0xff] %v5926_v6  ;;  %3190 = vadd.xlane.f32.xlu1 %v3189_v7  ;;  %v5981_v1 = vunpack.c.0.s8 %v3221_v33 }
 0x563   :  { %v5983_v5 = vunpack.c.0.s8 %v3225_v2  ;;  %v5985_v29 = vunpack.c.0.s8 %v3229_v62 }
 0x564   :  { %3168 = vst [vmem:[#allocation1 + $0x21] ss:$4 sm:$0xff] %v5930_v58 }
 0x565   :  { %3170 = vst [vmem:[#allocation1 + $0x22] ss:$4 sm:$0xff] %v5933_v18 }
 0x566   :  { %3172 = vst [vmem:[#allocation1 + $0x23] ss:$4 sm:$0xff] %v5936_v45 }
 0x56d   :  { %v3174_v8 = vld.sshfl [vmem:[#allocation1 + $0x20] sm:$0xff pattern:$0x73625140] }
 0x56e   :  { %v3192_v35 = vsel %vm200_vm0, %v3174_v8, 0.0 }
 0x56f   :  { %3193 = vadd.xlane.f32.xlu2 %v3192_v35 }
 0x571   :  { %v3092_v52 = vpop.f32.mrf.mxu2 }
 0x572   :  { %v3093_v14 = vadd.f32 %v3092_v52, %v3056_v41 }
 0x574   :  { %v3108_v61 = vrot.slane %v3093_v14, 2  ;;  %v3109_v56 = vrot.slane %v3093_v14, 4  ;;  %v3110_v48 = vrot.slane %v3093_v14, 6  ;;  %v5944_v25 = vadd.f32 %v3093_v14, %v6339_v20 }
 0x576   :  { %v5947_v10 = vadd.f32 %v3108_v61, %v6340_v36  ;;  %v5950_v47 = vadd.f32 %v3109_v56, %v6341_v63  ;;  %v5953_v15 = vadd.f32 %v3110_v48, %v6342_v53  ;;  %3175 = vst [vmem:[#allocation1] ss:$4 sm:$0xff] %v5944_v25 }
 0x578   :  { %3176 = vst [vmem:[#allocation1 + $0x1] ss:$4 sm:$0xff] %v5947_v10 }
 0x579   :  { %3177 = vst [vmem:[#allocation1 + $0x2] ss:$4 sm:$0xff] %v5950_v47  ;;  %v3095_v23 = vpop.f32.mrf.mxu2 }
 0x57a   :  { %3178 = vst [vmem:[#allocation1 + $0x3] ss:$4 sm:$0xff] %v5953_v15  ;;  %v3096_v13 = vadd.f32 %v3095_v23, %v3056_v41  ;;  %v3217_v41 = vunpack.c.l.s4 %v4373_v37 }
 0x57c   :  { %v3111_v16 = vrot.slane %v3096_v13, 2  ;;  %v3112_v32 = vrot.slane %v3096_v13, 4  ;;  %v3113_v46 = vrot.slane %v3096_v13, 6  ;;  %v5960_v0 = vadd.f32 %v3096_v13, %v6343_v57 }
 0x57d   :  { %v5979_v30 = vunpack.c.0.s8 %v3217_v41 }
 0x57e   :  { %v5963_v38 = vadd.f32 %v3111_v16, %v6344_v17  ;;  %v5966_v28 = vadd.f32 %v3112_v32, %v6345_v44  ;;  %v5969_v21 = vadd.f32 %v3113_v46, %v6346_v59  ;;  %3179 = vst [vmem:[#allocation1 + $0x20] ss:$4 sm:$0xff] %v5960_v0 }
 0x580   :  { %3180 = vst [vmem:[#allocation1 + $0x21] ss:$4 sm:$0xff] %v5963_v38 }
 0x581   :  { %v3183_v50 = vld.sshfl [vmem:[#allocation1] sm:$0xff pattern:$0x73625140]  ;;  %3181 = vst [vmem:[#allocation1 + $0x22] ss:$4 sm:$0xff] %v5966_v28 }
 0x582   :  { %3182 = vst [vmem:[#allocation1 + $0x23] ss:$4 sm:$0xff] %v5969_v21  ;;  %v3195_v43 = vsel %vm200_vm0, %v3183_v50, 0.0 }
 0x583   :  { %3196 = vadd.xlane.f32.xlu0 %v3195_v43 }
 0x589   :  { %v3184_v26 = vld.sshfl [vmem:[#allocation1 + $0x20] sm:$0xff pattern:$0x73625140] }
 0x58a   :  { %v3198_v55 = vsel %vm200_vm0, %v3184_v26, 0.0 }
 0x58b   :  { %3199 = vadd.xlane.f32.xlu1 %v3198_v55 }
 0x5d5   :  { %v3191_v7 = vpop.xlane.xlu1 %3190 }
 0x5d6   :  { %v3208_v31 = vmul.f32 %v5977_v4, %v3191_v7 }
 0x5d8   :  { %v3219_v19 = vperm.slane %v3208_v31, %v5979_v30  ;;  %v3223_v3 = vperm.slane %v3208_v31, %v5981_v1  ;;  %v3227_v8 = vperm.slane %v3208_v31, %v5983_v5  ;;  %v3231_v35 = vperm.slane %v3208_v31, %v5985_v29 }
 0x5da   :  { %v5993_v52 = vsub.f32 %v5910_v51, %v3219_v19  ;;  %v5996_v14 = vsub.f32 %v5913_v42, %v3223_v3  ;;  %v5999_v61 = vsub.f32 %v5916_v9, %v3227_v8  ;;  %v6002_v56 = vsub.f32 %v5919_v54, %v3231_v35 }
 0x5dc   :  { %v3312_v48 = vmul.f32 %v5993_v52, %v5993_v52  ;;  %v3313_v20 = vmul.f32 %v5996_v14, %v5996_v14  ;;  %v3314_v36 = vmul.f32 %v5999_v61, %v5999_v61  ;;  %v3315_v51 = vmul.f32 %v6002_v56, %v6002_v56 }
 0x5de   :  { %3344 = vst [vmem:[#allocation1] ss:$4 sm:$0xff] %v3312_v48 }
 0x5df   :  { %3346 = vst [vmem:[#allocation1 + $0x1] ss:$4 sm:$0xff] %v3313_v20 }
 0x5e0   :  { %3348 = vst [vmem:[#allocation1 + $0x2] ss:$4 sm:$0xff] %v3314_v36 }
 0x5e1   :  { %3350 = vst [vmem:[#allocation1 + $0x3] ss:$4 sm:$0xff] %v3315_v51 }
 0x5e2   :  { %v3194_v42 = vpop.xlane.xlu2 %3193 }
 0x5e3   :  { %v3209_v9 = vmul.f32 %v5977_v4, %v3194_v42 }
 0x5e5   :  { %v3235_v54 = vperm.slane %v3209_v9, %v5979_v30  ;;  %v3239_v63 = vperm.slane %v3209_v9, %v5981_v1  ;;  %v3243_v53 = vperm.slane %v3209_v9, %v5983_v5  ;;  %v3247_v23 = vperm.slane %v3209_v9, %v5985_v29 }
 0x5e7   :  { %v6018_v13 = vsub.f32 %v5926_v6, %v3235_v54  ;;  %v6021_v16 = vsub.f32 %v5930_v58, %v3239_v63  ;;  %v6024_v32 = vsub.f32 %v5933_v18, %v3243_v53  ;;  %v6027_v46 = vsub.f32 %v5936_v45, %v3247_v23  ;;  %v3586_v53 = vld [vmem:[#allocation10 + $0x18] sm:$0xff]  ;;  %v3585_v23 = vld [vmem:[#allocation10 + $0x10] sm:$0xff] }
 0x5e8   :  { %v3359_v57 = vld.sshfl [vmem:[#allocation1] sm:$0xff pattern:$0x73625140]  ;;  %3651 = vmatpush.msrb.mxu3 %v3586_v53 }
 0x5e9   :  { %v3316_v17 = vmul.f32 %v6018_v13, %v6018_v13  ;;  %v3317_v44 = vmul.f32 %v6021_v16, %v6021_v16  ;;  %v3318_v6 = vmul.f32 %v6024_v32, %v6024_v32  ;;  %v3319_v58 = vmul.f32 %v6027_v46, %v6027_v46 }
 0x5ea   :  { %v3375_v59 = vsel %vm200_vm0, %v3359_v57, 0.0  ;;  %3652 = vmatpush.msrb.mxu3 %v3585_v23 }
 0x5eb   :  { %3352 = vst [vmem:[#allocation1 + $0x20] ss:$4 sm:$0xff] %v3316_v17  ;;  %3376 = vadd.xlane.f32.xlu2 %v3375_v59  ;;  %v4081_v17 = vpack.i.bf16 %v3585_v23, %v3586_v53  ;;  %v6098_v59 = vperm.slane %v5906_v40, 7 }
 0x5ec   :  { %3354 = vst [vmem:[#allocation1 + $0x21] ss:$4 sm:$0xff] %v3317_v44 }
 0x5ed   :  { %3356 = vst [vmem:[#allocation1 + $0x22] ss:$4 sm:$0xff] %v3318_v6  ;;  %v6095_v6 = vperm.slane %v5906_v40, 6 }
 0x5ee   :  { %3358 = vst [vmem:[#allocation1 + $0x23] ss:$4 sm:$0xff] %v3319_v58 }
 0x5f5   :  { %v3360_v45 = vld.sshfl [vmem:[#allocation1 + $0x20] sm:$0xff pattern:$0x73625140] }
 0x5f6   :  { %v3197_v18 = vpop.xlane.xlu0 %3196  ;;  %v3378_v43 = vsel %vm200_vm0, %v3360_v45, 0.0  ;;  %v6101_v45 = vrot.slane %v6095_v6, 2 }
 0x5f7   :  { %v3210_v50 = vmul.f32 %v5977_v4, %v3197_v18  ;;  %3379 = vadd.xlane.f32.xlu0 %v3378_v43  ;;  %v6107_v43 = vrot.slane %v6095_v6, 6 }
 0x5f9   :  { %v3251_v26 = vperm.slane %v3210_v50, %v5979_v30  ;;  %v3255_v55 = vperm.slane %v3210_v50, %v5981_v1  ;;  %v3259_v34 = vperm.slane %v3210_v50, %v5983_v5  ;;  %v3263_v24 = vperm.slane %v3210_v50, %v5985_v29 }
 0x5fa   :  { %v6104_v50 = vrot.slane %v6095_v6, 4 }
 0x5fb   :  { %v6045_v27 = vsub.f32 %v5944_v25, %v3251_v26  ;;  %v6048_v11 = vsub.f32 %v5947_v10, %v3255_v55  ;;  %v6051_v39 = vsub.f32 %v5950_v47, %v3259_v34  ;;  %v6054_v49 = vsub.f32 %v5953_v15, %v3263_v24 }
 0x5fd   :  { %v3320_v37 = vmul.f32 %v6045_v27, %v6045_v27  ;;  %v3321_v41 = vmul.f32 %v6048_v11, %v6048_v11  ;;  %v3322_v60 = vmul.f32 %v6051_v39, %v6051_v39  ;;  %v3323_v25 = vmul.f32 %v6054_v49, %v6054_v49 }
 0x5fe   :  { %v3200_v10 = vpop.xlane.xlu1 %3199 }
 0x5ff   :  { %3361 = vst [vmem:[#allocation1] ss:$4 sm:$0xff] %v3320_v37  ;;  %v3211_v47 = vmul.f32 %v5977_v4, %v3200_v10 }
 0x600   :  { %3362 = vst [vmem:[#allocation1 + $0x1] ss:$4 sm:$0xff] %v3321_v41 }
 0x601   :  { %3363 = vst [vmem:[#allocation1 + $0x2] ss:$4 sm:$0xff] %v3322_v60  ;;  %v3267_v15 = vperm.slane %v3211_v47, %v5979_v30  ;;  %v3271_v33 = vperm.slane %v3211_v47, %v5981_v1  ;;  %v3275_v12 = vperm.slane %v3211_v47, %v5983_v5  ;;  %v3279_v2 = vperm.slane %v3211_v47, %v5985_v29 }
 0x602   :  { %3364 = vst [vmem:[#allocation1 + $0x3] ss:$4 sm:$0xff] %v3323_v25  ;;  %v6114_v60 = vrot.slane %v6098_v59, 2  ;;  %v6117_v25 = vrot.slane %v6098_v59, 4 }
 0x603   :  { %v6070_v22 = vsub.f32 %v5960_v0, %v3267_v15  ;;  %v6073_v62 = vsub.f32 %v5963_v38, %v3271_v33  ;;  %v6076_v7 = vsub.f32 %v5966_v28, %v3275_v12  ;;  %v6079_v31 = vsub.f32 %v5969_v21, %v3279_v2 }
 0x604   :  { %v6124_v2 = vrot.slane %v6098_v59, 6 }
 0x605   :  { %v3324_v19 = vmul.f32 %v6070_v22, %v6070_v22  ;;  %v3325_v3 = vmul.f32 %v6073_v62, %v6073_v62  ;;  %v3326_v8 = vmul.f32 %v6076_v7, %v6076_v7  ;;  %v3327_v0 = vmul.f32 %v6079_v31, %v6079_v31 }
 0x607   :  { %3365 = vst [vmem:[#allocation1 + $0x20] ss:$4 sm:$0xff] %v3324_v19 }
 0x608   :  { %3366 = vst [vmem:[#allocation1 + $0x21] ss:$4 sm:$0xff] %v3325_v3 }
 0x609   :  { %3367 = vst [vmem:[#allocation1 + $0x22] ss:$4 sm:$0xff] %v3326_v8  ;;  %v3369_v38 = vld.sshfl [vmem:[#allocation1] sm:$0xff pattern:$0x73625140] }
 0x60a   :  { %3368 = vst [vmem:[#allocation1 + $0x23] ss:$4 sm:$0xff] %v3327_v0  ;;  %v3381_v28 = vsel %vm200_vm0, %v3369_v38, 0.0 }
 0x60b   :  { %3382 = vadd.xlane.f32.xlu1 %v3381_v28  ;;  %4082 = vrot.lane.b32.xlu0 %v4081_v17, %s4363_s4 }
 0x611   :  { %v3370_v21 = vld.sshfl [vmem:[#allocation1 + $0x20] sm:$0xff pattern:$0x73625140] }
 0x612   :  { %v3384_v35 = vsel %vm200_vm0, %v3370_v21, 0.0  ;;  %v3583_v21 = vld [vmem:[#allocation10] sm:$0xff] }
 0x613   :  { %3385 = vadd.xlane.f32.xlu2 %v3384_v35 }
 0x65e   :  { %v3377_v48 = vpop.xlane.xlu2 %3376 }
 0x65f   :  { %v3387_v20 = vmul.f32 %v3377_v48, %v5977_v4 }
 0x661   :  { %v3391_v36 = vadd.f32 1e-05, %v3387_v20 }
 0x663   :  { %4157 = vrsqrt.f32 %v3391_v36  ;;  %vm3401_vm7 = vweird.f32 %v3391_v36 }
 0x669   :  { %v4158_v51 = vpop.eup %4157 }
 0x66a   :  { %v3396_v42 = vmul.f32 %v4158_v51, %v3391_v36  ;;  %v3380_v9 = vpop.xlane.xlu0 %3379  ;;  %vm3402_vm6 = vweird.f32 %v4158_v51 }
 0x66b   :  { %v3388_v54 = vmul.f32 %v3380_v9, %v5977_v4  ;;  %vm3403_vm8 = vmor %vm3401_vm7, %vm3402_vm6 }
 0x66c   :  { %v3397_v63 = vmul.f32 %v4158_v51, %v3396_v42 }
 0x66d   :  { %v3392_v57 = vadd.f32 1e-05, %v3388_v54 }
 0x66e   :  { %v3398_v44 = vmul.f32 0.5, %v3397_v63 }
 0x66f   :  { %4159 = vrsqrt.f32 %v3392_v57  ;;  %vm3411_vm10 = vweird.f32 %v3392_v57 }
 0x670   :  { %v3399_v58 = vsub.f32 1.5, %v3398_v44 }
 0x672   :  { %v3400_v18 = vmul.f32 %v4158_v51, %v3399_v58 }
 0x674   :  { %v3404_v26 = vsel %vm3403_vm8, %v4158_v51, %v3400_v18 }
 0x675   :  { %v4160_v55 = vpop.eup %4159  ;;  %v3442_v34 = vperm.slane %v3404_v26, %v5979_v30  ;;  %v3446_v24 = vperm.slane %v3404_v26, %v5981_v1  ;;  %v3450_v37 = vperm.slane %v3404_v26, %v5983_v5  ;;  %v3454_v41 = vperm.slane %v3404_v26, %v5985_v29 }
 0x676   :  { %v3406_v10 = vmul.f32 %v4160_v55, %v3392_v57  ;;  %vm3412_vm9 = vweird.f32 %v4160_v55 }
 0x677   :  { %v3519_v47 = vmul.f32 %v3442_v34, %v5993_v52  ;;  %v3520_v15 = vmul.f32 %v3446_v24, %v5996_v14  ;;  %v3521_v33 = vmul.f32 %v3450_v37, %v5999_v61  ;;  %v3522_v12 = vmul.f32 %v3454_v41, %v6002_v56  ;;  %v3584_v52 = vld [vmem:[#allocation10 + $0x8] sm:$0xff]  ;;  %vm3413_vm11 = vmor %vm3411_vm10, %vm3412_vm9 }
 0x678   :  { %v3407_v19 = vmul.f32 %v4160_v55, %v3406_v10  ;;  %3653 = vmatpush.msrb.mxu3 %v3584_v52  ;;  %v4086_v36 = vpack.i.bf16 %v3583_v21, %v3584_v52 }
 0x679   :  { %v3543_v3 = vmul.f32 %v6095_v6, %v3519_v47  ;;  %v3544_v8 = vmul.f32 %v6101_v45, %v3520_v15  ;;  %v3545_v0 = vmul.f32 %v6104_v50, %v3521_v33  ;;  %v3546_v38 = vmul.f32 %v6107_v43, %v3522_v12 }
 0x67a   :  { %v3408_v28 = vmul.f32 0.5, %v3407_v19  ;;  %3654 = vmatpush.msrb.mxu3 %v3583_v21  ;;  %4087 = vrot.lane.b32.xlu1 %v4086_v36, %s4363_s4 }
 0x67b   :  { %v6131_v14 = vadd.f32 %v6098_v59, %v3543_v3  ;;  %v6134_v61 = vadd.f32 %v6114_v60, %v3544_v8  ;;  %v6137_v56 = vadd.f32 %v6117_v25, %v3545_v0  ;;  %v6140_v35 = vadd.f32 %v6124_v2, %v3546_v38 }
 0x67c   :  { %v3409_v48 = vsub.f32 1.5, %v3408_v28 }
 0x67d   :  { %3604 = vst [vmem:[#allocation1] ss:$4 sm:$0xff] %v6131_v14 }
 0x67e   :  { %v3383_v20 = vpop.xlane.xlu1 %3382  ;;  %3606 = vst [vmem:[#allocation1 + $0x1] ss:$4 sm:$0xff] %v6134_v61  ;;  %v3410_v42 = vmul.f32 %v4160_v55, %v3409_v48 }
 0x67f   :  { %v3389_v51 = vmul.f32 %v3383_v20, %v5977_v4  ;;  %3608 = vst [vmem:[#allocation1 + $0x2] ss:$4 sm:$0xff] %v6137_v56 }
 0x680   :  { %3610 = vst [vmem:[#allocation1 + $0x3] ss:$4 sm:$0xff] %v6140_v35  ;;  %v3414_v54 = vsel %vm3413_vm11, %v4160_v55, %v3410_v42 }
 0x681   :  { %v3393_v9 = vadd.f32 1e-05, %v3389_v51  ;;  %v3458_v63 = vperm.slane %v3414_v54, %v5979_v30  ;;  %v3462_v53 = vperm.slane %v3414_v54, %v5981_v1  ;;  %v3466_v23 = vperm.slane %v3414_v54, %v5983_v5 }
 0x682   :  { %v3470_v17 = vperm.slane %v3414_v54, %v5985_v29 }
 0x683   :  { %4161 = vrsqrt.f32 %v3393_v9  ;;  %v3523_v57 = vmul.f32 %v3458_v63, %v6018_v13  ;;  %v3524_v44 = vmul.f32 %v3462_v53, %v6021_v16  ;;  %v3525_v58 = vmul.f32 %v3466_v23, %v6024_v32 }
 0x684   :  { %v3526_v18 = vmul.f32 %v3470_v17, %v6027_v46  ;;  %vm3421_vm13 = vweird.f32 %v3393_v9 }
 0x685   :  { %v3547_v55 = vmul.f32 %v6095_v6, %v3523_v57  ;;  %v3548_v34 = vmul.f32 %v6101_v45, %v3524_v44  ;;  %v3549_v24 = vmul.f32 %v6104_v50, %v3525_v58 }
 0x686   :  { %v3386_v26 = vpop.xlane.xlu2 %3385  ;;  %v3550_v37 = vmul.f32 %v6107_v43, %v3526_v18 }
 0x687   :  { %v3390_v41 = vmul.f32 %v3386_v26, %v5977_v4  ;;  %v6162_v10 = vadd.f32 %v6098_v59, %v3547_v55  ;;  %v6165_v13 = vadd.f32 %v6114_v60, %v3548_v34  ;;  %v6168_v16 = vadd.f32 %v6117_v25, %v3549_v24  ;;  %v3619_v32 = vld.sshfl [vmem:[#allocation1] sm:$0xff pattern:$0x73625140] }
 0x688   :  { %v6171_v47 = vadd.f32 %v6124_v2, %v3550_v37  ;;  %3994 = vmatmul.msk.f32.vlgmr.msrb.gmra.mxu3 %vm200_vm0, %v3619_v32 }
 0x689   :  { %v4162_v46 = vpop.eup %4161  ;;  %v3394_v15 = vadd.f32 1e-05, %v3390_v41  ;;  %3612 = vst [vmem:[#allocation1 + $0x20] ss:$4 sm:$0xff] %v6162_v10 }
 0x68a   :  { %v3416_v33 = vmul.f32 %v4162_v46, %v3393_v9  ;;  %3614 = vst [vmem:[#allocation1 + $0x21] ss:$4 sm:$0xff] %v6165_v13  ;;  %vm3422_vm12 = vweird.f32 %v4162_v46 }
 0x68b   :  { %4163 = vrsqrt.f32 %v3394_v15  ;;  %3616 = vst [vmem:[#allocation1 + $0x22] ss:$4 sm:$0xff] %v6168_v16  ;;  %vm3423_vm14 = vmor %vm3421_vm13, %vm3422_vm12  ;;  %vm3431_vm1 = vweird.f32 %v3394_v15 }
 0x68c   :  { %v3417_v12 = vmul.f32 %v4162_v46, %v3416_v33  ;;  %3618 = vst [vmem:[#allocation1 + $0x23] ss:$4 sm:$0xff] %v6171_v47 }
 0x68e   :  { %v3418_v19 = vmul.f32 0.5, %v3417_v12 }
 0x690   :  { %v3419_v3 = vsub.f32 1.5, %v3418_v19 }
 0x691   :  { %v4164_v8 = vpop.eup %4163 }
 0x692   :  { %v3420_v0 = vmul.f32 %v4162_v46, %v3419_v3  ;;  %v3426_v38 = vmul.f32 %v4164_v8, %v3394_v15  ;;  %vm3432_vm15 = vweird.f32 %v4164_v8 }
 0x693   :  { %v3620_v21 = vld.sshfl [vmem:[#allocation1 + $0x20] sm:$0xff pattern:$0x73625140]  ;;  %vm3433_vm2 = vmor %vm3431_vm1, %vm3432_vm15 }
 0x694   :  { %v3424_v28 = vsel %vm3423_vm14, %v4162_v46, %v3420_v0  ;;  %v3427_v52 = vmul.f32 %v4164_v8, %v3426_v38  ;;  %3995 = vmatmul.msk.f32.gmra.mxu3 %vm200_vm0, %v3620_v21 }
 0x695   :  { %v3474_v48 = vperm.slane %v3424_v28, %v5979_v30  ;;  %v3478_v20 = vperm.slane %v3424_v28, %v5981_v1  ;;  %v3482_v36 = vperm.slane %v3424_v28, %v5983_v5  ;;  %v3486_v51 = vperm.slane %v3424_v28, %v5985_v29 }
 0x696   :  { %v3428_v42 = vmul.f32 0.5, %v3427_v52  ;;  %v3672_v28 = vperm.slane %v5906_v40, 5 }
 0x697   :  { %v3527_v54 = vmul.f32 %v3474_v48, %v6045_v27  ;;  %v3528_v9 = vmul.f32 %v3478_v20, %v6048_v11  ;;  %v3529_v63 = vmul.f32 %v3482_v36, %v6051_v39  ;;  %v3530_v53 = vmul.f32 %v3486_v51, %v6054_v49 }
 0x698   :  { %v3429_v23 = vsub.f32 1.5, %v3428_v42 }
 0x699   :  { %v3551_v17 = vmul.f32 %v6095_v6, %v3527_v54  ;;  %v3552_v57 = vmul.f32 %v6101_v45, %v3528_v9  ;;  %v3553_v44 = vmul.f32 %v6104_v50, %v3529_v63  ;;  %v3554_v58 = vmul.f32 %v6107_v43, %v3530_v53 }
 0x69a   :  { %v3430_v18 = vmul.f32 %v4164_v8, %v3429_v23 }
 0x69b   :  { %v3575_v27 = vadd.f32 %v6098_v59, %v3551_v17  ;;  %v3576_v11 = vadd.f32 %v6114_v60, %v3552_v57  ;;  %v3577_v39 = vadd.f32 %v6117_v25, %v3553_v44  ;;  %v3578_v49 = vadd.f32 %v6124_v2, %v3554_v58 }
 0x69c   :  { %v3434_v26 = vsel %vm3433_vm2, %v4164_v8, %v3430_v18 }
 0x69d   :  { %3621 = vst [vmem:[#allocation1] ss:$4 sm:$0xff] %v3575_v27  ;;  %v3490_v55 = vperm.slane %v3434_v26, %v5979_v30  ;;  %v3494_v34 = vperm.slane %v3434_v26, %v5981_v1  ;;  %v3498_v24 = vperm.slane %v3434_v26, %v5983_v5  ;;  %v3502_v37 = vperm.slane %v3434_v26, %v5985_v29 }
 0x69e   :  { %3622 = vst [vmem:[#allocation1 + $0x1] ss:$4 sm:$0xff] %v3576_v11 }
 0x69f   :  { %3623 = vst [vmem:[#allocation1 + $0x2] ss:$4 sm:$0xff] %v3577_v39  ;;  %v3531_v41 = vmul.f32 %v3490_v55, %v6070_v22  ;;  %v3532_v32 = vmul.f32 %v3494_v34, %v6073_v62  ;;  %v3533_v46 = vmul.f32 %v3498_v24, %v6076_v7  ;;  %v3534_v15 = vmul.f32 %v3502_v37, %v6079_v31 }
 0x6a0   :  { %3624 = vst [vmem:[#allocation1 + $0x3] ss:$4 sm:$0xff] %v3578_v49 }
 0x6a1   :  { %v3555_v33 = vmul.f32 %v6095_v6, %v3531_v41  ;;  %v3556_v30 = vmul.f32 %v6101_v45, %v3532_v32  ;;  %v3557_v1 = vmul.f32 %v6104_v50, %v3533_v46  ;;  %v3558_v5 = vmul.f32 %v6107_v43, %v3534_v15  ;;  %v4083_v45 = vpop.permute.xlu0 %4082 }
 0x6a2   :  { %v4085_v50 = vunpack.i.h.bf16 %v4083_v45  ;;  %v4084_v43 = vunpack.i.l.bf16 %v4083_v45 }
 0x6a3   :  { %v3579_v29 = vadd.f32 %v6098_v59, %v3555_v33  ;;  %v3580_v12 = vadd.f32 %v6114_v60, %v3556_v30  ;;  %v3581_v22 = vadd.f32 %v6117_v25, %v3557_v1  ;;  %v3582_v62 = vadd.f32 %v6124_v2, %v3558_v5 }
 0x6a4   :  { %3713 = vmatpush.msrb.mxu0 %v4084_v43 }
 0x6a5   :  { %3625 = vst [vmem:[#allocation1 + $0x20] ss:$4 sm:$0xff] %v3579_v29 }
 0x6a6   :  { %3626 = vst [vmem:[#allocation1 + $0x21] ss:$4 sm:$0xff] %v3580_v12  ;;  %3714 = vmatpush.msrb.mxu0 %v4085_v50 }
 0x6a7   :  { %3627 = vst [vmem:[#allocation1 + $0x22] ss:$4 sm:$0xff] %v3581_v22  ;;  %v3629_v7 = vld.sshfl [vmem:[#allocation1] sm:$0xff pattern:$0x73625140] }
 0x6a8   :  { %3628 = vst [vmem:[#allocation1 + $0x23] ss:$4 sm:$0xff] %v3582_v62  ;;  %3996 = vmatmul.msk.f32.gmra.mxu3 %vm200_vm0, %v3629_v7 }
 0x6a9   :  { %3730 = vst [vmem:[#allocation1] ss:$4 sm:$0xff] %v6131_v14  ;;  %v3587_v14 = vperm.slane %v5906_v40, 4 }
 0x6aa   :  { %3732 = vst [vmem:[#allocation1 + $0x1] ss:$4 sm:$0xff] %v6134_v61 }
 0x6ab   :  { %3734 = vst [vmem:[#allocation1 + $0x2] ss:$4 sm:$0xff] %v6137_v56 }
 0x6ac   :  { %3736 = vst [vmem:[#allocation1 + $0x3] ss:$4 sm:$0xff] %v6140_v35 }
 0x6af   :  { %v3630_v31 = vld.sshfl [vmem:[#allocation1 + $0x20] sm:$0xff pattern:$0x73625140] }
 0x6b0   :  { %3997 = vmatmul.msk.f32.gmra.mxu3 %vm200_vm0, %v3630_v31  ;;  %3738 = vst [vmem:[#allocation1 + $0x20] ss:$4 sm:$0xff] %v6162_v10 }
 0x6b1   :  { %3740 = vst [vmem:[#allocation1 + $0x21] ss:$4 sm:$0xff] %v6165_v13 }
 0x6b2   :  { %3742 = vst [vmem:[#allocation1 + $0x22] ss:$4 sm:$0xff] %v6168_v16 }
 0x6b3   :  { %3744 = vst [vmem:[#allocation1 + $0x23] ss:$4 sm:$0xff] %v6171_v47  ;;  %v3745_v6 = vld.sshfl [vmem:[#allocation1] sm:$0xff pattern:$0x73625140] }
 0x6b4   :  { %3747 = vst [vmem:[#allocation1] ss:$4 sm:$0xff] %v3575_v27 }
 0x6b5   :  { %3748 = vst [vmem:[#allocation1 + $0x1] ss:$4 sm:$0xff] %v3576_v11 }
 0x6b6   :  { %3749 = vst [vmem:[#allocation1 + $0x2] ss:$4 sm:$0xff] %v3577_v39 }
 0x6b7   :  { %3750 = vst [vmem:[#allocation1 + $0x3] ss:$4 sm:$0xff] %v3578_v49 }
 0x6ba   :  { %v3746_v59 = vld.sshfl [vmem:[#allocation1 + $0x20] sm:$0xff pattern:$0x73625140] }
 0x6bb   :  { %3751 = vst [vmem:[#allocation1 + $0x20] ss:$4 sm:$0xff] %v3579_v29 }
 0x6bc   :  { %3752 = vst [vmem:[#allocation1 + $0x21] ss:$4 sm:$0xff] %v3580_v12 }
 0x6bd   :  { %3753 = vst [vmem:[#allocation1 + $0x22] ss:$4 sm:$0xff] %v3581_v22 }
 0x6be   :  { %3754 = vst [vmem:[#allocation1 + $0x23] ss:$4 sm:$0xff] %v3582_v62  ;;  %v3755_v53 = vld.sshfl [vmem:[#allocation1] sm:$0xff pattern:$0x73625140] }
 0x6c5   :  { %v3756_v44 = vld.sshfl [vmem:[#allocation1 + $0x20] sm:$0xff pattern:$0x73625140] }
 0x6ec   :  { %v4088_v60 = vpop.permute.xlu1 %4087 }
 0x6ed   :  { %v4090_v25 = vunpack.i.h.bf16 %v4088_v60  ;;  %v4089_v2 = vunpack.i.l.bf16 %v4088_v60 }
 0x6ef   :  { %3715 = vmatpush.msrb.mxu0 %v4089_v2  ;;  %v119_v2 = vld [vmem:[#allocation11 + $0x8] sm:$0x3] }
 0x6f1   :  { %3716 = vmatpush.msrb.mxu0 %v4090_v25 }
 0x70b   :  { %v3656_v61 = vpop.f32.mrf.mxu3 }
 0x70c   :  { %v3657_v56 = vadd.f32 %v3656_v61, %v3587_v14 }
 0x70e   :  { %v3668_v35 = vmax.f32 %v3657_v56, 0.0  ;;  %v6249_v56 = vperm.slane %v119_v2, 0 }
 0x710   :  { %3998 = vmatmul.msk.f32.vlgmr.msrb.gmra.mxu0 %vm200_vm0, %v3668_v35 }
 0x717   :  { %v3659_v10 = vpop.f32.mrf.mxu3 }
 0x718   :  { %v3660_v13 = vadd.f32 %v3659_v10, %v3587_v14 }
 0x71a   :  { %v3669_v16 = vmax.f32 %v3660_v13, 0.0  ;;  %v6251_v13 = vperm.slane %v119_v2, 1 }
 0x71c   :  { %3999 = vmatmul.msk.f32.gmra.mxu0 %vm200_vm0, %v3669_v16 }
 0x72b   :  { %v3662_v47 = vpop.f32.mrf.mxu3 }
 0x72c   :  { %v3663_v19 = vadd.f32 %v3662_v47, %v3587_v14 }
 0x72e   :  { %v3670_v3 = vmax.f32 %v3663_v19, 0.0 }
 0x730   :  { %4000 = vmatmul.msk.f32.gmra.mxu0 %vm200_vm0, %v3670_v3 }
 0x733   :  { %v3665_v8 = vpop.f32.mrf.mxu3 }
 0x734   :  { %v3666_v0 = vadd.f32 %v3665_v8, %v3587_v14 }
 0x736   :  { %v3671_v38 = vmax.f32 %v3666_v0, 0.0 }
 0x738   :  { %4001 = vmatmul.msk.f32.gmra.mxu0 %vm200_vm0, %v3671_v38 }
 0x78d   :  { %v3718_v52 = vpop.f32.mrf.mxu0 }
 0x78e   :  { %v3719_v21 = vadd.f32 %v3718_v52, %v3672_v28 }
 0x790   :  { %v3761_v48 = vadd.f32 %v3745_v6, %v3719_v21 }
 0x792   :  { %v3765_v20 = vsel %vm200_vm0, %v3761_v48, 0.0 }
 0x793   :  { %3766 = vadd.xlane.f32.xlu2 %v3765_v20 }
 0x799   :  { %v3721_v36 = vpop.f32.mrf.mxu0 }
 0x79a   :  { %v3722_v51 = vadd.f32 %v3721_v36, %v3672_v28 }
 0x79c   :  { %v3762_v42 = vadd.f32 %v3746_v59, %v3722_v51 }
 0x79e   :  { %v3768_v54 = vsel %vm200_vm0, %v3762_v42, 0.0 }
 0x79f   :  { %3769 = vadd.xlane.f32.xlu2 %v3768_v54 }
 0x7ad   :  { %v3724_v9 = vpop.f32.mrf.mxu0 }
 0x7ae   :  { %v3725_v63 = vadd.f32 %v3724_v9, %v3672_v28 }
 0x7b0   :  { %v3763_v23 = vadd.f32 %v3755_v53, %v3725_v63 }
 0x7b2   :  { %v3771_v17 = vsel %vm200_vm0, %v3763_v23, 0.0 }
 0x7b3   :  { %3772 = vadd.xlane.f32.xlu0 %v3771_v17 }
 0x7b5   :  { %v3727_v40 = vpop.f32.mrf.mxu0 }
 0x7b6   :  { %v3728_v57 = vadd.f32 %v3727_v40, %v3672_v28 }
 0x7b8   :  { %v3764_v58 = vadd.f32 %v3756_v44, %v3728_v57 }
 0x7ba   :  { %v3774_v18 = vsel %vm200_vm0, %v3764_v58, 0.0 }
 0x7bb   :  { %3775 = vadd.xlane.f32.xlu2 %v3774_v18 }
 0x806   :  { %v3767_v27 = vpop.xlane.xlu2 %3766 }
 0x807   :  { %v3777_v11 = vmul.f32 %v3767_v27, %v5977_v4 }
 0x809   :  { %v3781_v39 = vsub.f32 %v3761_v48, %v3777_v11 }
 0x80b   :  { %v3785_v49 = vmul.f32 %v3781_v39, %v3781_v39 }
 0x80d   :  { %v3789_v26 = vsel %vm200_vm0, %v3785_v49, 0.0 }
 0x80e   :  { %3790 = vadd.xlane.f32.xlu1 %v3789_v26 }
 0x812   :  { %v3770_v55 = vpop.xlane.xlu2 %3769 }
 0x813   :  { %v3778_v34 = vmul.f32 %v3770_v55, %v5977_v4 }
 0x815   :  { %v3782_v24 = vsub.f32 %v3762_v42, %v3778_v34 }
 0x817   :  { %v3786_v37 = vmul.f32 %v3782_v24, %v3782_v24 }
 0x819   :  { %v3792_v41 = vsel %vm200_vm0, %v3786_v37, 0.0 }
 0x81a   :  { %3793 = vadd.xlane.f32.xlu2 %v3792_v41 }
 0x826   :  { %v3773_v32 = vpop.xlane.xlu0 %3772 }
 0x827   :  { %v3779_v46 = vmul.f32 %v3773_v32, %v5977_v4 }
 0x829   :  { %v6236_v15 = vsub.f32 %v3763_v23, %v3779_v46 }
 0x82b   :  { %v3787_v33 = vmul.f32 %v6236_v15, %v6236_v15 }
 0x82d   :  { %v3795_v30 = vsel %vm200_vm0, %v3787_v33, 0.0 }
 0x82e   :  { %3796 = vadd.xlane.f32.xlu2 %v3795_v30  ;;  %v3776_v1 = vpop.xlane.xlu2 %3775 }
 0x82f   :  { %v3780_v5 = vmul.f32 %v3776_v1, %v5977_v4 }
 0x831   :  { %v6242_v29 = vsub.f32 %v3764_v58, %v3780_v5 }
 0x833   :  { %v3788_v12 = vmul.f32 %v6242_v29, %v6242_v29 }
 0x835   :  { %v3798_v22 = vsel %vm200_vm0, %v3788_v12, 0.0 }
 0x836   :  { %3799 = vadd.xlane.f32.xlu2 %v3798_v22 }
 0x881   :  { %v3791_v62 = vpop.xlane.xlu1 %3790 }
 0x882   :  { %v3801_v7 = vmul.f32 %v3791_v62, %v5977_v4 }
 0x884   :  { %v3805_v31 = vadd.f32 1e-05, %v3801_v7 }
 0x886   :  { %4165 = vrsqrt.f32 %v3805_v31  ;;  %vm3815_vm0 = vweird.f32 %v3805_v31 }
 0x88c   :  { %v4166_v6 = vpop.eup %4165 }
 0x88d   :  { %v3810_v59 = vmul.f32 %v4166_v6, %v3805_v31  ;;  %v3794_v45 = vpop.xlane.xlu2 %3793  ;;  %vm3816_vm3 = vweird.f32 %v4166_v6 }
 0x88e   :  { %v3802_v50 = vmul.f32 %v3794_v45, %v5977_v4  ;;  %vm3817_vm4 = vmor %vm3815_vm0, %vm3816_vm3 }
 0x88f   :  { %v3811_v43 = vmul.f32 %v4166_v6, %v3810_v59 }
 0x890   :  { %v3806_v60 = vadd.f32 1e-05, %v3802_v50 }
 0x891   :  { %v3812_v25 = vmul.f32 0.5, %v3811_v43 }
 0x892   :  { %4167 = vrsqrt.f32 %v3806_v60  ;;  %vm3825_vm7 = vweird.f32 %v3806_v60 }
 0x893   :  { %v3813_v14 = vsub.f32 1.5, %v3812_v25 }
 0x895   :  { %v3814_v61 = vmul.f32 %v4166_v6, %v3813_v14 }
 0x897   :  { %v3818_v35 = vsel %vm3817_vm4, %v4166_v6, %v3814_v61 }
 0x898   :  { %v4168_v10 = vpop.eup %4167  ;;  %v3849_v16 = vmul.f32 %v3818_v35, %v3781_v39 }
 0x899   :  { %v3820_v47 = vmul.f32 %v4168_v10, %v3806_v60  ;;  %vm3826_vm6 = vweird.f32 %v4168_v10 }
 0x89a   :  { %v3854_v19 = vmul.f32 %v6249_v56, %v3849_v16  ;;  %vm3827_vm8 = vmor %vm3825_vm7, %vm3826_vm6 }
 0x89b   :  { %v3821_v3 = vmul.f32 %v4168_v10, %v3820_v47 }
 0x89c   :  { %v3859_v8 = vadd.f32 %v6251_v13, %v3854_v19 }
 0x89d   :  { %v3822_v0 = vmul.f32 0.5, %v3821_v3 }
 0x89e   :  { %v3867_v38 = vrot.slane %v3859_v8, 2  ;;  %v3868_v28 = vrot.slane %v3859_v8, 4  ;;  %v3869_v52 = vrot.slane %v3859_v8, 6  ;;  %3892 = vst.msk [vmem:[#allocation13] sm:$0x3] %vm3891_vm5, %v3859_v8 }
 0x89f   :  { %v3823_v21 = vsub.f32 1.5, %v3822_v0 }
 0x8a0   :  { %3893 = vst.msk [vmem:[#allocation13 + $0x2] sm:$0x3] %vm3891_vm5, %v3867_v38 }
 0x8a1   :  { %v3797_v48 = vpop.xlane.xlu2 %3796  ;;  %3894 = vst.msk [vmem:[#allocation13 + $0x4] sm:$0x3] %vm3891_vm5, %v3868_v28  ;;  %v3824_v20 = vmul.f32 %v4168_v10, %v3823_v21 }
 0x8a2   :  { %v3803_v36 = vmul.f32 %v3797_v48, %v5977_v4  ;;  %3895 = vst.msk [vmem:[#allocation13 + $0x6] sm:$0x3] %vm3891_vm5, %v3869_v52 }
 0x8a3   :  { %v3828_v51 = vsel %vm3827_vm8, %v4168_v10, %v3824_v20 }
 0x8a4   :  { %v3807_v42 = vadd.f32 1e-05, %v3803_v36  ;;  %v3850_v54 = vmul.f32 %v3828_v51, %v3782_v24 }
 0x8a6   :  { %4169 = vrsqrt.f32 %v3807_v42  ;;  %v3855_v9 = vmul.f32 %v6249_v56, %v3850_v54  ;;  %vm3835_vm10 = vweird.f32 %v3807_v42 }
 0x8a8   :  { %v3860_v63 = vadd.f32 %v6251_v13, %v3855_v9 }
 0x8a9   :  { %v3800_v53 = vpop.xlane.xlu2 %3799 }
 0x8aa   :  { %v3804_v23 = vmul.f32 %v3800_v53, %v5977_v4  ;;  %v3870_v17 = vrot.slane %v3860_v63, 2  ;;  %v3871_v40 = vrot.slane %v3860_v63, 4  ;;  %v3872_v57 = vrot.slane %v3860_v63, 6  ;;  %3896 = vst.msk [vmem:[#allocation13 + $0x8] sm:$0x3] %vm3891_vm5, %v3860_v63 }
 0x8ac   :  { %v4170_v44 = vpop.eup %4169  ;;  %v3808_v58 = vadd.f32 1e-05, %v3804_v23  ;;  %3897 = vst.msk [vmem:[#allocation13 + $0xa] sm:$0x3] %vm3891_vm5, %v3870_v17 }
 0x8ad   :  { %v3830_v18 = vmul.f32 %v4170_v44, %v3807_v42  ;;  %3898 = vst.msk [vmem:[#allocation13 + $0xc] sm:$0x3] %vm3891_vm5, %v3871_v40  ;;  %vm3836_vm9 = vweird.f32 %v4170_v44 }
 0x8ae   :  { %4171 = vrsqrt.f32 %v3808_v58  ;;  %3899 = vst.msk [vmem:[#allocation13 + $0xe] sm:$0x3] %vm3891_vm5, %v3872_v57  ;;  %vm3837_vm11 = vmor %vm3835_vm10, %vm3836_vm9  ;;  %vm3845_vm13 = vweird.f32 %v3808_v58 }
 0x8af   :  { %v3831_v27 = vmul.f32 %v4170_v44, %v3830_v18 }
 0x8b1   :  { %v3832_v11 = vmul.f32 0.5, %v3831_v27 }
 0x8b3   :  { %v3833_v39 = vsub.f32 1.5, %v3832_v11 }
 0x8b4   :  { %v4172_v4 = vpop.eup %4171 }
 0x8b5   :  { %v3834_v49 = vmul.f32 %v4170_v44, %v3833_v39  ;;  %v3840_v26 = vmul.f32 %v4172_v4, %v3808_v58  ;;  %vm3846_vm12 = vweird.f32 %v4172_v4 }
 0x8b6   :  { %vm3847_vm14 = vmor %vm3845_vm13, %vm3846_vm12 }
 0x8b7   :  { %v3838_v55 = vsel %vm3837_vm11, %v4170_v44, %v3834_v49  ;;  %v3841_v34 = vmul.f32 %v4172_v4, %v3840_v26 }
 0x8b8   :  { %v3851_v24 = vmul.f32 %v3838_v55, %v6236_v15 }
 0x8b9   :  { %v3842_v37 = vmul.f32 0.5, %v3841_v34 }
 0x8ba   :  { %v3856_v41 = vmul.f32 %v6249_v56, %v3851_v24 }
 0x8bb   :  { %v3843_v32 = vsub.f32 1.5, %v3842_v37 }
 0x8bc   :  { %v3861_v46 = vadd.f32 %v6251_v13, %v3856_v41 }
 0x8bd   :  { %v3844_v33 = vmul.f32 %v4172_v4, %v3843_v32 }
 0x8be   :  { %v3873_v30 = vrot.slane %v3861_v46, 2  ;;  %v3874_v1 = vrot.slane %v3861_v46, 4  ;;  %v3875_v5 = vrot.slane %v3861_v46, 6  ;;  %3900 = vst.msk [vmem:[#allocation13 + $0x10] sm:$0x3] %vm3891_vm5, %v3861_v46 }
 0x8bf   :  { %v3848_v12 = vsel %vm3847_vm14, %v4172_v4, %v3844_v33 }
 0x8c0   :  { %3901 = vst.msk [vmem:[#allocation13 + $0x12] sm:$0x3] %vm3891_vm5, %v3873_v30  ;;  %v3852_v15 = vmul.f32 %v3848_v12, %v6242_v29 }
 0x8c1   :  { %3902 = vst.msk [vmem:[#allocation13 + $0x14] sm:$0x3] %vm3891_vm5, %v3874_v1 }
 0x8c2   :  { %3903 = vst.msk [vmem:[#allocation13 + $0x16] sm:$0x3] %vm3891_vm5, %v3875_v5  ;;  %v3857_v22 = vmul.f32 %v6249_v56, %v3852_v15 }
 0x8c4   :  { %v3862_v62 = vadd.f32 %v6251_v13, %v3857_v22 }
 0x8c6   :  { %v3876_v7 = vrot.slane %v3862_v62, 2  ;;  %v3877_v31 = vrot.slane %v3862_v62, 4  ;;  %v3878_v6 = vrot.slane %v3862_v62, 6  ;;  %3904 = vst.msk [vmem:[#allocation13 + $0x18] sm:$0x3] %vm3891_vm5, %v3862_v62 }
 0x8c8   :  { %3905 = vst.msk [vmem:[#allocation13 + $0x1a] sm:$0x3] %vm3891_vm5, %v3876_v7 }
 0x8c9   :  { %3906 = vst.msk [vmem:[#allocation13 + $0x1c] sm:$0x3] %vm3891_vm5, %v3877_v31 }
 0x8ca   :  { %3907 = vst.msk [vmem:[#allocation13 + $0x1e] sm:$0x3] %vm3891_vm5, %v3878_v6 }
 0x8cb   :  { %3920 = dma.vmem_to_hbm [thread:$0]  %s3913_s1, 512, %s3915_s13, [#allocation4], %s4354_s26, %s4354_s26, %s4355_s27  }
 0x8cc   :  { %4351 = dma.done.wait [#allocation4], 512  }
 0x8cd   :  { %4352 = vsyncadd [#allocation4], 4294966784 }
 0x8ce   :  { %3925 = vsyncpa [#allocation3], 1 }
 0x8cf   :  { %3926 = vsyncpa [#allocation6], 1 }
 0x8d0   :  { %3927 = vsyncpa [#allocation9], 1 }
 0x8d1   :  { %3928 = vsyncpa [#allocation12], 1 }
 0x8d2   :  { %3929 = vsyncpa [#allocation4], 1 }

</bundles_post_ra>
